<compile_context>
chip_gen: v7x
topology: tpu7x:2x2x1
jax: 0.10.0
libtpu: 0.0.40
codegen_flags: <defaults>
</compile_context>

<pallas_src>
import functools

import jax
import jax.numpy as jnp
from jax.experimental import pallas as pl
from jax.experimental.pallas import tpu as pltpu

KW = 4                      # conv kernel size
PADW = 2                    # int(ceil((4 - 1) / 2))
BN_EPS = 1e-5
LRELU_SLOPE = 0.2
LANE = 128


# ---------------------------------------------------------------------------
# Generation-aware sizing (v5e/v6e: 128 MiB VMEM -> TM 512; v7x: 64 MiB -> 256)
# ---------------------------------------------------------------------------
def _phys_vmem_bytes():
    try:
        info = pltpu.get_tpu_info()
        v = getattr(info, "vmem_capacity_bytes", None)
        if v:
            return int(v)
    except Exception:
        pass
    return 64 * 1024 * 1024   # conservative fallback


_PHYS_VMEM = _phys_vmem_bytes()
VMEM_LIMIT = min(96 * 1024 * 1024, max(32 * 1024 * 1024, _PHYS_VMEM // 2))
TM_TARGET = 512 if _PHYS_VMEM >= 100 * 1024 * 1024 else 256


# ---------------------------------------------------------------------------
# small helpers
# ---------------------------------------------------------------------------
def _round_up(x, m):
    return ((x + m - 1) // m) * m


def _m_tiling(m, target):
    """(tm, m_pad): tm multiple of 8 <= target, preferring tm | round_up(m, 8)
    so the patch tensor needs no (or only an 8-row) pad."""
    m8 = _round_up(m, 8)
    if m8 <= target:
        return m8, m8
    best = 8
    for t in range(8, target + 1, 8):
        if m8 % t == 0:
            best = t
    if best * 2 >= target:
        return best, m8
    return target, _round_up(m, target)


def _div_tile(m_pad, target):
    """Largest multiple-of-8 divisor of m_pad that is <= target (streaming kernels)."""
    if m_pad <= target:
        return m_pad
    best = 8
    for t in range(8, target + 1, 8):
        if m_pad % t == 0:
            best = t
    return best


def _h_tile(n, pref=128):
    """Tile for the pooled-H axis: divisor of n, multiple of 8 (or full)."""
    if n <= pref:
        return n
    for t in range(pref, 7, -1):
        if n % t == 0 and t % 8 == 0:
            return t
    return n


# ---------------------------------------------------------------------------
# Glue: im2col patch extraction (JAX).  Row flatten order (kh, kw, cin)
# matches the HWIO weight flatten below.
# TODO(synk): move the (kh,kw) tap reduction into the Pallas kernel (halo DMA)
# to eliminate the im2col HBM blowup (largest on stride-1, Cin=512 layers).
# ---------------------------------------------------------------------------
def _extract_patches(x, k, stride, pad):
    N, H, W, C = x.shape
    xp = jnp.pad(x, ((0, 0), (pad, pad), (pad, pad), (0, 0)))
    Ho = (H + 2 * pad - k) // stride + 1
    Wo = (W + 2 * pad - k) // stride + 1
    cols = []
    for kh in range(k):
        for kw in range(k):
            cols.append(xp[:, kh:kh + stride * (Ho - 1) + 1:stride,
                           kw:kw + stride * (Wo - 1) + 1:stride, :])
    patches = jnp.stack(cols, axis=3)                 # (N, Ho, Wo, k*k, C)
    return patches.reshape(N * Ho * Wo, k * k * C), (N, Ho, Wo)


# ---------------------------------------------------------------------------
# Pallas kernel 1a: conv-as-matmul for BN layers.  Full-K blocks, VMEM-resident
# weight, fused per-tile BN partial stats (sum / sumsq in f32).  bf16 output.
# No bias (BatchNorm mean-subtraction cancels it exactly).
# ---------------------------------------------------------------------------
def _conv_bn_mm_kernel(p_ref, w_ref, y_ref, s_ref, q_ref):
    y = jnp.dot(p_ref[...], w_ref[...], preferred_element_type=jnp.float32)
    s_ref[...] = jnp.sum(y, axis=0, keepdims=True)
    q_ref[...] = jnp.sum(y * y, axis=0, keepdims=True)
    y_ref[...] = y.astype(y_ref.dtype)


def conv_matmul_bn(patches, w, *, tm):
    m_pad, kk = patches.shape
    cp = w.shape[1]
    gm = m_pad // tm
    flops = 2 * m_pad * kk * cp
    bytes_accessed = m_pad * kk * 2 + kk * cp * 2 + m_pad * cp * 2 + 2 * gm * cp * 4
    return pl.pallas_call(
        _conv_bn_mm_kernel,
        out_shape=(jax.ShapeDtypeStruct((m_pad, cp), jnp.bfloat16),
                   jax.ShapeDtypeStruct((gm, cp), jnp.float32),
                   jax.ShapeDtypeStruct((gm, cp), jnp.float32)),
        grid=(gm,),
        in_specs=[pl.BlockSpec((tm, kk), lambda i: (i, 0)),
                  pl.BlockSpec((kk, cp), lambda i: (0, 0))],   # weight resident
        out_specs=(pl.BlockSpec((tm, cp), lambda i: (i, 0)),
                   pl.BlockSpec((1, cp), lambda i: (i, 0)),
                   pl.BlockSpec((1, cp), lambda i: (i, 0))),
        compiler_params=pltpu.CompilerParams(
            dimension_semantics=("parallel",),
            vmem_limit_bytes=VMEM_LIMIT),
        cost_estimate=pl.CostEstimate(flops=flops, transcendentals=0,
                                      bytes_accessed=bytes_accessed),
    )(patches, w)


# ---------------------------------------------------------------------------
# Pallas kernel 1b: conv-as-matmul for non-BN layers (fused bias + optional
# LeakyReLU).  Full-K blocks, VMEM-resident weight.
# ---------------------------------------------------------------------------
def _conv_bias_mm_kernel(p_ref, w_ref, b_ref, y_ref, *, act):
    y = jnp.dot(p_ref[...], w_ref[...], preferred_element_type=jnp.float32)
    y = y + b_ref[...]
    if act:
        y = jnp.where(y > 0, y, LRELU_SLOPE * y)
    y_ref[...] = y.astype(y_ref.dtype)


def conv_matmul_bias(patches, w, bias, *, act, tm, out_dtype):
    m_pad, kk = patches.shape
    cp = w.shape[1]
    gm = m_pad // tm
    kern = functools.partial(_conv_bias_mm_kernel, act=act)
    flops = 2 * m_pad * kk * cp
    out_bytes = m_pad * cp * jnp.dtype(out_dtype).itemsize
    bytes_accessed = m_pad * kk * 2 + kk * cp * 2 + out_bytes
    return pl.pallas_call(
        kern,
        out_shape=jax.ShapeDtypeStruct((m_pad, cp), out_dtype),
        grid=(gm,),
        in_specs=[pl.BlockSpec((tm, kk), lambda i: (i, 0)),
                  pl.BlockSpec((kk, cp), lambda i: (0, 0)),    # weight resident
                  pl.BlockSpec((1, cp), lambda i: (0, 0))],
        out_specs=pl.BlockSpec((tm, cp), lambda i: (i, 0)),
        compiler_params=pltpu.CompilerParams(
            dimension_semantics=("parallel",),
            vmem_limit_bytes=VMEM_LIMIT),
        cost_estimate=pl.CostEstimate(flops=flops, transcendentals=0,
                                      bytes_accessed=bytes_accessed),
    )(patches, w, bias)


# ---------------------------------------------------------------------------
# Pallas kernel 2: fused BatchNorm apply (precomputed scale/shift) + LeakyReLU.
# Pure streaming: bf16 in, bf16 out, large row tiles.
# ---------------------------------------------------------------------------
def _bn_act_kernel(y_ref, scale_ref, shift_ref, o_ref, *, act):
    y = y_ref[...].astype(jnp.float32) * scale_ref[...] + shift_ref[...]
    if act:
        y = jnp.where(y > 0, y, LRELU_SLOPE * y)
    o_ref[...] = y.astype(o_ref.dtype)


def bn_act(y, scale, shift, *, act, tm):
    m_pad, cp = y.shape
    kern = functools.partial(_bn_act_kernel, act=act)
    vec = pl.BlockSpec((1, cp), lambda i: (0, 0))
    return pl.pallas_call(
        kern,
        out_shape=jax.ShapeDtypeStruct((m_pad, cp), jnp.bfloat16),
        grid=(m_pad // tm,),
        in_specs=[pl.BlockSpec((tm, cp), lambda i: (i, 0)), vec, vec],
        out_specs=pl.BlockSpec((tm, cp), lambda i: (i, 0)),
        compiler_params=pltpu.CompilerParams(
            dimension_semantics=("parallel",),
            vmem_limit_bytes=VMEM_LIMIT),
    )(y, scale, shift)


# ---------------------------------------------------------------------------
# Pallas kernel 3: AvgPool2d(3, stride=2, pad=1, count_include_pad=False), NCHW
# with (n, c) collapsed to one grid axis.  Inputs are phase-split views
# (rA: tap rows 2i,2i+1; rB: tap row 2i+2), so the 3x3 tap sum is 5 in-kernel
# adds with only unit-stride slices; divide is a multiply by a precomputed
# reciprocal valid-count plane.
# ---------------------------------------------------------------------------
def _avgpool_kernel(a_ref, b_ref, inv_ref, o_ref):
    a = a_ref[...]                      # (1,2,2,TH,Wo+1): (nc, hph, wph, h, w)
    b = b_ref[...]                      # (1,2,TH,Wo+1):   (nc, wph, h, w)
    inv = inv_ref[...]                  # (TH,Wo)
    wo = o_ref.shape[-1]
    row = a[0, 0] + a[0, 1] + b[0]                                # (2,TH,Wo+1)
    s = row[0, :, :wo] + row[1, :, :wo] + row[0, :, 1:wo + 1]     # (TH,Wo)
    o_ref[...] = (s * inv)[None].astype(o_ref.dtype)


def avg_pool_3x3_s2_nchw(x):
    n, c, h, w = x.shape
    nc = n * c
    ho = (h - 1) // 2 + 1
    wo = (w - 1) // 2 + 1
    hp = 2 * (ho + 1)
    wp = 2 * (wo + 1)
    xr = x.reshape(nc, h, w)
    xp = jnp.pad(xr, ((0, 0), (1, hp - h - 1), (1, wp - w - 1)))
    r = xp.reshape(nc, ho + 1, 2, wo + 1, 2)
    ra = jnp.transpose(r[:, :ho], (0, 2, 4, 1, 3))        # (nc,2,2,ho,wo+1)
    rb = jnp.transpose(r[:, 1:ho + 1, 0], (0, 3, 1, 2))   # (nc,2,ho,wo+1)

    # analytic valid-tap counts (count_include_pad=False)
    oi = jnp.arange(ho)
    oj = jnp.arange(wo)
    cr = sum(((2 * oi + d - 1 >= 0) & (2 * oi + d - 1 < h)).astype(jnp.float32)
             for d in range(3))
    cc = sum(((2 * oj + d - 1 >= 0) & (2 * oj + d - 1 < w)).astype(jnp.float32)
             for d in range(3))
    inv_cnt = 1.0 / (cr[:, None] * cc[None, :])            # (ho, wo)

    th = _h_tile(ho)
    grid = (nc, ho // th)
    out = pl.pallas_call(
        _avgpool_kernel,
        out_shape=jax.ShapeDtypeStruct((nc, ho, wo), jnp.float32),
        grid=grid,
        in_specs=[
            pl.BlockSpec((1, 2, 2, th, wo + 1), lambda i, t: (i, 0, 0, t, 0)),
            pl.BlockSpec((1, 2, th, wo + 1), lambda i, t: (i, 0, t, 0)),
            pl.BlockSpec((th, wo), lambda i, t: (t, 0)),
        ],
        out_specs=pl.BlockSpec((1, th, wo), lambda i, t: (i, t, 0)),
        compiler_params=pltpu.CompilerParams(
            dimension_semantics=("parallel", "parallel"),
            vmem_limit_bytes=VMEM_LIMIT),
    )(ra, rb, inv_cnt)
    return out.reshape(n, c, ho, wo)


# ---------------------------------------------------------------------------
# Parameter construction (deterministic, synthetic).
# ---------------------------------------------------------------------------
def init_nlayer_params(key, input_nc, ndf, n_layers):
    specs = []                                   # (cin, cout, stride, bn, act)
    nf = ndf
    specs.append((input_nc, ndf, 2, False, True))
    for _ in range(1, n_layers):
        nf_prev, nf = nf, min(nf * 2, 512)
        specs.append((nf_prev, nf, 2, True, True))
    nf_prev, nf = nf, min(nf * 2, 512)
    specs.append((nf_prev, nf, 1, True, True))
    specs.append((nf, 1, 1, False, False))       # final conv: no norm / no act

    params = []
    for (cin, cout, stride, do_bn, do_act) in specs:
        key, kw_, kb_ = jax.random.split(key, 3)
        cpad = _round_up(cout, LANE)
        w = jax.random.normal(kw_, (KW, KW, cin, cout), jnp.float32) * 0.05  # HWIO
        b = jax.random.normal(kb_, (cout,), jnp.float32) * 0.05
        w_flat = jnp.pad(w.reshape(KW * KW * cin, cout),
                         ((0, 0), (0, cpad - cout))).astype(jnp.bfloat16)
        bias = jnp.pad(b, (0, cpad - cout)).reshape(1, cpad)
        gamma = jnp.pad(jnp.ones((cout,), jnp.float32),
                        (0, cpad - cout)).reshape(1, cpad)      # padded ch -> 0
        beta = jnp.zeros((1, cpad), jnp.float32)
        params.append(dict(w_flat=w_flat, bias=bias, gamma=gamma, beta=beta,
                           cout=cout, stride=stride, do_bn=do_bn, do_act=do_act))
    return params


# ---------------------------------------------------------------------------
# Forward
# ---------------------------------------------------------------------------
def conv_layer(x_nhwc, p):
    patches, (n, ho, wo) = _extract_patches(x_nhwc.astype(jnp.bfloat16),
                                            KW, p['stride'], PADW)
    m = patches.shape[0]
    tm, m_pad = _m_tiling(m, TM_TARGET)
    if m_pad != m:
        # zero rows keep BN partial stats exact (no bias added on BN layers)
        patches = jnp.pad(patches, ((0, m_pad - m), (0, 0)))

    if p['do_bn']:
        y, psum, psumsq = conv_matmul_bn(patches, p['w_flat'], tm=tm)
        # tiny glue reduce over (grid_m, Cp) partials; training-mode batch stats
        s = jnp.sum(psum, axis=0, keepdims=True)
        q = jnp.sum(psumsq, axis=0, keepdims=True)
        inv_m = 1.0 / float(m)
        mean = s * inv_m
        var = jnp.maximum(q * inv_m - mean * mean, 0.0)
        rstd = jax.lax.rsqrt(var + BN_EPS)
        scale = p['gamma'] * rstd
        shift = p['beta'] - mean * scale
        y = bn_act(y, scale, shift, act=p['do_act'], tm=_div_tile(m_pad, 1024))
    else:
        out_dtype = jnp.bfloat16 if p['do_act'] else jnp.float32   # final layer f32
        y = conv_matmul_bias(patches, p['w_flat'], p['bias'], act=p['do_act'],
                             tm=tm, out_dtype=out_dtype)

    return y[:m, :p['cout']].reshape(n, ho, wo, p['cout'])


def nlayer_forward(params, x_nhwc):
    for p in params:
        x_nhwc = conv_layer(x_nhwc, p)
    return x_nhwc


def multiscale_forward(all_params, x_nchw, num_D):
    result = []
    xd = x_nchw
    for i in range(num_D):
        params = all_params[num_D - 1 - i]         # same ordering as PyTorch
        out = nlayer_forward(params, jnp.transpose(xd, (0, 2, 3, 1)))
        result.append([jnp.transpose(out, (0, 3, 1, 2))])  # back to NCHW
        if i != num_D - 1:
            xd = avg_pool_3x3_s2_nchw(xd)
    return result


# TODO(synk): getIntermFeat / use_sigmoid / use_dropout branches (defaults False)
# and BatchNorm running-stat updates are not modeled; only the default forward.

if __name__ == "__main__":
    key = jax.random.PRNGKey(0)
    kx, kp = jax.random.split(key)

    input_nc, ndf, n_layers, num_D = 3, 8, 3, 3
    N, H, W = 2, 16, 16

    x = jax.random.normal(kx, (N, input_nc, H, W), jnp.float32)   # NCHW
    pkeys = jax.random.split(kp, num_D)
    all_params = [init_nlayer_params(pkeys[i], input_nc, ndf, n_layers)
                  for i in range(num_D)]

    fwd = jax.jit(lambda xx: multiscale_forward(all_params, xx, num_D))
    result = fwd(x)
    jax.block_until_ready(jax.tree_util.tree_leaves(result))
    print("KERNEL_OK")
</pallas_src>

<mosaic_0001>
module attributes {stable_mosaic.version = 11 : i64} {
  func.func @_conv_bias_mm_kernel(%arg0: i32, %arg1: memref<168x48xbf16, #tpu.memory_space<vmem>>, %arg2: memref<48x128xbf16, #tpu.memory_space<vmem>>, %arg3: memref<1x128xf32, #tpu.memory_space<vmem>>, %arg4: memref<168x128xbf16, #tpu.memory_space<vmem>>) attributes {dimension_semantics = [#tpu.dimension_semantics<parallel>], iteration_bounds = array<i64: 1>, scalar_prefetch = 0 : i64, scratch_operands = 0 : i64, tpu.core_type = #tpu.core_type<tc>, window_params = [{transform_indices = @transform_0, window_bounds = array<i64: 168, 48>}, {pipeline_mode = #tpu.pipeline_mode<synchronous>, transform_indices = @transform_1, window_bounds = array<i64: 48, 128>}, {pipeline_mode = #tpu.pipeline_mode<synchronous>, transform_indices = @transform_2, window_bounds = array<i64: 1, 128>}, {transform_indices = @transform_3, window_bounds = array<i64: 168, 128>}]} {
    %c0 = arith.constant 0 : index
    %c0_0 = arith.constant 0 : index
    %0 = vector.load %arg1[%c0, %c0_0] : memref<168x48xbf16, #tpu.memory_space<vmem>>, vector<168x48xbf16>
    %c0_1 = arith.constant 0 : index
    %c0_2 = arith.constant 0 : index
    %1 = vector.load %arg2[%c0_1, %c0_2] : memref<48x128xbf16, #tpu.memory_space<vmem>>, vector<48x128xbf16>
    %cst = arith.constant dense<0.000000e+00> : vector<168x128xf32>
    %2 = tpu.matmul %0, %1, %cst {dimension_numbers = #tpu.dot_dimension_numbers<[1], [0], [0], [1], [0, 0, 1, 1], [], []>} : vector<168x48xbf16>, vector<48x128xbf16>, vector<168x128xf32> -> vector<168x128xf32>
    %c0_3 = arith.constant 0 : index
    %c0_4 = arith.constant 0 : index
    %3 = vector.load %arg3[%c0_3, %c0_4] : memref<1x128xf32, #tpu.memory_space<vmem>>, vector<1x128xf32>
    %4 = vector.broadcast %3 : vector<1x128xf32> to vector<168x128xf32>
    %5 = arith.addf %2, %4 : vector<168x128xf32>
    %cst_5 = arith.constant 0.000000e+00 : f32
    %6 = vector.broadcast %cst_5 : f32 to vector<168x128xf32>
    %7 = arith.cmpf ogt, %5, %6 : vector<168x128xf32>
    %cst_6 = arith.constant 2.000000e-01 : f32
    %8 = vector.broadcast %cst_6 : f32 to vector<168x128xf32>
    %9 = arith.mulf %8, %5 : vector<168x128xf32>
    %10 = arith.select %7, %5, %9 : vector<168x128xi1>, vector<168x128xf32>
    %11 = arith.truncf %10 : vector<168x128xf32> to vector<168x128xbf16>
    %c0_7 = arith.constant 0 : index
    %c0_8 = arith.constant 0 : index
    %12 = vector.load %arg4[%c0_7, %c0_8] : memref<168x128xbf16, #tpu.memory_space<vmem>>, vector<168x128xbf16>
    tpu.vector_store %arg4[%c0_7, %c0_8], %11 {strides = array<i32>} : memref<168x128xbf16, #tpu.memory_space<vmem>>, vector<168x128xbf16>,
    return
  }
  func.func @transform_0(%arg0: i32) -> (i32, i32) {
    %c0_i32 = arith.constant 0 : i32
    %c0_i32_0 = arith.constant 0 : i32
    return %arg0, %c0_i32 : i32, i32
  }
  func.func @transform_1(%arg0: i32) -> (i32, i32) {
    %c0_i32 = arith.constant 0 : i32
    %c0_i32_0 = arith.constant 0 : i32
    %c0_i32_1 = arith.constant 0 : i32
    return %c0_i32, %c0_i32_0 : i32, i32
  }
  func.func @transform_2(%arg0: i32) -> (i32, i32) {
    %c0_i32 = arith.constant 0 : i32
    %c0_i32_0 = arith.constant 0 : i32
    %c0_i32_1 = arith.constant 0 : i32
    return %c0_i32, %c0_i32_0 : i32, i32
  }
  func.func @transform_3(%arg0: i32) -> (i32, i32) {
    %c0_i32 = arith.constant 0 : i32
    %c0_i32_0 = arith.constant 0 : i32
    return %arg0, %c0_i32 : i32, i32
  }
}

module attributes {stable_mosaic.version = 11 : i64} {
  func.func @_conv_bn_mm_kernel(%arg0: i32, %arg1: memref<56x128xbf16, #tpu.memory_space<vmem>>, %arg2: memref<128x128xbf16, #tpu.memory_space<vmem>>, %arg3: memref<56x128xbf16, #tpu.memory_space<vmem>>, %arg4: memref<1x128xf32, #tpu.memory_space<vmem>>, %arg5: memref<1x128xf32, #tpu.memory_space<vmem>>) attributes {dimension_semantics = [#tpu.dimension_semantics<parallel>], iteration_bounds = array<i64: 1>, scalar_prefetch = 0 : i64, scratch_operands = 0 : i64, tpu.core_type = #tpu.core_type<tc>, window_params = [{transform_indices = @transform_0, window_bounds = array<i64: 56, 128>}, {pipeline_mode = #tpu.pipeline_mode<synchronous>, transform_indices = @transform_1, window_bounds = array<i64: 128, 128>}, {transform_indices = @transform_2, window_bounds = array<i64: 56, 128>}, {transform_indices = @transform_3, window_bounds = array<i64: 1, 128>}, {transform_indices = @transform_4, window_bounds = array<i64: 1, 128>}]} {
    %c0 = arith.constant 0 : index
    %c0_0 = arith.constant 0 : index
    %0 = vector.load %arg1[%c0, %c0_0] : memref<56x128xbf16, #tpu.memory_space<vmem>>, vector<56x128xbf16>
    %c0_1 = arith.constant 0 : index
    %c0_2 = arith.constant 0 : index
    %1 = vector.load %arg2[%c0_1, %c0_2] : memref<128x128xbf16, #tpu.memory_space<vmem>>, vector<128x128xbf16>
    %cst = arith.constant dense<0.000000e+00> : vector<56x128xf32>
    %2 = tpu.matmul %0, %1, %cst {dimension_numbers = #tpu.dot_dimension_numbers<[1], [0], [0], [1], [0, 0, 1, 1], [], []>} : vector<56x128xbf16>, vector<128x128xbf16>, vector<56x128xf32> -> vector<56x128xf32>
    %cst_3 = arith.constant dense<0.000000e+00> : vector<128xf32>
    %3 = vector.multi_reduction <add>, %2, %cst_3 [0] : vector<56x128xf32> to vector<128xf32>
    %4 = vector.shape_cast %3 : vector<128xf32> to vector<1x128xf32>
    %c0_4 = arith.constant 0 : index
    %c0_5 = arith.constant 0 : index
    %5 = vector.load %arg4[%c0_4, %c0_5] : memref<1x128xf32, #tpu.memory_space<vmem>>, vector<1x128xf32>
    tpu.vector_store %arg4[%c0_4, %c0_5], %4 {strides = array<i32>} : memref<1x128xf32, #tpu.memory_space<vmem>>, vector<1x128xf32>,
    %6 = arith.mulf %2, %2 : vector<56x128xf32>
    %cst_6 = arith.constant dense<0.000000e+00> : vector<128xf32>
    %7 = vector.multi_reduction <add>, %6, %cst_6 [0] : vector<56x128xf32> to vector<128xf32>
    %8 = vector.shape_cast %7 : vector<128xf32> to vector<1x128xf32>
    %c0_7 = arith.constant 0 : index
    %c0_8 = arith.constant 0 : index
    %9 = vector.load %arg5[%c0_7, %c0_8] : memref<1x128xf32, #tpu.memory_space<vmem>>, vector<1x128xf32>
    tpu.vector_store %arg5[%c0_7, %c0_8], %8 {strides = array<i32>} : memref<1x128xf32, #tpu.memory_space<vmem>>, vector<1x128xf32>,
    %10 = arith.truncf %2 : vector<56x128xf32> to vector<56x128xbf16>
    %c0_9 = arith.constant 0 : index
    %c0_10 = arith.constant 0 : index
    %11 = vector.load %arg3[%c0_9, %c0_10] : memref<56x128xbf16, #tpu.memory_space<vmem>>, vector<56x128xbf16>
    tpu.vector_store %arg3[%c0_9, %c0_10], %10 {strides = array<i32>} : memref<56x128xbf16, #tpu.memory_space<vmem>>, vector<56x128xbf16>,
    return
  }
  func.func @transform_0(%arg0: i32) -> (i32, i32) {
    %c0_i32 = arith.constant 0 : i32
    %c0_i32_0 = arith.constant 0 : i32
    return %arg0, %c0_i32 : i32, i32
  }
  func.func @transform_1(%arg0: i32) -> (i32, i32) {
    %c0_i32 = arith.constant 0 : i32
    %c0_i32_0 = arith.constant 0 : i32
    %c0_i32_1 = arith.constant 0 : i32
    return %c0_i32, %c0_i32_0 : i32, i32
  }
  func.func @transform_2(%arg0: i32) -> (i32, i32) {
    %c0_i32 = arith.constant 0 : i32
    %c0_i32_0 = arith.constant 0 : i32
    return %arg0, %c0_i32 : i32, i32
  }
  func.func @transform_3(%arg0: i32) -> (i32, i32) {
    %c0_i32 = arith.constant 0 : i32
    %c0_i32_0 = arith.constant 0 : i32
    return %arg0, %c0_i32 : i32, i32
  }
  func.func @transform_4(%arg0: i32) -> (i32, i32) {
    %c0_i32 = arith.constant 0 : i32
    %c0_i32_0 = arith.constant 0 : i32
    return %arg0, %c0_i32 : i32, i32
  }
}

module attributes {stable_mosaic.version = 11 : i64} {
  func.func @_avgpool_kernel(%arg0: i32, %arg1: i32, %arg2: memref<1x2x2x8x9xf32, #tpu.memory_space<vmem>>, %arg3: memref<1x2x8x9xf32, #tpu.memory_space<vmem>>, %arg4: memref<8x8xf32, #tpu.memory_space<vmem>>, %arg5: memref<1x8x8xf32, #tpu.memory_space<vmem>>) attributes {dimension_semantics = [#tpu.dimension_semantics<parallel>, #tpu.dimension_semantics<parallel>], iteration_bounds = array<i64: 6, 1>, scalar_prefetch = 0 : i64, scratch_operands = 0 : i64, tpu.core_type = #tpu.core_type<tc>, window_params = [{transform_indices = @transform_0, window_bounds = array<i64: 1, 2, 2, 8, 9>}, {transform_indices = @transform_1, window_bounds = array<i64: 1, 2, 8, 9>}, {transform_indices = @transform_2, window_bounds = array<i64: 8, 8>}, {transform_indices = @transform_3, window_bounds = array<i64: 1, 8, 8>}]} {
    %c0 = arith.constant 0 : index
    %c0_0 = arith.constant 0 : index
    %c0_1 = arith.constant 0 : index
    %c0_2 = arith.constant 0 : index
    %c0_3 = arith.constant 0 : index
    %0 = vector.load %arg2[%c0, %c0_0, %c0_1, %c0_2, %c0_3] : memref<1x2x2x8x9xf32, #tpu.memory_space<vmem>>, vector<1x2x2x8x9xf32>
    %c0_4 = arith.constant 0 : index
    %c0_5 = arith.constant 0 : index
    %c0_6 = arith.constant 0 : index
    %c0_7 = arith.constant 0 : index
    %1 = vector.load %arg3[%c0_4, %c0_5, %c0_6, %c0_7] : memref<1x2x8x9xf32, #tpu.memory_space<vmem>>, vector<1x2x8x9xf32>
    %c0_8 = arith.constant 0 : index
    %c0_9 = arith.constant 0 : index
    %2 = vector.load %arg4[%c0_8, %c0_9] : memref<8x8xf32, #tpu.memory_space<vmem>>, vector<8x8xf32>
    %3 = vector.extract_strided_slice %0 {offsets = [0, 0, 0, 0, 0], sizes = [1, 1, 2, 8, 9], strides = [1, 1, 1, 1, 1]} : vector<1x2x2x8x9xf32> to vector<1x1x2x8x9xf32>
    %4 = vector.shape_cast %3 : vector<1x1x2x8x9xf32> to vector<2x8x9xf32>
    %5 = vector.extract_strided_slice %0 {offsets = [0, 1, 0, 0, 0], sizes = [1, 1, 2, 8, 9], strides = [1, 1, 1, 1, 1]} : vector<1x2x2x8x9xf32> to vector<1x1x2x8x9xf32>
    %6 = vector.shape_cast %5 : vector<1x1x2x8x9xf32> to vector<2x8x9xf32>
    %7 = arith.addf %4, %6 : vector<2x8x9xf32>
    %8 = vector.shape_cast %1 : vector<1x2x8x9xf32> to vector<2x8x9xf32>
    %9 = arith.addf %7, %8 : vector<2x8x9xf32>
    %10 = vector.extract_strided_slice %9 {offsets = [0, 0, 0], sizes = [1, 8, 8], strides = [1, 1, 1]} : vector<2x8x9xf32> to vector<1x8x8xf32>
    %11 = vector.shape_cast %10 : vector<1x8x8xf32> to vector<8x8xf32>
    %12 = vector.extract_strided_slice %9 {offsets = [1, 0, 0], sizes = [1, 8, 8], strides = [1, 1, 1]} : vector<2x8x9xf32> to vector<1x8x8xf32>
    %13 = vector.shape_cast %12 : vector<1x8x8xf32> to vector<8x8xf32>
    %14 = arith.addf %11, %13 : vector<8x8xf32>
    %15 = vector.extract_strided_slice %9 {offsets = [0, 0, 1], sizes = [1, 8, 8], strides = [1, 1, 1]} : vector<2x8x9xf32> to vector<1x8x8xf32>
    %16 = vector.shape_cast %15 : vector<1x8x8xf32> to vector<8x8xf32>
    %17 = arith.addf %14, %16 : vector<8x8xf32>
    %18 = arith.mulf %17, %2 : vector<8x8xf32>
    %19 = vector.shape_cast %18 : vector<8x8xf32> to vector<1x8x8xf32>
    %c0_10 = arith.constant 0 : index
    %c0_11 = arith.constant 0 : index
    %c0_12 = arith.constant 0 : index
    %20 = vector.load %arg5[%c0_10, %c0_11, %c0_12] : memref<1x8x8xf32, #tpu.memory_space<vmem>>, vector<1x8x8xf32>
    tpu.vector_store %arg5[%c0_10, %c0_11, %c0_12], %19 {strides = array<i32>} : memref<1x8x8xf32, #tpu.memory_space<vmem>>, vector<1x8x8xf32>,
    return
  }
  func.func @transform_0(%arg0: i32, %arg1: i32) -> (i32, i32, i32, i32, i32) {
    %c0_i32 = arith.constant 0 : i32
    %c0_i32_0 = arith.constant 0 : i32
    %c0_i32_1 = arith.constant 0 : i32
    %c0_i32_2 = arith.constant 0 : i32
    return %arg0, %c0_i32, %c0_i32_0, %arg1, %c0_i32_1 : i32, i32, i32, i32, i32
  }
  func.func @transform_1(%arg0: i32, %arg1: i32) -> (i32, i32, i32, i32) {
    %c0_i32 = arith.constant 0 : i32
    %c0_i32_0 = arith.constant 0 : i32
    %c0_i32_1 = arith.constant 0 : i32
    return %arg0, %c0_i32, %arg1, %c0_i32_0 : i32, i32, i32, i32
  }
  func.func @transform_2(%arg0: i32, %arg1: i32) -> (i32, i32) {
    %c0_i32 = arith.constant 0 : i32
    %c0_i32_0 = arith.constant 0 : i32
    return %arg1, %c0_i32 : i32, i32
  }
  func.func @transform_3(%arg0: i32, %arg1: i32) -> (i32, i32, i32) {
    %c0_i32 = arith.constant 0 : i32
    %c0_i32_0 = arith.constant 0 : i32
    return %arg0, %arg1, %c0_i32 : i32, i32, i32
  }
}

module attributes {stable_mosaic.version = 11 : i64} {
  func.func @_avgpool_kernel(%arg0: i32, %arg1: i32, %arg2: memref<1x2x2x4x5xf32, #tpu.memory_space<vmem>>, %arg3: memref<1x2x4x5xf32, #tpu.memory_space<vmem>>, %arg4: memref<4x4xf32, #tpu.memory_space<vmem>>, %arg5: memref<1x4x4xf32, #tpu.memory_space<vmem>>) attributes {dimension_semantics = [#tpu.dimension_semantics<parallel>, #tpu.dimension_semantics<parallel>], iteration_bounds = array<i64: 6, 1>, scalar_prefetch = 0 : i64, scratch_operands = 0 : i64, tpu.core_type = #tpu.core_type<tc>, window_params = [{transform_indices = @transform_0, window_bounds = array<i64: 1, 2, 2, 4, 5>}, {transform_indices = @transform_1, window_bounds = array<i64: 1, 2, 4, 5>}, {transform_indices = @transform_2, window_bounds = array<i64: 4, 4>}, {transform_indices = @transform_3, window_bounds = array<i64: 1, 4, 4>}]} {
    %c0 = arith.constant 0 : index
    %c0_0 = arith.constant 0 : index
    %c0_1 = arith.constant 0 : index
    %c0_2 = arith.constant 0 : index
    %c0_3 = arith.constant 0 : index
    %0 = vector.load %arg2[%c0, %c0_0, %c0_1, %c0_2, %c0_3] : memref<1x2x2x4x5xf32, #tpu.memory_space<vmem>>, vector<1x2x2x4x5xf32>
    %c0_4 = arith.constant 0 : index
    %c0_5 = arith.constant 0 : index
    %c0_6 = arith.constant 0 : index
    %c0_7 = arith.constant 0 : index
    %1 = vector.load %arg3[%c0_4, %c0_5, %c0_6, %c0_7] : memref<1x2x4x5xf32, #tpu.memory_space<vmem>>, vector<1x2x4x5xf32>
    %c0_8 = arith.constant 0 : index
    %c0_9 = arith.constant 0 : index
    %2 = vector.load %arg4[%c0_8, %c0_9] : memref<4x4xf32, #tpu.memory_space<vmem>>, vector<4x4xf32>
    %3 = vector.extract_strided_slice %0 {offsets = [0, 0, 0, 0, 0], sizes = [1, 1, 2, 4, 5], strides = [1, 1, 1, 1, 1]} : vector<1x2x2x4x5xf32> to vector<1x1x2x4x5xf32>
    %4 = vector.shape_cast %3 : vector<1x1x2x4x5xf32> to vector<2x4x5xf32>
    %5 = vector.extract_strided_slice %0 {offsets = [0, 1, 0, 0, 0], sizes = [1, 1, 2, 4, 5], strides = [1, 1, 1, 1, 1]} : vector<1x2x2x4x5xf32> to vector<1x1x2x4x5xf32>
    %6 = vector.shape_cast %5 : vector<1x1x2x4x5xf32> to vector<2x4x5xf32>
    %7 = arith.addf %4, %6 : vector<2x4x5xf32>
    %8 = vector.shape_cast %1 : vector<1x2x4x5xf32> to vector<2x4x5xf32>
    %9 = arith.addf %7, %8 : vector<2x4x5xf32>
    %10 = vector.extract_strided_slice %9 {offsets = [0, 0, 0], sizes = [1, 4, 4], strides = [1, 1, 1]} : vector<2x4x5xf32> to vector<1x4x4xf32>
    %11 = vector.shape_cast %10 : vector<1x4x4xf32> to vector<4x4xf32>
    %12 = vector.extract_strided_slice %9 {offsets = [1, 0, 0], sizes = [1, 4, 4], strides = [1, 1, 1]} : vector<2x4x5xf32> to vector<1x4x4xf32>
    %13 = vector.shape_cast %12 : vector<1x4x4xf32> to vector<4x4xf32>
    %14 = arith.addf %11, %13 : vector<4x4xf32>
    %15 = vector.extract_strided_slice %9 {offsets = [0, 0, 1], sizes = [1, 4, 4], strides = [1, 1, 1]} : vector<2x4x5xf32> to vector<1x4x4xf32>
    %16 = vector.shape_cast %15 : vector<1x4x4xf32> to vector<4x4xf32>
    %17 = arith.addf %14, %16 : vector<4x4xf32>
    %18 = arith.mulf %17, %2 : vector<4x4xf32>
    %19 = vector.shape_cast %18 : vector<4x4xf32> to vector<1x4x4xf32>
    %c0_10 = arith.constant 0 : index
    %c0_11 = arith.constant 0 : index
    %c0_12 = arith.constant 0 : index
    %20 = vector.load %arg5[%c0_10, %c0_11, %c0_12] : memref<1x4x4xf32, #tpu.memory_space<vmem>>, vector<1x4x4xf32>
    tpu.vector_store %arg5[%c0_10, %c0_11, %c0_12], %19 {strides = array<i32>} : memref<1x4x4xf32, #tpu.memory_space<vmem>>, vector<1x4x4xf32>,
    return
  }
  func.func @transform_0(%arg0: i32, %arg1: i32) -> (i32, i32, i32, i32, i32) {
    %c0_i32 = arith.constant 0 : i32
    %c0_i32_0 = arith.constant 0 : i32
    %c0_i32_1 = arith.constant 0 : i32
    %c0_i32_2 = arith.constant 0 : i32
    return %arg0, %c0_i32, %c0_i32_0, %arg1, %c0_i32_1 : i32, i32, i32, i32, i32
  }
  func.func @transform_1(%arg0: i32, %arg1: i32) -> (i32, i32, i32, i32) {
    %c0_i32 = arith.constant 0 : i32
    %c0_i32_0 = arith.constant 0 : i32
    %c0_i32_1 = arith.constant 0 : i32
    return %arg0, %c0_i32, %arg1, %c0_i32_0 : i32, i32, i32, i32
  }
  func.func @transform_2(%arg0: i32, %arg1: i32) -> (i32, i32) {
    %c0_i32 = arith.constant 0 : i32
    %c0_i32_0 = arith.constant 0 : i32
    return %arg1, %c0_i32 : i32, i32
  }
  func.func @transform_3(%arg0: i32, %arg1: i32) -> (i32, i32, i32) {
    %c0_i32 = arith.constant 0 : i32
    %c0_i32_0 = arith.constant 0 : i32
    return %arg0, %arg1, %c0_i32 : i32, i32, i32
  }
}

module attributes {stable_mosaic.version = 11 : i64} {
  func.func @_conv_bias_mm_kernel(%arg0: i32, %arg1: memref<24x48xbf16, #tpu.memory_space<vmem>>, %arg2: memref<48x128xbf16, #tpu.memory_space<vmem>>, %arg3: memref<1x128xf32, #tpu.memory_space<vmem>>, %arg4: memref<24x128xbf16, #tpu.memory_space<vmem>>) attributes {dimension_semantics = [#tpu.dimension_semantics<parallel>], iteration_bounds = array<i64: 1>, scalar_prefetch = 0 : i64, scratch_operands = 0 : i64, tpu.core_type = #tpu.core_type<tc>, window_params = [{transform_indices = @transform_0, window_bounds = array<i64: 24, 48>}, {pipeline_mode = #tpu.pipeline_mode<synchronous>, transform_indices = @transform_1, window_bounds = array<i64: 48, 128>}, {pipeline_mode = #tpu.pipeline_mode<synchronous>, transform_indices = @transform_2, window_bounds = array<i64: 1, 128>}, {transform_indices = @transform_3, window_bounds = array<i64: 24, 128>}]} {
    %c0 = arith.constant 0 : index
    %c0_0 = arith.constant 0 : index
    %0 = vector.load %arg1[%c0, %c0_0] : memref<24x48xbf16, #tpu.memory_space<vmem>>, vector<24x48xbf16>
    %c0_1 = arith.constant 0 : index
    %c0_2 = arith.constant 0 : index
    %1 = vector.load %arg2[%c0_1, %c0_2] : memref<48x128xbf16, #tpu.memory_space<vmem>>, vector<48x128xbf16>
    %cst = arith.constant dense<0.000000e+00> : vector<24x128xf32>
    %2 = tpu.matmul %0, %1, %cst {dimension_numbers = #tpu.dot_dimension_numbers<[1], [0], [0], [1], [0, 0, 1, 1], [], []>} : vector<24x48xbf16>, vector<48x128xbf16>, vector<24x128xf32> -> vector<24x128xf32>
    %c0_3 = arith.constant 0 : index
    %c0_4 = arith.constant 0 : index
    %3 = vector.load %arg3[%c0_3, %c0_4] : memref<1x128xf32, #tpu.memory_space<vmem>>, vector<1x128xf32>
    %4 = vector.broadcast %3 : vector<1x128xf32> to vector<24x128xf32>
    %5 = arith.addf %2, %4 : vector<24x128xf32>
    %cst_5 = arith.constant 0.000000e+00 : f32
    %6 = vector.broadcast %cst_5 : f32 to vector<24x128xf32>
    %7 = arith.cmpf ogt, %5, %6 : vector<24x128xf32>
    %cst_6 = arith.constant 2.000000e-01 : f32
    %8 = vector.broadcast %cst_6 : f32 to vector<24x128xf32>
    %9 = arith.mulf %8, %5 : vector<24x128xf32>
    %10 = arith.select %7, %5, %9 : vector<24x128xi1>, vector<24x128xf32>
    %11 = arith.truncf %10 : vector<24x128xf32> to vector<24x128xbf16>
    %c0_7 = arith.constant 0 : index
    %c0_8 = arith.constant 0 : index
    %12 = vector.load %arg4[%c0_7, %c0_8] : memref<24x128xbf16, #tpu.memory_space<vmem>>, vector<24x128xbf16>
    tpu.vector_store %arg4[%c0_7, %c0_8], %11 {strides = array<i32>} : memref<24x128xbf16, #tpu.memory_space<vmem>>, vector<24x128xbf16>,
    return
  }
  func.func @transform_0(%arg0: i32) -> (i32, i32) {
    %c0_i32 = arith.constant 0 : i32
    %c0_i32_0 = arith.constant 0 : i32
    return %arg0, %c0_i32 : i32, i32
  }
  func.func @transform_1(%arg0: i32) -> (i32, i32) {
    %c0_i32 = arith.constant 0 : i32
    %c0_i32_0 = arith.constant 0 : i32
    %c0_i32_1 = arith.constant 0 : i32
    return %c0_i32, %c0_i32_0 : i32, i32
  }
  func.func @transform_2(%arg0: i32) -> (i32, i32) {
    %c0_i32 = arith.constant 0 : i32
    %c0_i32_0 = arith.constant 0 : i32
    %c0_i32_1 = arith.constant 0 : i32
    return %c0_i32, %c0_i32_0 : i32, i32
  }
  func.func @transform_3(%arg0: i32) -> (i32, i32) {
    %c0_i32 = arith.constant 0 : i32
    %c0_i32_0 = arith.constant 0 : i32
    return %arg0, %c0_i32 : i32, i32
  }
}

module attributes {stable_mosaic.version = 11 : i64} {
  func.func @_conv_bn_mm_kernel(%arg0: i32, %arg1: memref<8x128xbf16, #tpu.memory_space<vmem>>, %arg2: memref<128x128xbf16, #tpu.memory_space<vmem>>, %arg3: memref<8x128xbf16, #tpu.memory_space<vmem>>, %arg4: memref<1x128xf32, #tpu.memory_space<vmem>>, %arg5: memref<1x128xf32, #tpu.memory_space<vmem>>) attributes {dimension_semantics = [#tpu.dimension_semantics<parallel>], iteration_bounds = array<i64: 1>, scalar_prefetch = 0 : i64, scratch_operands = 0 : i64, tpu.core_type = #tpu.core_type<tc>, window_params = [{transform_indices = @transform_0, window_bounds = array<i64: 8, 128>}, {pipeline_mode = #tpu.pipeline_mode<synchronous>, transform_indices = @transform_1, window_bounds = array<i64: 128, 128>}, {transform_indices = @transform_2, window_bounds = array<i64: 8, 128>}, {transform_indices = @transform_3, window_bounds = array<i64: 1, 128>}, {transform_indices = @transform_4, window_bounds = array<i64: 1, 128>}]} {
    %c0 = arith.constant 0 : index
    %c0_0 = arith.constant 0 : index
    %0 = vector.load %arg1[%c0, %c0_0] : memref<8x128xbf16, #tpu.memory_space<vmem>>, vector<8x128xbf16>
    %c0_1 = arith.constant 0 : index
    %c0_2 = arith.constant 0 : index
    %1 = vector.load %arg2[%c0_1, %c0_2] : memref<128x128xbf16, #tpu.memory_space<vmem>>, vector<128x128xbf16>
    %cst = arith.constant dense<0.000000e+00> : vector<8x128xf32>
    %2 = tpu.matmul %0, %1, %cst {dimension_numbers = #tpu.dot_dimension_numbers<[1], [0], [0], [1], [0, 0, 1, 1], [], []>} : vector<8x128xbf16>, vector<128x128xbf16>, vector<8x128xf32> -> vector<8x128xf32>
    %cst_3 = arith.constant dense<0.000000e+00> : vector<128xf32>
    %3 = vector.multi_reduction <add>, %2, %cst_3 [0] : vector<8x128xf32> to vector<128xf32>
    %4 = vector.shape_cast %3 : vector<128xf32> to vector<1x128xf32>
    %c0_4 = arith.constant 0 : index
    %c0_5 = arith.constant 0 : index
    %5 = vector.load %arg4[%c0_4, %c0_5] : memref<1x128xf32, #tpu.memory_space<vmem>>, vector<1x128xf32>
    tpu.vector_store %arg4[%c0_4, %c0_5], %4 {strides = array<i32>} : memref<1x128xf32, #tpu.memory_space<vmem>>, vector<1x128xf32>,
    %6 = arith.mulf %2, %2 : vector<8x128xf32>
    %cst_6 = arith.constant dense<0.000000e+00> : vector<128xf32>
    %7 = vector.multi_reduction <add>, %6, %cst_6 [0] : vector<8x128xf32> to vector<128xf32>
    %8 = vector.shape_cast %7 : vector<128xf32> to vector<1x128xf32>
    %c0_7 = arith.constant 0 : index
    %c0_8 = arith.constant 0 : index
    %9 = vector.load %arg5[%c0_7, %c0_8] : memref<1x128xf32, #tpu.memory_space<vmem>>, vector<1x128xf32>
    tpu.vector_store %arg5[%c0_7, %c0_8], %8 {strides = array<i32>} : memref<1x128xf32, #tpu.memory_space<vmem>>, vector<1x128xf32>,
    %10 = arith.truncf %2 : vector<8x128xf32> to vector<8x128xbf16>
    %c0_9 = arith.constant 0 : index
    %c0_10 = arith.constant 0 : index
    %11 = vector.load %arg3[%c0_9, %c0_10] : memref<8x128xbf16, #tpu.memory_space<vmem>>, vector<8x128xbf16>
    tpu.vector_store %arg3[%c0_9, %c0_10], %10 {strides = array<i32>} : memref<8x128xbf16, #tpu.memory_space<vmem>>, vector<8x128xbf16>,
    return
  }
  func.func @transform_0(%arg0: i32) -> (i32, i32) {
    %c0_i32 = arith.constant 0 : i32
    %c0_i32_0 = arith.constant 0 : i32
    return %arg0, %c0_i32 : i32, i32
  }
  func.func @transform_1(%arg0: i32) -> (i32, i32) {
    %c0_i32 = arith.constant 0 : i32
    %c0_i32_0 = arith.constant 0 : i32
    %c0_i32_1 = arith.constant 0 : i32
    return %c0_i32, %c0_i32_0 : i32, i32
  }
  func.func @transform_2(%arg0: i32) -> (i32, i32) {
    %c0_i32 = arith.constant 0 : i32
    %c0_i32_0 = arith.constant 0 : i32
    return %arg0, %c0_i32 : i32, i32
  }
  func.func @transform_3(%arg0: i32) -> (i32, i32) {
    %c0_i32 = arith.constant 0 : i32
    %c0_i32_0 = arith.constant 0 : i32
    return %arg0, %c0_i32 : i32, i32
  }
  func.func @transform_4(%arg0: i32) -> (i32, i32) {
    %c0_i32 = arith.constant 0 : i32
    %c0_i32_0 = arith.constant 0 : i32
    return %arg0, %c0_i32 : i32, i32
  }
}

module attributes {stable_mosaic.version = 11 : i64} {
  func.func @_conv_bias_mm_kernel(%arg0: i32, %arg1: memref<56x48xbf16, #tpu.memory_space<vmem>>, %arg2: memref<48x128xbf16, #tpu.memory_space<vmem>>, %arg3: memref<1x128xf32, #tpu.memory_space<vmem>>, %arg4: memref<56x128xbf16, #tpu.memory_space<vmem>>) attributes {dimension_semantics = [#tpu.dimension_semantics<parallel>], iteration_bounds = array<i64: 1>, scalar_prefetch = 0 : i64, scratch_operands = 0 : i64, tpu.core_type = #tpu.core_type<tc>, window_params = [{transform_indices = @transform_0, window_bounds = array<i64: 56, 48>}, {pipeline_mode = #tpu.pipeline_mode<synchronous>, transform_indices = @transform_1, window_bounds = array<i64: 48, 128>}, {pipeline_mode = #tpu.pipeline_mode<synchronous>, transform_indices = @transform_2, window_bounds = array<i64: 1, 128>}, {transform_indices = @transform_3, window_bounds = array<i64: 56, 128>}]} {
    %c0 = arith.constant 0 : index
    %c0_0 = arith.constant 0 : index
    %0 = vector.load %arg1[%c0, %c0_0] : memref<56x48xbf16, #tpu.memory_space<vmem>>, vector<56x48xbf16>
    %c0_1 = arith.constant 0 : index
    %c0_2 = arith.constant 0 : index
    %1 = vector.load %arg2[%c0_1, %c0_2] : memref<48x128xbf16, #tpu.memory_space<vmem>>, vector<48x128xbf16>
    %cst = arith.constant dense<0.000000e+00> : vector<56x128xf32>
    %2 = tpu.matmul %0, %1, %cst {dimension_numbers = #tpu.dot_dimension_numbers<[1], [0], [0], [1], [0, 0, 1, 1], [], []>} : vector<56x48xbf16>, vector<48x128xbf16>, vector<56x128xf32> -> vector<56x128xf32>
    %c0_3 = arith.constant 0 : index
    %c0_4 = arith.constant 0 : index
    %3 = vector.load %arg3[%c0_3, %c0_4] : memref<1x128xf32, #tpu.memory_space<vmem>>, vector<1x128xf32>
    %4 = vector.broadcast %3 : vector<1x128xf32> to vector<56x128xf32>
    %5 = arith.addf %2, %4 : vector<56x128xf32>
    %cst_5 = arith.constant 0.000000e+00 : f32
    %6 = vector.broadcast %cst_5 : f32 to vector<56x128xf32>
    %7 = arith.cmpf ogt, %5, %6 : vector<56x128xf32>
    %cst_6 = arith.constant 2.000000e-01 : f32
    %8 = vector.broadcast %cst_6 : f32 to vector<56x128xf32>
    %9 = arith.mulf %8, %5 : vector<56x128xf32>
    %10 = arith.select %7, %5, %9 : vector<56x128xi1>, vector<56x128xf32>
    %11 = arith.truncf %10 : vector<56x128xf32> to vector<56x128xbf16>
    %c0_7 = arith.constant 0 : index
    %c0_8 = arith.constant 0 : index
    %12 = vector.load %arg4[%c0_7, %c0_8] : memref<56x128xbf16, #tpu.memory_space<vmem>>, vector<56x128xbf16>
    tpu.vector_store %arg4[%c0_7, %c0_8], %11 {strides = array<i32>} : memref<56x128xbf16, #tpu.memory_space<vmem>>, vector<56x128xbf16>,
    return
  }
  func.func @transform_0(%arg0: i32) -> (i32, i32) {
    %c0_i32 = arith.constant 0 : i32
    %c0_i32_0 = arith.constant 0 : i32
    return %arg0, %c0_i32 : i32, i32
  }
  func.func @transform_1(%arg0: i32) -> (i32, i32) {
    %c0_i32 = arith.constant 0 : i32
    %c0_i32_0 = arith.constant 0 : i32
    %c0_i32_1 = arith.constant 0 : i32
    return %c0_i32, %c0_i32_0 : i32, i32
  }
  func.func @transform_2(%arg0: i32) -> (i32, i32) {
    %c0_i32 = arith.constant 0 : i32
    %c0_i32_0 = arith.constant 0 : i32
    %c0_i32_1 = arith.constant 0 : i32
    return %c0_i32, %c0_i32_0 : i32, i32
  }
  func.func @transform_3(%arg0: i32) -> (i32, i32) {
    %c0_i32 = arith.constant 0 : i32
    %c0_i32_0 = arith.constant 0 : i32
    return %arg0, %c0_i32 : i32, i32
  }
}

module attributes {stable_mosaic.version = 11 : i64} {
  func.func @_conv_bn_mm_kernel(%arg0: i32, %arg1: memref<24x128xbf16, #tpu.memory_space<vmem>>, %arg2: memref<128x128xbf16, #tpu.memory_space<vmem>>, %arg3: memref<24x128xbf16, #tpu.memory_space<vmem>>, %arg4: memref<1x128xf32, #tpu.memory_space<vmem>>, %arg5: memref<1x128xf32, #tpu.memory_space<vmem>>) attributes {dimension_semantics = [#tpu.dimension_semantics<parallel>], iteration_bounds = array<i64: 1>, scalar_prefetch = 0 : i64, scratch_operands = 0 : i64, tpu.core_type = #tpu.core_type<tc>, window_params = [{transform_indices = @transform_0, window_bounds = array<i64: 24, 128>}, {pipeline_mode = #tpu.pipeline_mode<synchronous>, transform_indices = @transform_1, window_bounds = array<i64: 128, 128>}, {transform_indices = @transform_2, window_bounds = array<i64: 24, 128>}, {transform_indices = @transform_3, window_bounds = array<i64: 1, 128>}, {transform_indices = @transform_4, window_bounds = array<i64: 1, 128>}]} {
    %c0 = arith.constant 0 : index
    %c0_0 = arith.constant 0 : index
    %0 = vector.load %arg1[%c0, %c0_0] : memref<24x128xbf16, #tpu.memory_space<vmem>>, vector<24x128xbf16>
    %c0_1 = arith.constant 0 : index
    %c0_2 = arith.constant 0 : index
    %1 = vector.load %arg2[%c0_1, %c0_2] : memref<128x128xbf16, #tpu.memory_space<vmem>>, vector<128x128xbf16>
    %cst = arith.constant dense<0.000000e+00> : vector<24x128xf32>
    %2 = tpu.matmul %0, %1, %cst {dimension_numbers = #tpu.dot_dimension_numbers<[1], [0], [0], [1], [0, 0, 1, 1], [], []>} : vector<24x128xbf16>, vector<128x128xbf16>, vector<24x128xf32> -> vector<24x128xf32>
    %cst_3 = arith.constant dense<0.000000e+00> : vector<128xf32>
    %3 = vector.multi_reduction <add>, %2, %cst_3 [0] : vector<24x128xf32> to vector<128xf32>
    %4 = vector.shape_cast %3 : vector<128xf32> to vector<1x128xf32>
    %c0_4 = arith.constant 0 : index
    %c0_5 = arith.constant 0 : index
    %5 = vector.load %arg4[%c0_4, %c0_5] : memref<1x128xf32, #tpu.memory_space<vmem>>, vector<1x128xf32>
    tpu.vector_store %arg4[%c0_4, %c0_5], %4 {strides = array<i32>} : memref<1x128xf32, #tpu.memory_space<vmem>>, vector<1x128xf32>,
    %6 = arith.mulf %2, %2 : vector<24x128xf32>
    %cst_6 = arith.constant dense<0.000000e+00> : vector<128xf32>
    %7 = vector.multi_reduction <add>, %6, %cst_6 [0] : vector<24x128xf32> to vector<128xf32>
    %8 = vector.shape_cast %7 : vector<128xf32> to vector<1x128xf32>
    %c0_7 = arith.constant 0 : index
    %c0_8 = arith.constant 0 : index
    %9 = vector.load %arg5[%c0_7, %c0_8] : memref<1x128xf32, #tpu.memory_space<vmem>>, vector<1x128xf32>
    tpu.vector_store %arg5[%c0_7, %c0_8], %8 {strides = array<i32>} : memref<1x128xf32, #tpu.memory_space<vmem>>, vector<1x128xf32>,
    %10 = arith.truncf %2 : vector<24x128xf32> to vector<24x128xbf16>
    %c0_9 = arith.constant 0 : index
    %c0_10 = arith.constant 0 : index
    %11 = vector.load %arg3[%c0_9, %c0_10] : memref<24x128xbf16, #tpu.memory_space<vmem>>, vector<24x128xbf16>
    tpu.vector_store %arg3[%c0_9, %c0_10], %10 {strides = array<i32>} : memref<24x128xbf16, #tpu.memory_space<vmem>>, vector<24x128xbf16>,
    return
  }
  func.func @transform_0(%arg0: i32) -> (i32, i32) {
    %c0_i32 = arith.constant 0 : i32
    %c0_i32_0 = arith.constant 0 : i32
    return %arg0, %c0_i32 : i32, i32
  }
  func.func @transform_1(%arg0: i32) -> (i32, i32) {
    %c0_i32 = arith.constant 0 : i32
    %c0_i32_0 = arith.constant 0 : i32
    %c0_i32_1 = arith.constant 0 : i32
    return %c0_i32, %c0_i32_0 : i32, i32
  }
  func.func @transform_2(%arg0: i32) -> (i32, i32) {
    %c0_i32 = arith.constant 0 : i32
    %c0_i32_0 = arith.constant 0 : i32
    return %arg0, %c0_i32 : i32, i32
  }
  func.func @transform_3(%arg0: i32) -> (i32, i32) {
    %c0_i32 = arith.constant 0 : i32
    %c0_i32_0 = arith.constant 0 : i32
    return %arg0, %c0_i32 : i32, i32
  }
  func.func @transform_4(%arg0: i32) -> (i32, i32) {
    %c0_i32 = arith.constant 0 : i32
    %c0_i32_0 = arith.constant 0 : i32
    return %arg0, %c0_i32 : i32, i32
  }
}

module attributes {stable_mosaic.version = 11 : i64} {
  func.func @_bn_act_kernel(%arg0: i32, %arg1: memref<56x128xbf16, #tpu.memory_space<vmem>>, %arg2: memref<1x128xf32, #tpu.memory_space<vmem>>, %arg3: memref<1x128xf32, #tpu.memory_space<vmem>>, %arg4: memref<56x128xbf16, #tpu.memory_space<vmem>>) attributes {dimension_semantics = [#tpu.dimension_semantics<parallel>], iteration_bounds = array<i64: 1>, scalar_prefetch = 0 : i64, scratch_operands = 0 : i64, tpu.core_type = #tpu.core_type<tc>, window_params = [{transform_indices = @transform_0, window_bounds = array<i64: 56, 128>}, {pipeline_mode = #tpu.pipeline_mode<synchronous>, transform_indices = @transform_1, window_bounds = array<i64: 1, 128>}, {pipeline_mode = #tpu.pipeline_mode<synchronous>, transform_indices = @transform_2, window_bounds = array<i64: 1, 128>}, {transform_indices = @transform_3, window_bounds = array<i64: 56, 128>}]} {
    %c0 = arith.constant 0 : index
    %c0_0 = arith.constant 0 : index
    %0 = vector.load %arg1[%c0, %c0_0] : memref<56x128xbf16, #tpu.memory_space<vmem>>, vector<56x128xbf16>
    %1 = arith.extf %0 : vector<56x128xbf16> to vector<56x128xf32>
    %c0_1 = arith.constant 0 : index
    %c0_2 = arith.constant 0 : index
    %2 = vector.load %arg2[%c0_1, %c0_2] : memref<1x128xf32, #tpu.memory_space<vmem>>, vector<1x128xf32>
    %3 = vector.broadcast %2 : vector<1x128xf32> to vector<56x128xf32>
    %4 = arith.mulf %1, %3 : vector<56x128xf32>
    %c0_3 = arith.constant 0 : index
    %c0_4 = arith.constant 0 : index
    %5 = vector.load %arg3[%c0_3, %c0_4] : memref<1x128xf32, #tpu.memory_space<vmem>>, vector<1x128xf32>
    %6 = vector.broadcast %5 : vector<1x128xf32> to vector<56x128xf32>
    %7 = arith.addf %4, %6 : vector<56x128xf32>
    %cst = arith.constant 0.000000e+00 : f32
    %8 = vector.broadcast %cst : f32 to vector<56x128xf32>
    %9 = arith.cmpf ogt, %7, %8 : vector<56x128xf32>
    %cst_5 = arith.constant 2.000000e-01 : f32
    %10 = vector.broadcast %cst_5 : f32 to vector<56x128xf32>
    %11 = arith.mulf %10, %7 : vector<56x128xf32>
    %12 = arith.select %9, %7, %11 : vector<56x128xi1>, vector<56x128xf32>
    %13 = arith.truncf %12 : vector<56x128xf32> to vector<56x128xbf16>
    %c0_6 = arith.constant 0 : index
    %c0_7 = arith.constant 0 : index
    %14 = vector.load %arg4[%c0_6, %c0_7] : memref<56x128xbf16, #tpu.memory_space<vmem>>, vector<56x128xbf16>
    tpu.vector_store %arg4[%c0_6, %c0_7], %13 {strides = array<i32>} : memref<56x128xbf16, #tpu.memory_space<vmem>>, vector<56x128xbf16>,
    return
  }
  func.func @transform_0(%arg0: i32) -> (i32, i32) {
    %c0_i32 = arith.constant 0 : i32
    %c0_i32_0 = arith.constant 0 : i32
    return %arg0, %c0_i32 : i32, i32
  }
  func.func @transform_1(%arg0: i32) -> (i32, i32) {
    %c0_i32 = arith.constant 0 : i32
    %c0_i32_0 = arith.constant 0 : i32
    %c0_i32_1 = arith.constant 0 : i32
    return %c0_i32, %c0_i32_0 : i32, i32
  }
  func.func @transform_2(%arg0: i32) -> (i32, i32) {
    %c0_i32 = arith.constant 0 : i32
    %c0_i32_0 = arith.constant 0 : i32
    %c0_i32_1 = arith.constant 0 : i32
    return %c0_i32, %c0_i32_0 : i32, i32
  }
  func.func @transform_3(%arg0: i32) -> (i32, i32) {
    %c0_i32 = arith.constant 0 : i32
    %c0_i32_0 = arith.constant 0 : i32
    return %arg0, %c0_i32 : i32, i32
  }
}

module attributes {stable_mosaic.version = 11 : i64} {
  func.func @_bn_act_kernel(%arg0: i32, %arg1: memref<8x128xbf16, #tpu.memory_space<vmem>>, %arg2: memref<1x128xf32, #tpu.memory_space<vmem>>, %arg3: memref<1x128xf32, #tpu.memory_space<vmem>>, %arg4: memref<8x128xbf16, #tpu.memory_space<vmem>>) attributes {dimension_semantics = [#tpu.dimension_semantics<parallel>], iteration_bounds = array<i64: 1>, scalar_prefetch = 0 : i64, scratch_operands = 0 : i64, tpu.core_type = #tpu.core_type<tc>, window_params = [{transform_indices = @transform_0, window_bounds = array<i64: 8, 128>}, {pipeline_mode = #tpu.pipeline_mode<synchronous>, transform_indices = @transform_1, window_bounds = array<i64: 1, 128>}, {pipeline_mode = #tpu.pipeline_mode<synchronous>, transform_indices = @transform_2, window_bounds = array<i64: 1, 128>}, {transform_indices = @transform_3, window_bounds = array<i64: 8, 128>}]} {
    %c0 = arith.constant 0 : index
    %c0_0 = arith.constant 0 : index
    %0 = vector.load %arg1[%c0, %c0_0] : memref<8x128xbf16, #tpu.memory_space<vmem>>, vector<8x128xbf16>
    %1 = arith.extf %0 : vector<8x128xbf16> to vector<8x128xf32>
    %c0_1 = arith.constant 0 : index
    %c0_2 = arith.constant 0 : index
    %2 = vector.load %arg2[%c0_1, %c0_2] : memref<1x128xf32, #tpu.memory_space<vmem>>, vector<1x128xf32>
    %3 = vector.broadcast %2 : vector<1x128xf32> to vector<8x128xf32>
    %4 = arith.mulf %1, %3 : vector<8x128xf32>
    %c0_3 = arith.constant 0 : index
    %c0_4 = arith.constant 0 : index
    %5 = vector.load %arg3[%c0_3, %c0_4] : memref<1x128xf32, #tpu.memory_space<vmem>>, vector<1x128xf32>
    %6 = vector.broadcast %5 : vector<1x128xf32> to vector<8x128xf32>
    %7 = arith.addf %4, %6 : vector<8x128xf32>
    %cst = arith.constant 0.000000e+00 : f32
    %8 = vector.broadcast %cst : f32 to vector<8x128xf32>
    %9 = arith.cmpf ogt, %7, %8 : vector<8x128xf32>
    %cst_5 = arith.constant 2.000000e-01 : f32
    %10 = vector.broadcast %cst_5 : f32 to vector<8x128xf32>
    %11 = arith.mulf %10, %7 : vector<8x128xf32>
    %12 = arith.select %9, %7, %11 : vector<8x128xi1>, vector<8x128xf32>
    %13 = arith.truncf %12 : vector<8x128xf32> to vector<8x128xbf16>
    %c0_6 = arith.constant 0 : index
    %c0_7 = arith.constant 0 : index
    %14 = vector.load %arg4[%c0_6, %c0_7] : memref<8x128xbf16, #tpu.memory_space<vmem>>, vector<8x128xbf16>
    tpu.vector_store %arg4[%c0_6, %c0_7], %13 {strides = array<i32>} : memref<8x128xbf16, #tpu.memory_space<vmem>>, vector<8x128xbf16>,
    return
  }
  func.func @transform_0(%arg0: i32) -> (i32, i32) {
    %c0_i32 = arith.constant 0 : i32
    %c0_i32_0 = arith.constant 0 : i32
    return %arg0, %c0_i32 : i32, i32
  }
  func.func @transform_1(%arg0: i32) -> (i32, i32) {
    %c0_i32 = arith.constant 0 : i32
    %c0_i32_0 = arith.constant 0 : i32
    %c0_i32_1 = arith.constant 0 : i32
    return %c0_i32, %c0_i32_0 : i32, i32
  }
  func.func @transform_2(%arg0: i32) -> (i32, i32) {
    %c0_i32 = arith.constant 0 : i32
    %c0_i32_0 = arith.constant 0 : i32
    %c0_i32_1 = arith.constant 0 : i32
    return %c0_i32, %c0_i32_0 : i32, i32
  }
  func.func @transform_3(%arg0: i32) -> (i32, i32) {
    %c0_i32 = arith.constant 0 : i32
    %c0_i32_0 = arith.constant 0 : i32
    return %arg0, %c0_i32 : i32, i32
  }
}

module attributes {stable_mosaic.version = 11 : i64} {
  func.func @_conv_bn_mm_kernel(%arg0: i32, %arg1: memref<24x256xbf16, #tpu.memory_space<vmem>>, %arg2: memref<256x128xbf16, #tpu.memory_space<vmem>>, %arg3: memref<24x128xbf16, #tpu.memory_space<vmem>>, %arg4: memref<1x128xf32, #tpu.memory_space<vmem>>, %arg5: memref<1x128xf32, #tpu.memory_space<vmem>>) attributes {dimension_semantics = [#tpu.dimension_semantics<parallel>], iteration_bounds = array<i64: 1>, scalar_prefetch = 0 : i64, scratch_operands = 0 : i64, tpu.core_type = #tpu.core_type<tc>, window_params = [{transform_indices = @transform_0, window_bounds = array<i64: 24, 256>}, {pipeline_mode = #tpu.pipeline_mode<synchronous>, transform_indices = @transform_1, window_bounds = array<i64: 256, 128>}, {transform_indices = @transform_2, window_bounds = array<i64: 24, 128>}, {transform_indices = @transform_3, window_bounds = array<i64: 1, 128>}, {transform_indices = @transform_4, window_bounds = array<i64: 1, 128>}]} {
    %c0 = arith.constant 0 : index
    %c0_0 = arith.constant 0 : index
    %0 = vector.load %arg1[%c0, %c0_0] : memref<24x256xbf16, #tpu.memory_space<vmem>>, vector<24x256xbf16>
    %c0_1 = arith.constant 0 : index
    %c0_2 = arith.constant 0 : index
    %1 = vector.load %arg2[%c0_1, %c0_2] : memref<256x128xbf16, #tpu.memory_space<vmem>>, vector<256x128xbf16>
    %cst = arith.constant dense<0.000000e+00> : vector<24x128xf32>
    %2 = tpu.matmul %0, %1, %cst {dimension_numbers = #tpu.dot_dimension_numbers<[1], [0], [0], [1], [0, 0, 1, 1], [], []>} : vector<24x256xbf16>, vector<256x128xbf16>, vector<24x128xf32> -> vector<24x128xf32>
    %cst_3 = arith.constant dense<0.000000e+00> : vector<128xf32>
    %3 = vector.multi_reduction <add>, %2, %cst_3 [0] : vector<24x128xf32> to vector<128xf32>
    %4 = vector.shape_cast %3 : vector<128xf32> to vector<1x128xf32>
    %c0_4 = arith.constant 0 : index
    %c0_5 = arith.constant 0 : index
    %5 = vector.load %arg4[%c0_4, %c0_5] : memref<1x128xf32, #tpu.memory_space<vmem>>, vector<1x128xf32>
    tpu.vector_store %arg4[%c0_4, %c0_5], %4 {strides = array<i32>} : memref<1x128xf32, #tpu.memory_space<vmem>>, vector<1x128xf32>,
    %6 = arith.mulf %2, %2 : vector<24x128xf32>
    %cst_6 = arith.constant dense<0.000000e+00> : vector<128xf32>
    %7 = vector.multi_reduction <add>, %6, %cst_6 [0] : vector<24x128xf32> to vector<128xf32>
    %8 = vector.shape_cast %7 : vector<128xf32> to vector<1x128xf32>
    %c0_7 = arith.constant 0 : index
    %c0_8 = arith.constant 0 : index
    %9 = vector.load %arg5[%c0_7, %c0_8] : memref<1x128xf32, #tpu.memory_space<vmem>>, vector<1x128xf32>
    tpu.vector_store %arg5[%c0_7, %c0_8], %8 {strides = array<i32>} : memref<1x128xf32, #tpu.memory_space<vmem>>, vector<1x128xf32>,
    %10 = arith.truncf %2 : vector<24x128xf32> to vector<24x128xbf16>
    %c0_9 = arith.constant 0 : index
    %c0_10 = arith.constant 0 : index
    %11 = vector.load %arg3[%c0_9, %c0_10] : memref<24x128xbf16, #tpu.memory_space<vmem>>, vector<24x128xbf16>
    tpu.vector_store %arg3[%c0_9, %c0_10], %10 {strides = array<i32>} : memref<24x128xbf16, #tpu.memory_space<vmem>>, vector<24x128xbf16>,
    return
  }
  func.func @transform_0(%arg0: i32) -> (i32, i32) {
    %c0_i32 = arith.constant 0 : i32
    %c0_i32_0 = arith.constant 0 : i32
    return %arg0, %c0_i32 : i32, i32
  }
  func.func @transform_1(%arg0: i32) -> (i32, i32) {
    %c0_i32 = arith.constant 0 : i32
    %c0_i32_0 = arith.constant 0 : i32
    %c0_i32_1 = arith.constant 0 : i32
    return %c0_i32, %c0_i32_0 : i32, i32
  }
  func.func @transform_2(%arg0: i32) -> (i32, i32) {
    %c0_i32 = arith.constant 0 : i32
    %c0_i32_0 = arith.constant 0 : i32
    return %arg0, %c0_i32 : i32, i32
  }
  func.func @transform_3(%arg0: i32) -> (i32, i32) {
    %c0_i32 = arith.constant 0 : i32
    %c0_i32_0 = arith.constant 0 : i32
    return %arg0, %c0_i32 : i32, i32
  }
  func.func @transform_4(%arg0: i32) -> (i32, i32) {
    %c0_i32 = arith.constant 0 : i32
    %c0_i32_0 = arith.constant 0 : i32
    return %arg0, %c0_i32 : i32, i32
  }
}

module attributes {stable_mosaic.version = 11 : i64} {
  func.func @_bn_act_kernel(%arg0: i32, %arg1: memref<24x128xbf16, #tpu.memory_space<vmem>>, %arg2: memref<1x128xf32, #tpu.memory_space<vmem>>, %arg3: memref<1x128xf32, #tpu.memory_space<vmem>>, %arg4: memref<24x128xbf16, #tpu.memory_space<vmem>>) attributes {dimension_semantics = [#tpu.dimension_semantics<parallel>], iteration_bounds = array<i64: 1>, scalar_prefetch = 0 : i64, scratch_operands = 0 : i64, tpu.core_type = #tpu.core_type<tc>, window_params = [{transform_indices = @transform_0, window_bounds = array<i64: 24, 128>}, {pipeline_mode = #tpu.pipeline_mode<synchronous>, transform_indices = @transform_1, window_bounds = array<i64: 1, 128>}, {pipeline_mode = #tpu.pipeline_mode<synchronous>, transform_indices = @transform_2, window_bounds = array<i64: 1, 128>}, {transform_indices = @transform_3, window_bounds = array<i64: 24, 128>}]} {
    %c0 = arith.constant 0 : index
    %c0_0 = arith.constant 0 : index
    %0 = vector.load %arg1[%c0, %c0_0] : memref<24x128xbf16, #tpu.memory_space<vmem>>, vector<24x128xbf16>
    %1 = arith.extf %0 : vector<24x128xbf16> to vector<24x128xf32>
    %c0_1 = arith.constant 0 : index
    %c0_2 = arith.constant 0 : index
    %2 = vector.load %arg2[%c0_1, %c0_2] : memref<1x128xf32, #tpu.memory_space<vmem>>, vector<1x128xf32>
    %3 = vector.broadcast %2 : vector<1x128xf32> to vector<24x128xf32>
    %4 = arith.mulf %1, %3 : vector<24x128xf32>
    %c0_3 = arith.constant 0 : index
    %c0_4 = arith.constant 0 : index
    %5 = vector.load %arg3[%c0_3, %c0_4] : memref<1x128xf32, #tpu.memory_space<vmem>>, vector<1x128xf32>
    %6 = vector.broadcast %5 : vector<1x128xf32> to vector<24x128xf32>
    %7 = arith.addf %4, %6 : vector<24x128xf32>
    %cst = arith.constant 0.000000e+00 : f32
    %8 = vector.broadcast %cst : f32 to vector<24x128xf32>
    %9 = arith.cmpf ogt, %7, %8 : vector<24x128xf32>
    %cst_5 = arith.constant 2.000000e-01 : f32
    %10 = vector.broadcast %cst_5 : f32 to vector<24x128xf32>
    %11 = arith.mulf %10, %7 : vector<24x128xf32>
    %12 = arith.select %9, %7, %11 : vector<24x128xi1>, vector<24x128xf32>
    %13 = arith.truncf %12 : vector<24x128xf32> to vector<24x128xbf16>
    %c0_6 = arith.constant 0 : index
    %c0_7 = arith.constant 0 : index
    %14 = vector.load %arg4[%c0_6, %c0_7] : memref<24x128xbf16, #tpu.memory_space<vmem>>, vector<24x128xbf16>
    tpu.vector_store %arg4[%c0_6, %c0_7], %13 {strides = array<i32>} : memref<24x128xbf16, #tpu.memory_space<vmem>>, vector<24x128xbf16>,
    return
  }
  func.func @transform_0(%arg0: i32) -> (i32, i32) {
    %c0_i32 = arith.constant 0 : i32
    %c0_i32_0 = arith.constant 0 : i32
    return %arg0, %c0_i32 : i32, i32
  }
  func.func @transform_1(%arg0: i32) -> (i32, i32) {
    %c0_i32 = arith.constant 0 : i32
    %c0_i32_0 = arith.constant 0 : i32
    %c0_i32_1 = arith.constant 0 : i32
    return %c0_i32, %c0_i32_0 : i32, i32
  }
  func.func @transform_2(%arg0: i32) -> (i32, i32) {
    %c0_i32 = arith.constant 0 : i32
    %c0_i32_0 = arith.constant 0 : i32
    %c0_i32_1 = arith.constant 0 : i32
    return %c0_i32, %c0_i32_0 : i32, i32
  }
  func.func @transform_3(%arg0: i32) -> (i32, i32) {
    %c0_i32 = arith.constant 0 : i32
    %c0_i32_0 = arith.constant 0 : i32
    return %arg0, %c0_i32 : i32, i32
  }
}

module attributes {stable_mosaic.version = 11 : i64} {
  func.func @_conv_bn_mm_kernel(%arg0: i32, %arg1: memref<8x256xbf16, #tpu.memory_space<vmem>>, %arg2: memref<256x128xbf16, #tpu.memory_space<vmem>>, %arg3: memref<8x128xbf16, #tpu.memory_space<vmem>>, %arg4: memref<1x128xf32, #tpu.memory_space<vmem>>, %arg5: memref<1x128xf32, #tpu.memory_space<vmem>>) attributes {dimension_semantics = [#tpu.dimension_semantics<parallel>], iteration_bounds = array<i64: 1>, scalar_prefetch = 0 : i64, scratch_operands = 0 : i64, tpu.core_type = #tpu.core_type<tc>, window_params = [{transform_indices = @transform_0, window_bounds = array<i64: 8, 256>}, {pipeline_mode = #tpu.pipeline_mode<synchronous>, transform_indices = @transform_1, window_bounds = array<i64: 256, 128>}, {transform_indices = @transform_2, window_bounds = array<i64: 8, 128>}, {transform_indices = @transform_3, window_bounds = array<i64: 1, 128>}, {transform_indices = @transform_4, window_bounds = array<i64: 1, 128>}]} {
    %c0 = arith.constant 0 : index
    %c0_0 = arith.constant 0 : index
    %0 = vector.load %arg1[%c0, %c0_0] : memref<8x256xbf16, #tpu.memory_space<vmem>>, vector<8x256xbf16>
    %c0_1 = arith.constant 0 : index
    %c0_2 = arith.constant 0 : index
    %1 = vector.load %arg2[%c0_1, %c0_2] : memref<256x128xbf16, #tpu.memory_space<vmem>>, vector<256x128xbf16>
    %cst = arith.constant dense<0.000000e+00> : vector<8x128xf32>
    %2 = tpu.matmul %0, %1, %cst {dimension_numbers = #tpu.dot_dimension_numbers<[1], [0], [0], [1], [0, 0, 1, 1], [], []>} : vector<8x256xbf16>, vector<256x128xbf16>, vector<8x128xf32> -> vector<8x128xf32>
    %cst_3 = arith.constant dense<0.000000e+00> : vector<128xf32>
    %3 = vector.multi_reduction <add>, %2, %cst_3 [0] : vector<8x128xf32> to vector<128xf32>
    %4 = vector.shape_cast %3 : vector<128xf32> to vector<1x128xf32>
    %c0_4 = arith.constant 0 : index
    %c0_5 = arith.constant 0 : index
    %5 = vector.load %arg4[%c0_4, %c0_5] : memref<1x128xf32, #tpu.memory_space<vmem>>, vector<1x128xf32>
    tpu.vector_store %arg4[%c0_4, %c0_5], %4 {strides = array<i32>} : memref<1x128xf32, #tpu.memory_space<vmem>>, vector<1x128xf32>,
    %6 = arith.mulf %2, %2 : vector<8x128xf32>
    %cst_6 = arith.constant dense<0.000000e+00> : vector<128xf32>
    %7 = vector.multi_reduction <add>, %6, %cst_6 [0] : vector<8x128xf32> to vector<128xf32>
    %8 = vector.shape_cast %7 : vector<128xf32> to vector<1x128xf32>
    %c0_7 = arith.constant 0 : index
    %c0_8 = arith.constant 0 : index
    %9 = vector.load %arg5[%c0_7, %c0_8] : memref<1x128xf32, #tpu.memory_space<vmem>>, vector<1x128xf32>
    tpu.vector_store %arg5[%c0_7, %c0_8], %8 {strides = array<i32>} : memref<1x128xf32, #tpu.memory_space<vmem>>, vector<1x128xf32>,
    %10 = arith.truncf %2 : vector<8x128xf32> to vector<8x128xbf16>
    %c0_9 = arith.constant 0 : index
    %c0_10 = arith.constant 0 : index
    %11 = vector.load %arg3[%c0_9, %c0_10] : memref<8x128xbf16, #tpu.memory_space<vmem>>, vector<8x128xbf16>
    tpu.vector_store %arg3[%c0_9, %c0_10], %10 {strides = array<i32>} : memref<8x128xbf16, #tpu.memory_space<vmem>>, vector<8x128xbf16>,
    return
  }
  func.func @transform_0(%arg0: i32) -> (i32, i32) {
    %c0_i32 = arith.constant 0 : i32
    %c0_i32_0 = arith.constant 0 : i32
    return %arg0, %c0_i32 : i32, i32
  }
  func.func @transform_1(%arg0: i32) -> (i32, i32) {
    %c0_i32 = arith.constant 0 : i32
    %c0_i32_0 = arith.constant 0 : i32
    %c0_i32_1 = arith.constant 0 : i32
    return %c0_i32, %c0_i32_0 : i32, i32
  }
  func.func @transform_2(%arg0: i32) -> (i32, i32) {
    %c0_i32 = arith.constant 0 : i32
    %c0_i32_0 = arith.constant 0 : i32
    return %arg0, %c0_i32 : i32, i32
  }
  func.func @transform_3(%arg0: i32) -> (i32, i32) {
    %c0_i32 = arith.constant 0 : i32
    %c0_i32_0 = arith.constant 0 : i32
    return %arg0, %c0_i32 : i32, i32
  }
  func.func @transform_4(%arg0: i32) -> (i32, i32) {
    %c0_i32 = arith.constant 0 : i32
    %c0_i32_0 = arith.constant 0 : i32
    return %arg0, %c0_i32 : i32, i32
  }
}

module attributes {stable_mosaic.version = 11 : i64} {
  func.func @_conv_bn_mm_kernel(%arg0: i32, %arg1: memref<32x512xbf16, #tpu.memory_space<vmem>>, %arg2: memref<512x128xbf16, #tpu.memory_space<vmem>>, %arg3: memref<32x128xbf16, #tpu.memory_space<vmem>>, %arg4: memref<1x128xf32, #tpu.memory_space<vmem>>, %arg5: memref<1x128xf32, #tpu.memory_space<vmem>>) attributes {dimension_semantics = [#tpu.dimension_semantics<parallel>], iteration_bounds = array<i64: 1>, scalar_prefetch = 0 : i64, scratch_operands = 0 : i64, tpu.core_type = #tpu.core_type<tc>, window_params = [{transform_indices = @transform_0, window_bounds = array<i64: 32, 512>}, {pipeline_mode = #tpu.pipeline_mode<synchronous>, transform_indices = @transform_1, window_bounds = array<i64: 512, 128>}, {transform_indices = @transform_2, window_bounds = array<i64: 32, 128>}, {transform_indices = @transform_3, window_bounds = array<i64: 1, 128>}, {transform_indices = @transform_4, window_bounds = array<i64: 1, 128>}]} {
    %c0 = arith.constant 0 : index
    %c0_0 = arith.constant 0 : index
    %0 = vector.load %arg1[%c0, %c0_0] : memref<32x512xbf16, #tpu.memory_space<vmem>>, vector<32x512xbf16>
    %c0_1 = arith.constant 0 : index
    %c0_2 = arith.constant 0 : index
    %1 = vector.load %arg2[%c0_1, %c0_2] : memref<512x128xbf16, #tpu.memory_space<vmem>>, vector<512x128xbf16>
    %cst = arith.constant dense<0.000000e+00> : vector<32x128xf32>
    %2 = tpu.matmul %0, %1, %cst {dimension_numbers = #tpu.dot_dimension_numbers<[1], [0], [0], [1], [0, 0, 1, 1], [], []>} : vector<32x512xbf16>, vector<512x128xbf16>, vector<32x128xf32> -> vector<32x128xf32>
    %cst_3 = arith.constant dense<0.000000e+00> : vector<128xf32>
    %3 = vector.multi_reduction <add>, %2, %cst_3 [0] : vector<32x128xf32> to vector<128xf32>
    %4 = vector.shape_cast %3 : vector<128xf32> to vector<1x128xf32>
    %c0_4 = arith.constant 0 : index
    %c0_5 = arith.constant 0 : index
    %5 = vector.load %arg4[%c0_4, %c0_5] : memref<1x128xf32, #tpu.memory_space<vmem>>, vector<1x128xf32>
    tpu.vector_store %arg4[%c0_4, %c0_5], %4 {strides = array<i32>} : memref<1x128xf32, #tpu.memory_space<vmem>>, vector<1x128xf32>,
    %6 = arith.mulf %2, %2 : vector<32x128xf32>
    %cst_6 = arith.constant dense<0.000000e+00> : vector<128xf32>
    %7 = vector.multi_reduction <add>, %6, %cst_6 [0] : vector<32x128xf32> to vector<128xf32>
    %8 = vector.shape_cast %7 : vector<128xf32> to vector<1x128xf32>
    %c0_7 = arith.constant 0 : index
    %c0_8 = arith.constant 0 : index
    %9 = vector.load %arg5[%c0_7, %c0_8] : memref<1x128xf32, #tpu.memory_space<vmem>>, vector<1x128xf32>
    tpu.vector_store %arg5[%c0_7, %c0_8], %8 {strides = array<i32>} : memref<1x128xf32, #tpu.memory_space<vmem>>, vector<1x128xf32>,
    %10 = arith.truncf %2 : vector<32x128xf32> to vector<32x128xbf16>
    %c0_9 = arith.constant 0 : index
    %c0_10 = arith.constant 0 : index
    %11 = vector.load %arg3[%c0_9, %c0_10] : memref<32x128xbf16, #tpu.memory_space<vmem>>, vector<32x128xbf16>
    tpu.vector_store %arg3[%c0_9, %c0_10], %10 {strides = array<i32>} : memref<32x128xbf16, #tpu.memory_space<vmem>>, vector<32x128xbf16>,
    return
  }
  func.func @transform_0(%arg0: i32) -> (i32, i32) {
    %c0_i32 = arith.constant 0 : i32
    %c0_i32_0 = arith.constant 0 : i32
    return %arg0, %c0_i32 : i32, i32
  }
  func.func @transform_1(%arg0: i32) -> (i32, i32) {
    %c0_i32 = arith.constant 0 : i32
    %c0_i32_0 = arith.constant 0 : i32
    %c0_i32_1 = arith.constant 0 : i32
    return %c0_i32, %c0_i32_0 : i32, i32
  }
  func.func @transform_2(%arg0: i32) -> (i32, i32) {
    %c0_i32 = arith.constant 0 : i32
    %c0_i32_0 = arith.constant 0 : i32
    return %arg0, %c0_i32 : i32, i32
  }
  func.func @transform_3(%arg0: i32) -> (i32, i32) {
    %c0_i32 = arith.constant 0 : i32
    %c0_i32_0 = arith.constant 0 : i32
    return %arg0, %c0_i32 : i32, i32
  }
  func.func @transform_4(%arg0: i32) -> (i32, i32) {
    %c0_i32 = arith.constant 0 : i32
    %c0_i32_0 = arith.constant 0 : i32
    return %arg0, %c0_i32 : i32, i32
  }
}

module attributes {stable_mosaic.version = 11 : i64} {
  func.func @_conv_bn_mm_kernel(%arg0: i32, %arg1: memref<24x512xbf16, #tpu.memory_space<vmem>>, %arg2: memref<512x128xbf16, #tpu.memory_space<vmem>>, %arg3: memref<24x128xbf16, #tpu.memory_space<vmem>>, %arg4: memref<1x128xf32, #tpu.memory_space<vmem>>, %arg5: memref<1x128xf32, #tpu.memory_space<vmem>>) attributes {dimension_semantics = [#tpu.dimension_semantics<parallel>], iteration_bounds = array<i64: 1>, scalar_prefetch = 0 : i64, scratch_operands = 0 : i64, tpu.core_type = #tpu.core_type<tc>, window_params = [{transform_indices = @transform_0, window_bounds = array<i64: 24, 512>}, {pipeline_mode = #tpu.pipeline_mode<synchronous>, transform_indices = @transform_1, window_bounds = array<i64: 512, 128>}, {transform_indices = @transform_2, window_bounds = array<i64: 24, 128>}, {transform_indices = @transform_3, window_bounds = array<i64: 1, 128>}, {transform_indices = @transform_4, window_bounds = array<i64: 1, 128>}]} {
    %c0 = arith.constant 0 : index
    %c0_0 = arith.constant 0 : index
    %0 = vector.load %arg1[%c0, %c0_0] : memref<24x512xbf16, #tpu.memory_space<vmem>>, vector<24x512xbf16>
    %c0_1 = arith.constant 0 : index
    %c0_2 = arith.constant 0 : index
    %1 = vector.load %arg2[%c0_1, %c0_2] : memref<512x128xbf16, #tpu.memory_space<vmem>>, vector<512x128xbf16>
    %cst = arith.constant dense<0.000000e+00> : vector<24x128xf32>
    %2 = tpu.matmul %0, %1, %cst {dimension_numbers = #tpu.dot_dimension_numbers<[1], [0], [0], [1], [0, 0, 1, 1], [], []>} : vector<24x512xbf16>, vector<512x128xbf16>, vector<24x128xf32> -> vector<24x128xf32>
    %cst_3 = arith.constant dense<0.000000e+00> : vector<128xf32>
    %3 = vector.multi_reduction <add>, %2, %cst_3 [0] : vector<24x128xf32> to vector<128xf32>
    %4 = vector.shape_cast %3 : vector<128xf32> to vector<1x128xf32>
    %c0_4 = arith.constant 0 : index
    %c0_5 = arith.constant 0 : index
    %5 = vector.load %arg4[%c0_4, %c0_5] : memref<1x128xf32, #tpu.memory_space<vmem>>, vector<1x128xf32>
    tpu.vector_store %arg4[%c0_4, %c0_5], %4 {strides = array<i32>} : memref<1x128xf32, #tpu.memory_space<vmem>>, vector<1x128xf32>,
    %6 = arith.mulf %2, %2 : vector<24x128xf32>
    %cst_6 = arith.constant dense<0.000000e+00> : vector<128xf32>
    %7 = vector.multi_reduction <add>, %6, %cst_6 [0] : vector<24x128xf32> to vector<128xf32>
    %8 = vector.shape_cast %7 : vector<128xf32> to vector<1x128xf32>
    %c0_7 = arith.constant 0 : index
    %c0_8 = arith.constant 0 : index
    %9 = vector.load %arg5[%c0_7, %c0_8] : memref<1x128xf32, #tpu.memory_space<vmem>>, vector<1x128xf32>
    tpu.vector_store %arg5[%c0_7, %c0_8], %8 {strides = array<i32>} : memref<1x128xf32, #tpu.memory_space<vmem>>, vector<1x128xf32>,
    %10 = arith.truncf %2 : vector<24x128xf32> to vector<24x128xbf16>
    %c0_9 = arith.constant 0 : index
    %c0_10 = arith.constant 0 : index
    %11 = vector.load %arg3[%c0_9, %c0_10] : memref<24x128xbf16, #tpu.memory_space<vmem>>, vector<24x128xbf16>
    tpu.vector_store %arg3[%c0_9, %c0_10], %10 {strides = array<i32>} : memref<24x128xbf16, #tpu.memory_space<vmem>>, vector<24x128xbf16>,
    return
  }
  func.func @transform_0(%arg0: i32) -> (i32, i32) {
    %c0_i32 = arith.constant 0 : i32
    %c0_i32_0 = arith.constant 0 : i32
    return %arg0, %c0_i32 : i32, i32
  }
  func.func @transform_1(%arg0: i32) -> (i32, i32) {
    %c0_i32 = arith.constant 0 : i32
    %c0_i32_0 = arith.constant 0 : i32
    %c0_i32_1 = arith.constant 0 : i32
    return %c0_i32, %c0_i32_0 : i32, i32
  }
  func.func @transform_2(%arg0: i32) -> (i32, i32) {
    %c0_i32 = arith.constant 0 : i32
    %c0_i32_0 = arith.constant 0 : i32
    return %arg0, %c0_i32 : i32, i32
  }
  func.func @transform_3(%arg0: i32) -> (i32, i32) {
    %c0_i32 = arith.constant 0 : i32
    %c0_i32_0 = arith.constant 0 : i32
    return %arg0, %c0_i32 : i32, i32
  }
  func.func @transform_4(%arg0: i32) -> (i32, i32) {
    %c0_i32 = arith.constant 0 : i32
    %c0_i32_0 = arith.constant 0 : i32
    return %arg0, %c0_i32 : i32, i32
  }
}

module attributes {stable_mosaic.version = 11 : i64} {
  func.func @_bn_act_kernel(%arg0: i32, %arg1: memref<32x128xbf16, #tpu.memory_space<vmem>>, %arg2: memref<1x128xf32, #tpu.memory_space<vmem>>, %arg3: memref<1x128xf32, #tpu.memory_space<vmem>>, %arg4: memref<32x128xbf16, #tpu.memory_space<vmem>>) attributes {dimension_semantics = [#tpu.dimension_semantics<parallel>], iteration_bounds = array<i64: 1>, scalar_prefetch = 0 : i64, scratch_operands = 0 : i64, tpu.core_type = #tpu.core_type<tc>, window_params = [{transform_indices = @transform_0, window_bounds = array<i64: 32, 128>}, {pipeline_mode = #tpu.pipeline_mode<synchronous>, transform_indices = @transform_1, window_bounds = array<i64: 1, 128>}, {pipeline_mode = #tpu.pipeline_mode<synchronous>, transform_indices = @transform_2, window_bounds = array<i64: 1, 128>}, {transform_indices = @transform_3, window_bounds = array<i64: 32, 128>}]} {
    %c0 = arith.constant 0 : index
    %c0_0 = arith.constant 0 : index
    %0 = vector.load %arg1[%c0, %c0_0] : memref<32x128xbf16, #tpu.memory_space<vmem>>, vector<32x128xbf16>
    %1 = arith.extf %0 : vector<32x128xbf16> to vector<32x128xf32>
    %c0_1 = arith.constant 0 : index
    %c0_2 = arith.constant 0 : index
    %2 = vector.load %arg2[%c0_1, %c0_2] : memref<1x128xf32, #tpu.memory_space<vmem>>, vector<1x128xf32>
    %3 = vector.broadcast %2 : vector<1x128xf32> to vector<32x128xf32>
    %4 = arith.mulf %1, %3 : vector<32x128xf32>
    %c0_3 = arith.constant 0 : index
    %c0_4 = arith.constant 0 : index
    %5 = vector.load %arg3[%c0_3, %c0_4] : memref<1x128xf32, #tpu.memory_space<vmem>>, vector<1x128xf32>
    %6 = vector.broadcast %5 : vector<1x128xf32> to vector<32x128xf32>
    %7 = arith.addf %4, %6 : vector<32x128xf32>
    %cst = arith.constant 0.000000e+00 : f32
    %8 = vector.broadcast %cst : f32 to vector<32x128xf32>
    %9 = arith.cmpf ogt, %7, %8 : vector<32x128xf32>
    %cst_5 = arith.constant 2.000000e-01 : f32
    %10 = vector.broadcast %cst_5 : f32 to vector<32x128xf32>
    %11 = arith.mulf %10, %7 : vector<32x128xf32>
    %12 = arith.select %9, %7, %11 : vector<32x128xi1>, vector<32x128xf32>
    %13 = arith.truncf %12 : vector<32x128xf32> to vector<32x128xbf16>
    %c0_6 = arith.constant 0 : index
    %c0_7 = arith.constant 0 : index
    %14 = vector.load %arg4[%c0_6, %c0_7] : memref<32x128xbf16, #tpu.memory_space<vmem>>, vector<32x128xbf16>
    tpu.vector_store %arg4[%c0_6, %c0_7], %13 {strides = array<i32>} : memref<32x128xbf16, #tpu.memory_space<vmem>>, vector<32x128xbf16>,
    return
  }
  func.func @transform_0(%arg0: i32) -> (i32, i32) {
    %c0_i32 = arith.constant 0 : i32
    %c0_i32_0 = arith.constant 0 : i32
    return %arg0, %c0_i32 : i32, i32
  }
  func.func @transform_1(%arg0: i32) -> (i32, i32) {
    %c0_i32 = arith.constant 0 : i32
    %c0_i32_0 = arith.constant 0 : i32
    %c0_i32_1 = arith.constant 0 : i32
    return %c0_i32, %c0_i32_0 : i32, i32
  }
  func.func @transform_2(%arg0: i32) -> (i32, i32) {
    %c0_i32 = arith.constant 0 : i32
    %c0_i32_0 = arith.constant 0 : i32
    %c0_i32_1 = arith.constant 0 : i32
    return %c0_i32, %c0_i32_0 : i32, i32
  }
  func.func @transform_3(%arg0: i32) -> (i32, i32) {
    %c0_i32 = arith.constant 0 : i32
    %c0_i32_0 = arith.constant 0 : i32
    return %arg0, %c0_i32 : i32, i32
  }
}

module attributes {stable_mosaic.version = 11 : i64} {
  func.func @_conv_bias_mm_kernel(%arg0: i32, %arg1: memref<56x1024xbf16, #tpu.memory_space<vmem>>, %arg2: memref<1024x128xbf16, #tpu.memory_space<vmem>>, %arg3: memref<1x128xf32, #tpu.memory_space<vmem>>, %arg4: memref<56x128xf32, #tpu.memory_space<vmem>>) attributes {dimension_semantics = [#tpu.dimension_semantics<parallel>], iteration_bounds = array<i64: 1>, scalar_prefetch = 0 : i64, scratch_operands = 0 : i64, tpu.core_type = #tpu.core_type<tc>, window_params = [{transform_indices = @transform_0, window_bounds = array<i64: 56, 1024>}, {pipeline_mode = #tpu.pipeline_mode<synchronous>, transform_indices = @transform_1, window_bounds = array<i64: 1024, 128>}, {pipeline_mode = #tpu.pipeline_mode<synchronous>, transform_indices = @transform_2, window_bounds = array<i64: 1, 128>}, {transform_indices = @transform_3, window_bounds = array<i64: 56, 128>}]} {
    %c0 = arith.constant 0 : index
    %c0_0 = arith.constant 0 : index
    %0 = vector.load %arg1[%c0, %c0_0] : memref<56x1024xbf16, #tpu.memory_space<vmem>>, vector<56x1024xbf16>
    %c0_1 = arith.constant 0 : index
    %c0_2 = arith.constant 0 : index
    %1 = vector.load %arg2[%c0_1, %c0_2] : memref<1024x128xbf16, #tpu.memory_space<vmem>>, vector<1024x128xbf16>
    %cst = arith.constant dense<0.000000e+00> : vector<56x128xf32>
    %2 = tpu.matmul %0, %1, %cst {dimension_numbers = #tpu.dot_dimension_numbers<[1], [0], [0], [1], [0, 0, 1, 1], [], []>} : vector<56x1024xbf16>, vector<1024x128xbf16>, vector<56x128xf32> -> vector<56x128xf32>
    %c0_3 = arith.constant 0 : index
    %c0_4 = arith.constant 0 : index
    %3 = vector.load %arg3[%c0_3, %c0_4] : memref<1x128xf32, #tpu.memory_space<vmem>>, vector<1x128xf32>
    %4 = vector.broadcast %3 : vector<1x128xf32> to vector<56x128xf32>
    %5 = arith.addf %2, %4 : vector<56x128xf32>
    %c0_5 = arith.constant 0 : index
    %c0_6 = arith.constant 0 : index
    %6 = vector.load %arg4[%c0_5, %c0_6] : memref<56x128xf32, #tpu.memory_space<vmem>>, vector<56x128xf32>
    tpu.vector_store %arg4[%c0_5, %c0_6], %5 {strides = array<i32>} : memref<56x128xf32, #tpu.memory_space<vmem>>, vector<56x128xf32>,
    return
  }
  func.func @transform_0(%arg0: i32) -> (i32, i32) {
    %c0_i32 = arith.constant 0 : i32
    %c0_i32_0 = arith.constant 0 : i32
    return %arg0, %c0_i32 : i32, i32
  }
  func.func @transform_1(%arg0: i32) -> (i32, i32) {
    %c0_i32 = arith.constant 0 : i32
    %c0_i32_0 = arith.constant 0 : i32
    %c0_i32_1 = arith.constant 0 : i32
    return %c0_i32, %c0_i32_0 : i32, i32
  }
  func.func @transform_2(%arg0: i32) -> (i32, i32) {
    %c0_i32 = arith.constant 0 : i32
    %c0_i32_0 = arith.constant 0 : i32
    %c0_i32_1 = arith.constant 0 : i32
    return %c0_i32, %c0_i32_0 : i32, i32
  }
  func.func @transform_3(%arg0: i32) -> (i32, i32) {
    %c0_i32 = arith.constant 0 : i32
    %c0_i32_0 = arith.constant 0 : i32
    return %arg0, %c0_i32 : i32, i32
  }
}

module attributes {stable_mosaic.version = 11 : i64} {
  func.func @_conv_bias_mm_kernel(%arg0: i32, %arg1: memref<32x1024xbf16, #tpu.memory_space<vmem>>, %arg2: memref<1024x128xbf16, #tpu.memory_space<vmem>>, %arg3: memref<1x128xf32, #tpu.memory_space<vmem>>, %arg4: memref<32x128xf32, #tpu.memory_space<vmem>>) attributes {dimension_semantics = [#tpu.dimension_semantics<parallel>], iteration_bounds = array<i64: 1>, scalar_prefetch = 0 : i64, scratch_operands = 0 : i64, tpu.core_type = #tpu.core_type<tc>, window_params = [{transform_indices = @transform_0, window_bounds = array<i64: 32, 1024>}, {pipeline_mode = #tpu.pipeline_mode<synchronous>, transform_indices = @transform_1, window_bounds = array<i64: 1024, 128>}, {pipeline_mode = #tpu.pipeline_mode<synchronous>, transform_indices = @transform_2, window_bounds = array<i64: 1, 128>}, {transform_indices = @transform_3, window_bounds = array<i64: 32, 128>}]} {
    %c0 = arith.constant 0 : index
    %c0_0 = arith.constant 0 : index
    %0 = vector.load %arg1[%c0, %c0_0] : memref<32x1024xbf16, #tpu.memory_space<vmem>>, vector<32x1024xbf16>
    %c0_1 = arith.constant 0 : index
    %c0_2 = arith.constant 0 : index
    %1 = vector.load %arg2[%c0_1, %c0_2] : memref<1024x128xbf16, #tpu.memory_space<vmem>>, vector<1024x128xbf16>
    %cst = arith.constant dense<0.000000e+00> : vector<32x128xf32>
    %2 = tpu.matmul %0, %1, %cst {dimension_numbers = #tpu.dot_dimension_numbers<[1], [0], [0], [1], [0, 0, 1, 1], [], []>} : vector<32x1024xbf16>, vector<1024x128xbf16>, vector<32x128xf32> -> vector<32x128xf32>
    %c0_3 = arith.constant 0 : index
    %c0_4 = arith.constant 0 : index
    %3 = vector.load %arg3[%c0_3, %c0_4] : memref<1x128xf32, #tpu.memory_space<vmem>>, vector<1x128xf32>
    %4 = vector.broadcast %3 : vector<1x128xf32> to vector<32x128xf32>
    %5 = arith.addf %2, %4 : vector<32x128xf32>
    %c0_5 = arith.constant 0 : index
    %c0_6 = arith.constant 0 : index
    %6 = vector.load %arg4[%c0_5, %c0_6] : memref<32x128xf32, #tpu.memory_space<vmem>>, vector<32x128xf32>
    tpu.vector_store %arg4[%c0_5, %c0_6], %5 {strides = array<i32>} : memref<32x128xf32, #tpu.memory_space<vmem>>, vector<32x128xf32>,
    return
  }
  func.func @transform_0(%arg0: i32) -> (i32, i32) {
    %c0_i32 = arith.constant 0 : i32
    %c0_i32_0 = arith.constant 0 : i32
    return %arg0, %c0_i32 : i32, i32
  }
  func.func @transform_1(%arg0: i32) -> (i32, i32) {
    %c0_i32 = arith.constant 0 : i32
    %c0_i32_0 = arith.constant 0 : i32
    %c0_i32_1 = arith.constant 0 : i32
    return %c0_i32, %c0_i32_0 : i32, i32
  }
  func.func @transform_2(%arg0: i32) -> (i32, i32) {
    %c0_i32 = arith.constant 0 : i32
    %c0_i32_0 = arith.constant 0 : i32
    %c0_i32_1 = arith.constant 0 : i32
    return %c0_i32, %c0_i32_0 : i32, i32
  }
  func.func @transform_3(%arg0: i32) -> (i32, i32) {
    %c0_i32 = arith.constant 0 : i32
    %c0_i32_0 = arith.constant 0 : i32
    return %arg0, %c0_i32 : i32, i32
  }
}

</mosaic_0001>

<bundles_post_ra>
// kernel: _lambda_.26
= control target key start
LH: loop header
LB: loop body
LE: loop exit
PB: predicated region body
PF: predicated region fallthrough
CT: control target
= control target key end

     0   :  { %v660_v0 = vmov 0.0   ;;  %vm661_vm0 = vmmov 0   ;;  %vm120_vm1 = vcmask 392192   ;;  %s805_s1 = inlined_call_operand.vmem [shape: bf16[48,128], index: 1, kind: input, shape index: {}]   ;;  %s806_s0 = inlined_call_operand.vmem [shape: bf16[168,48], index: 0, kind: input, shape index: {}]   ;;  %s807_s2 = inlined_call_operand.vmem [shape: f32[1,128], index: 2, kind: input, shape index: {}]   ;;  %s808_s3 = inlined_call_operand.vmem [shape: bf16[168,128], index: 3, kind: output, shape index: {}]  }
   0x1   :  { %588 = vmatprep.subr.bf16.mxu0 %v660_v0  ;;  %v646_v1 = vld [vmem:[%s805_s1] sm:$0xff]   ;;  %638 = vmatprep.subr.bf16.mxu1 %v660_v0  ;;  %v647_v2 = vld [vmem:[%s805_s1 + $0x8] sm:$0xff]   ;;  %v648_v3 = vld [vmem:[%s805_s1 + $0x10] sm:$0xff]  }
   0x2   :  { %594 = vmatprep.mubr.msk.bf16.mxu0 %vm661_vm0, %v660_v0  ;;  %618 = vmatprep.mubr.msk.bf16.mxu1 %vm661_vm0, %v660_v0  ;;  %v649_v4 = vld [vmem:[%s806_s0] sm:$0xff]   ;;  %v650_v5 = vld [vmem:[%s806_s0 + $0x30] sm:$0xff]   ;;  %v651_v6 = vld [vmem:[%s806_s0 + $0x8] sm:$0xff]  }
   0x3   :  { %589 = vmatpush3.bf16.msra.mxu0 %v646_v1  ;;  %641 = vmatpush3.bf16.msra.mxu1 %v646_v1  ;;  %v652_v7 = vld [vmem:[%s806_s0 + $0x38] sm:$0xff]   ;;  %v653_v8 = vld [vmem:[%s806_s0 + $0x10] sm:$0xff]   ;;  %v654_v9 = vld [vmem:[%s806_s0 + $0x40] sm:$0xff]  }
   0x4   :  { %590 = vmatprep.subr.bf16.mxu0 %v660_v0  ;;  %639 = vmatprep.subr.bf16.mxu1 %v660_v0  ;;  %v655_v10 = vld [vmem:[%s806_s0 + $0x18] sm:$0xff]   ;;  %v656_v11 = vld [vmem:[%s806_s0 + $0x48] sm:$0xff]   ;;  %v657_v12 = vld [vmem:[%s806_s0 + $0x20] sm:$0xff]  }
   0x5   :  { %v658_v13 = vld [vmem:[%s806_s0 + $0x50] ss:$0 sps:$4 sm:$0xff]   ;;  %v659_v14 = vld [vmem:[%s806_s0 + $0x28] sm:$0xff]   ;;  %v749_v15 = vld [vmem:[%s807_s2] ss:$0 sm:$0xff] }
   0x7   :  { %591 = vmatpush3.bf16.msra.mxu0 %v647_v2  ;;  %642 = vmatpush3.bf16.msra.mxu1 %v647_v2 }
   0x8   :  { %592 = vmatprep.subr.bf16.mxu0 %v660_v0  ;;  %640 = vmatprep.subr.bf16.mxu1 %v660_v0 }
   0xb   :  { %593 = vmatpush3.bf16.msra.mxu0 %v648_v3  ;;  %643 = vmatpush3.bf16.msra.mxu1 %v648_v3 }
   0xe   :  { %595 = vmatmul.mubr.msk.bf16.vlgmr.msra.gmra.mrb[0].mxu0 %vm120_vm1, %v649_v4  ;;  %619 = vmatmul.mubr.msk.bf16.vlgmr.msra.gmra.mrb[0].mxu1 %vm120_vm1, %v650_v5 }
   0xf   :  { %598 = vmatprep.mubr.msk.bf16.mxu0 %vm661_vm0, %v660_v0  ;;  %622 = vmatprep.mubr.msk.bf16.mxu1 %vm661_vm0, %v660_v0 }
  0x16   :  { %599 = vmatmul.mubr.msk.bf16.gmra.mrb[4].mxu0 %vm120_vm1, %v651_v6  ;;  %623 = vmatmul.mubr.msk.bf16.gmra.mrb[4].mxu1 %vm120_vm1, %v652_v7 }
  0x17   :  { %602 = vmatprep.mubr.msk.bf16.mxu0 %vm661_vm0, %v660_v0  ;;  %626 = vmatprep.mubr.msk.bf16.mxu1 %vm661_vm0, %v660_v0 }
  0x1e   :  { %603 = vmatmul.mubr.msk.bf16.gmra.mrb[8].mxu0 %vm120_vm1, %v653_v8  ;;  %627 = vmatmul.mubr.msk.bf16.gmra.mrb[8].mxu1 %vm120_vm1, %v654_v9 }
  0x1f   :  { %606 = vmatprep.mubr.msk.bf16.mxu0 %vm661_vm0, %v660_v0  ;;  %630 = vmatprep.mubr.msk.bf16.mxu1 %vm661_vm0, %v660_v0 }
  0x26   :  { %607 = vmatmul.mubr.msk.bf16.gmra.mrb[12].mxu0 %vm120_vm1, %v655_v10  ;;  %631 = vmatmul.mubr.msk.bf16.gmra.mrb[12].mxu1 %vm120_vm1, %v656_v11 }
  0x27   :  { %610 = vmatprep.mubr.msk.bf16.mxu0 %vm661_vm0, %v660_v0  ;;  %634 = vmatprep.mubr.msk.bf16.mxu1 %vm661_vm0, %v660_v0 }
  0x2e   :  { %611 = vmatmul.mubr.msk.bf16.gmra.mrb[16].mxu0 %vm120_vm1, %v657_v12  ;;  %635 = vmatmul.mubr.msk.bf16.gmra.mrb[16].mxu1 %vm120_vm1, %v658_v13 }
  0x2f   :  { %614 = vmatprep.mubr.msk.bf16.mxu0 %vm661_vm0, %v660_v0 }
  0x36   :  { %615 = vmatmul.mubr.msk.bf16.gmra.mrb[20].mxu0 %vm120_vm1, %v659_v14 }
  0xe1   :  { %v188_v16 = vpop.f32.mrb[0].mxu0  ;;  %v236_v17 = vpop.f32.mrb[0].mxu1 }
  0xe2   :  { %v189_v18 = vadd.f32 %v749_v15, %v188_v16  ;;  %v596_v19 = vpop.f32.mrb[1].mxu0  ;;  %v237_v20 = vadd.f32 %v749_v15, %v236_v17  ;;  %v620_v21 = vpop.f32.mrb[1].mxu1 }
  0xe3   :  { %v191_v22 = vpop.f32.mrb[2].mxu0  ;;  %v239_v23 = vpop.f32.mrb[2].mxu1 }
  0xe4   :  { %v295_v24 = vmul.f32 0.2, %v189_v18  ;;  %v192_v25 = vadd.f32 %v749_v15, %v191_v22  ;;  %v597_v26 = vpop.f32.mrb[3].mxu0  ;;  %vm286_vm2 = vcmp.gt.f32.partialorder %v237_v20, 0.0  ;;  %v621_v27 = vpop.f32.mrb[3].mxu1  ;;  %vm274_vm3 = vcmp.gt.f32.partialorder %v189_v18, 0.0 }
  0xe5   :  { %v307_v28 = vmul.f32 0.2, %v237_v20  ;;  %v240_v29 = vadd.f32 %v749_v15, %v239_v23 }
  0xe6   :  { %vm275_vm4 = vcmp.gt.f32.partialorder %v192_v25, 0.0  ;;  %v296_v30 = vmul.f32 0.2, %v192_v25  ;;  %v316_v33 = vsel %vm274_vm3, %v189_v18, %v295_v24 }
  0xe7   :  { %v328_v31 = vsel %vm286_vm2, %v237_v20, %v307_v28  ;;  %vm287_vm5 = vcmp.gt.f32.partialorder %v240_v29, 0.0  ;;  %v308_v32 = vmul.f32 0.2, %v240_v29 }
  0xe8   :  { %v317_v34 = vsel %vm275_vm4, %v192_v25, %v296_v30 }
  0xe9   :  { %v518_v35 = vpack.c.bf16 %v317_v34, %v316_v33  ;;  %v196_v36 = vpop.f32.mrb[4].mxu0  ;;  %v329_v37 = vsel %vm287_vm5, %v240_v29, %v308_v32  ;;  %v244_v38 = vpop.f32.mrb[4].mxu1 }
  0xea   :  { %v197_v39 = vadd.f32 %v749_v15, %v196_v36  ;;  %v548_v40 = vpack.c.bf16 %v329_v37, %v328_v31  ;;  %v600_v41 = vpop.f32.mrb[5].mxu0  ;;  %v245_v42 = vadd.f32 %v749_v15, %v244_v38  ;;  %v624_v43 = vpop.f32.mrb[5].mxu1 }
  0xeb   :  { %519 = vst [vmem:[%s808_s3] sm:$0xff] %v518_v35   ;;  %v199_v44 = vpop.f32.mrb[6].mxu0  ;;  %v247_v45 = vpop.f32.mrb[6].mxu1 }
  0xec   :  { %v297_v46 = vmul.f32 0.2, %v197_v39  ;;  %570 = vst [vmem:[%s808_s3 + $0x30] sm:$0xff] %v548_v40   ;;  %v200_v47 = vadd.f32 %v749_v15, %v199_v44  ;;  %v601_v48 = vpop.f32.mrb[7].mxu0  ;;  %vm288_vm6 = vcmp.gt.f32.partialorder %v245_v42, 0.0  ;;  %v625_v49 = vpop.f32.mrb[7].mxu1  ;;  %v248_v51 = vadd.f32 %v749_v15, %v247_v45 }
  0xed   :  { %vm276_vm7 = vcmp.gt.f32.partialorder %v197_v39, 0.0  ;;  %v309_v50 = vmul.f32 0.2, %v245_v42 }
  0xee   :  { %vm277_vm8 = vcmp.gt.f32.partialorder %v200_v47, 0.0  ;;  %v298_v52 = vmul.f32 0.2, %v200_v47  ;;  %vm289_vm9 = vcmp.gt.f32.partialorder %v248_v51, 0.0  ;;  %v310_v54 = vmul.f32 0.2, %v248_v51 }
  0xef   :  { %v330_v53 = vsel %vm288_vm6, %v245_v42, %v309_v50  ;;  %v318_v55 = vsel %vm276_vm7, %v197_v39, %v297_v46 }
  0xf0   :  { %v319_v56 = vsel %vm277_vm8, %v200_v47, %v298_v52  ;;  %v331_v59 = vsel %vm289_vm9, %v248_v51, %v310_v54 }
  0xf1   :  { %v523_v57 = vpack.c.bf16 %v319_v56, %v318_v55  ;;  %v204_v58 = vpop.f32.mrb[8].mxu0  ;;  %v252_v60 = vpop.f32.mrb[8].mxu1  ;;  %v553_v62 = vpack.c.bf16 %v331_v59, %v330_v53 }
  0xf2   :  { %v205_v61 = vadd.f32 %v749_v15, %v204_v58  ;;  %v604_v63 = vpop.f32.mrb[9].mxu0  ;;  %v253_v0 = vadd.f32 %v749_v15, %v252_v60  ;;  %v628_v1 = vpop.f32.mrb[9].mxu1 }
  0xf3   :  { %565 = vst [vmem:[%s808_s3 + $0x8] sm:$0xff] %v523_v57   ;;  %v207_v2 = vpop.f32.mrb[10].mxu0  ;;  %v255_v3 = vpop.f32.mrb[10].mxu1  ;;  %571 = vst [vmem:[%s808_s3 + $0x38] sm:$0xff] %v553_v62  }
  0xf4   :  { %v299_v4 = vmul.f32 0.2, %v205_v61  ;;  %v208_v5 = vadd.f32 %v749_v15, %v207_v2  ;;  %v605_v6 = vpop.f32.mrb[11].mxu0  ;;  %vm290_vm10 = vcmp.gt.f32.partialorder %v253_v0, 0.0  ;;  %v629_v7 = vpop.f32.mrb[11].mxu1  ;;  %vm278_vm11 = vcmp.gt.f32.partialorder %v205_v61, 0.0 }
  0xf5   :  { %v311_v8 = vmul.f32 0.2, %v253_v0  ;;  %v256_v9 = vadd.f32 %v749_v15, %v255_v3 }
  0xf6   :  { %vm279_vm12 = vcmp.gt.f32.partialorder %v208_v5, 0.0  ;;  %v300_v10 = vmul.f32 0.2, %v208_v5  ;;  %v320_v13 = vsel %vm278_vm11, %v205_v61, %v299_v4 }
  0xf7   :  { %v332_v11 = vsel %vm290_vm10, %v253_v0, %v311_v8  ;;  %vm291_vm13 = vcmp.gt.f32.partialorder %v256_v9, 0.0  ;;  %v312_v12 = vmul.f32 0.2, %v256_v9 }
  0xf8   :  { %v321_v14 = vsel %vm279_vm12, %v208_v5, %v300_v10 }
  0xf9   :  { %v528_v16 = vpack.c.bf16 %v321_v14, %v320_v13  ;;  %v212_v17 = vpop.f32.mrb[12].mxu0  ;;  %v333_v18 = vsel %vm291_vm13, %v256_v9, %v312_v12  ;;  %v260_v19 = vpop.f32.mrb[12].mxu1 }
  0xfa   :  { %v213_v20 = vadd.f32 %v749_v15, %v212_v17  ;;  %v558_v21 = vpack.c.bf16 %v333_v18, %v332_v11  ;;  %v608_v22 = vpop.f32.mrb[13].mxu0  ;;  %v261_v23 = vadd.f32 %v749_v15, %v260_v19  ;;  %v632_v24 = vpop.f32.mrb[13].mxu1 }
  0xfb   :  { %566 = vst [vmem:[%s808_s3 + $0x10] sm:$0xff] %v528_v16   ;;  %v215_v25 = vpop.f32.mrb[14].mxu0  ;;  %v263_v26 = vpop.f32.mrb[14].mxu1 }
  0xfc   :  { %v301_v27 = vmul.f32 0.2, %v213_v20  ;;  %572 = vst [vmem:[%s808_s3 + $0x40] sm:$0xff] %v558_v21   ;;  %v216_v28 = vadd.f32 %v749_v15, %v215_v25  ;;  %v609_v29 = vpop.f32.mrb[15].mxu0  ;;  %vm292_vm14 = vcmp.gt.f32.partialorder %v261_v23, 0.0  ;;  %v633_v30 = vpop.f32.mrb[15].mxu1  ;;  %v264_v32 = vadd.f32 %v749_v15, %v263_v26 }
  0xfd   :  { %vm280_vm15 = vcmp.gt.f32.partialorder %v213_v20, 0.0  ;;  %v313_v31 = vmul.f32 0.2, %v261_v23 }
  0xfe   :  { %vm281_vm0 = vcmp.gt.f32.partialorder %v216_v28, 0.0  ;;  %v302_v33 = vmul.f32 0.2, %v216_v28  ;;  %vm293_vm1 = vcmp.gt.f32.partialorder %v264_v32, 0.0  ;;  %v314_v35 = vmul.f32 0.2, %v264_v32 }
  0xff   :  { %v334_v34 = vsel %vm292_vm14, %v261_v23, %v313_v31  ;;  %v322_v36 = vsel %vm280_vm15, %v213_v20, %v301_v27 }
 0x100   :  { %v323_v37 = vsel %vm281_vm0, %v216_v28, %v302_v33  ;;  %v335_v40 = vsel %vm293_vm1, %v264_v32, %v314_v35 }
 0x101   :  { %v533_v38 = vpack.c.bf16 %v323_v37, %v322_v36  ;;  %v220_v39 = vpop.f32.mrb[16].mxu0  ;;  %v268_v41 = vpop.f32.mrb[16].mxu1  ;;  %v563_v43 = vpack.c.bf16 %v335_v40, %v334_v34 }
 0x102   :  { %v221_v42 = vadd.f32 %v749_v15, %v220_v39  ;;  %v612_v44 = vpop.f32.mrb[17].mxu0  ;;  %v269_v45 = vadd.f32 %v749_v15, %v268_v41  ;;  %v636_v46 = vpop.f32.mrb[17].mxu1 }
 0x103   :  { %567 = vst [vmem:[%s808_s3 + $0x18] sm:$0xff] %v533_v38   ;;  %v223_v47 = vpop.f32.mrb[18].mxu0  ;;  %v271_v48 = vpop.f32.mrb[18].mxu1  ;;  %573 = vst [vmem:[%s808_s3 + $0x48] sm:$0xff] %v563_v43  }
 0x104   :  { %v303_v49 = vmul.f32 0.2, %v221_v42  ;;  %v224_v50 = vadd.f32 %v749_v15, %v223_v47  ;;  %v613_v51 = vpop.f32.mrb[19].mxu0  ;;  %vm294_vm2 = vcmp.gt.f32.partialorder %v269_v45, 0.0  ;;  %v637_v52 = vpop.f32.mrb[19].mxu1  ;;  %vm282_vm3 = vcmp.gt.f32.partialorder %v221_v42, 0.0 }
 0x105   :  { %v315_v53 = vmul.f32 0.2, %v269_v45 }
 0x106   :  { %vm283_vm4 = vcmp.gt.f32.partialorder %v224_v50, 0.0  ;;  %v304_v54 = vmul.f32 0.2, %v224_v50  ;;  %v324_v56 = vsel %vm282_vm3, %v221_v42, %v303_v49 }
 0x107   :  { %v336_v55 = vsel %vm294_vm2, %v269_v45, %v315_v53 }
 0x108   :  { %v325_v57 = vsel %vm283_vm4, %v224_v50, %v304_v54  ;;  %v514_v58 = vpack.c.bf16 %v336_v55, %v336_v55 }
 0x109   :  { %v538_v59 = vpack.c.bf16 %v325_v57, %v324_v56  ;;  %v228_v60 = vpop.f32.mrb[20].mxu0 }
 0x10a   :  { %442 = vst [vmem:[%s808_s3 + $0x50] sm:$0xf] %v514_v58  ;;  %v229_v61 = vadd.f32 %v749_v15, %v228_v60  ;;  %v616_v62 = vpop.f32.mrb[21].mxu0 }
 0x10b   :  { %568 = vst [vmem:[%s808_s3 + $0x20] sm:$0xff] %v538_v59   ;;  %v231_v63 = vpop.f32.mrb[22].mxu0 }
 0x10c   :  { %v305_v0 = vmul.f32 0.2, %v229_v61  ;;  %v232_v1 = vadd.f32 %v749_v15, %v231_v63  ;;  %v617_v2 = vpop.f32.mrb[23].mxu0  ;;  %vm284_vm5 = vcmp.gt.f32.partialorder %v229_v61, 0.0 }
 0x10e   :  { %vm285_vm6 = vcmp.gt.f32.partialorder %v232_v1, 0.0  ;;  %v306_v3 = vmul.f32 0.2, %v232_v1  ;;  %v326_v4 = vsel %vm284_vm5, %v229_v61, %v305_v0 }
 0x110   :  { %v327_v5 = vsel %vm285_vm6, %v232_v1, %v306_v3 }
 0x111   :  { %v543_v6 = vpack.c.bf16 %v327_v5, %v326_v4 }
 0x113   :  { %569 = vst [vmem:[%s808_s3 + $0x28] sm:$0xff] %v543_v6  }

// kernel: _lambda_.27
= control target key start
LH: loop header
LB: loop body
LE: loop exit
PB: predicated region body
PF: predicated region fallthrough
CT: control target
= control target key end

     0   :  { %s439_s1 = inlined_call_operand.vmem [shape: bf16[128,128], index: 1, kind: input, shape index: {}]   ;;  %s440_s0 = inlined_call_operand.vmem [shape: bf16[56,128], index: 0, kind: input, shape index: {}]   ;;  %s441_s2 = inlined_call_operand.vmem [shape: bf16[56,128], index: 2, kind: output, shape index: {0}]   ;;  %s442_s3 = inlined_call_operand.vmem [shape: f32[1,128], index: 3, kind: output, shape index: {1}]   ;;  %s443_s4 = inlined_call_operand.vmem [shape: f32[1,128], index: 4, kind: output, shape index: {2}]  }
   0x1   :  { %v348_v0 = vld [vmem:[%s439_s1] sm:$0xff]   ;;  %v349_v1 = vld [vmem:[%s439_s1 + $0x8] sm:$0xff]   ;;  %v350_v2 = vld [vmem:[%s439_s1 + $0x10] sm:$0xff]  }
   0x2   :  { %308 = vmatprep.subr.bf16.mxu0 %v348_v0  ;;  %332 = vmatprep.subr.bf16.mxu1 %v348_v0  ;;  %v351_v3 = vld [vmem:[%s439_s1 + $0x18] sm:$0xff]   ;;  %v356_v4 = vld [vmem:[%s440_s0] sm:$0xff]   ;;  %v358_v5 = vld [vmem:[%s440_s0 + $0x10] sm:$0xff]  }
   0x3   :  { %309 = vmatpush3.bf16.msra.mxu0 %v348_v0  ;;  %340 = vmatpush3.bf16.msra.mxu1 %v348_v0  ;;  %v352_v6 = vld [vmem:[%s439_s1 + $0x20] sm:$0xff]   ;;  %v353_v7 = vld [vmem:[%s439_s1 + $0x28] sm:$0xff]   ;;  %v354_v8 = vld [vmem:[%s439_s1 + $0x30] sm:$0xff]  }
   0x4   :  { %310 = vmatprep.subr.bf16.mxu0 %v349_v1  ;;  %333 = vmatprep.subr.bf16.mxu1 %v349_v1  ;;  %v355_v9 = vld [vmem:[%s439_s1 + $0x38] sm:$0xff]   ;;  %v357_v10 = vld [vmem:[%s440_s0 + $0x8] sm:$0xff]  }
   0x5   :  { %324 = vmatprep.mubr.bf16.mxu0 %v356_v4  ;;  %328 = vmatprep.mubr.bf16.mxu1 %v358_v5  ;;  %v359_v11 = vld [vmem:[%s440_s0 + $0x18] ss:$0 sps:$4 sm:$0xff]  }
   0x7   :  { %311 = vmatpush3.bf16.msra.mxu0 %v349_v1  ;;  %341 = vmatpush3.bf16.msra.mxu1 %v349_v1 }
   0x8   :  { %312 = vmatprep.subr.bf16.mxu0 %v350_v2  ;;  %334 = vmatprep.subr.bf16.mxu1 %v350_v2 }
   0xb   :  { %313 = vmatpush3.bf16.msra.mxu0 %v350_v2  ;;  %342 = vmatpush3.bf16.msra.mxu1 %v350_v2 }
   0xc   :  { %314 = vmatprep.subr.bf16.mxu0 %v351_v3  ;;  %335 = vmatprep.subr.bf16.mxu1 %v351_v3 }
   0xf   :  { %315 = vmatpush3.bf16.msra.mxu0 %v351_v3  ;;  %343 = vmatpush3.bf16.msra.mxu1 %v351_v3 }
  0x10   :  { %316 = vmatprep.subr.bf16.mxu0 %v352_v6  ;;  %336 = vmatprep.subr.bf16.mxu1 %v352_v6 }
  0x13   :  { %317 = vmatpush3.bf16.msra.mxu0 %v352_v6  ;;  %344 = vmatpush3.bf16.msra.mxu1 %v352_v6 }
  0x14   :  { %318 = vmatprep.subr.bf16.mxu0 %v353_v7  ;;  %337 = vmatprep.subr.bf16.mxu1 %v353_v7 }
  0x17   :  { %319 = vmatpush3.bf16.msra.mxu0 %v353_v7  ;;  %345 = vmatpush3.bf16.msra.mxu1 %v353_v7 }
  0x18   :  { %320 = vmatprep.subr.bf16.mxu0 %v354_v8  ;;  %338 = vmatprep.subr.bf16.mxu1 %v354_v8 }
  0x1b   :  { %321 = vmatpush3.bf16.msra.mxu0 %v354_v8  ;;  %346 = vmatpush3.bf16.msra.mxu1 %v354_v8 }
  0x1c   :  { %322 = vmatprep.subr.bf16.mxu0 %v355_v9  ;;  %339 = vmatprep.subr.bf16.mxu1 %v355_v9 }
  0x1f   :  { %323 = vmatpush3.bf16.msra.mxu0 %v355_v9  ;;  %347 = vmatpush3.bf16.msra.mxu1 %v355_v9 }
  0x22   :  { %325 = vmatmul.mubr.bf16.vlgmr.msra.gmra.mrb[0].mxu0 %v357_v10  ;;  %329 = vmatmul.mubr.bf16.vlgmr.msra.gmra.mrb[0].mxu1 %v359_v11 }
  0xf5   :  { %v326_v12 = vpop.f32.mrb[0].mxu0  ;;  %v330_v13 = vpop.f32.mrb[0].mxu1 }
  0xf6   :  { %v142_v14 = vpop.f32.mrb[1].mxu0  ;;  %v278_v15 = vpack.c.bf16 %v330_v13, %v330_v13  ;;  %v158_v16 = vpop.f32.mrb[1].mxu1  ;;  %v187_v27 = vmul.f32 %v326_v12, %v326_v12  ;;  %v191_v39 = vmul.f32 %v330_v13, %v330_v13 }
  0xf7   :  { %v327_v17 = vpop.f32.mrb[2].mxu0  ;;  %v331_v18 = vpop.f32.mrb[2].mxu1  ;;  %v185_v22 = vmul.f32 %v142_v14, %v142_v14  ;;  %v189_v33 = vmul.f32 %v158_v16, %v158_v16 }
  0xf8   :  { %v287_v19 = vpack.c.bf16 %v327_v17, %v326_v12  ;;  %v145_v20 = vpop.f32.mrb[3].mxu0  ;;  %240 = vst [vmem:[%s441_s2 + $0x18] sm:$0xf] %v278_v15  ;;  %v161_v21 = vpop.f32.mrb[3].mxu1  ;;  %v188_v30 = vmul.f32 %v327_v17, %v327_v17 }
  0xf9   :  { %v172_v23 = vadd.f32 %v145_v20, %v142_v14  ;;  %v186_v24 = vmul.f32 %v145_v20, %v145_v20  ;;  %v282_v25 = vpack.c.bf16 %v145_v20, %v142_v14  ;;  %v292_v26 = vpack.c.bf16 %v161_v21, %v158_v16 }
  0xfa   :  { %294 = vst [vmem:[%s441_s2 + $0x8] sm:$0xff] %v287_v19   ;;  %v190_v38 = vmul.f32 %v161_v21, %v161_v21 }
  0xfb   :  { %v173_v28 = vadd.f32 %v326_v12, %v172_v23  ;;  %v192_v29 = vadd.f32 %v186_v24, %v185_v22  ;;  %283 = vst [vmem:[%s441_s2] sm:$0xff] %v282_v25   ;;  %295 = vst [vmem:[%s441_s2 + $0x10] sm:$0xff] %v292_v26  }
  0xfd   :  { %v193_v31 = vadd.f32 %v192_v29, %v187_v27  ;;  %v174_v32 = vadd.f32 %v327_v17, %v173_v28 }
  0xff   :  { %v175_v34 = vadd.f32 %v174_v32, %v158_v16  ;;  %v194_v35 = vadd.f32 %v193_v31, %v188_v30 }
 0x101   :  { %v195_v36 = vadd.f32 %v194_v35, %v189_v33  ;;  %v176_v37 = vadd.f32 %v175_v34, %v161_v21 }
 0x103   :  { %v177_v40 = vadd.f32 %v330_v13, %v176_v37  ;;  %v196_v41 = vadd.f32 %v195_v36, %v190_v38 }
 0x105   :  { %v178_v42 = vrot.slane %v177_v40, 4  ;;  %v197_v43 = vadd.f32 %v196_v41, %v191_v39 }
 0x107   :  { %v179_v44 = vadd.f32 %v178_v42, %v177_v40  ;;  %v198_v45 = vrot.slane %v197_v43, 4 }
 0x109   :  { %v180_v46 = vrot.slane %v179_v44, 2  ;;  %v199_v47 = vadd.f32 %v198_v45, %v197_v43 }
 0x10b   :  { %v181_v48 = vadd.f32 %v180_v46, %v179_v44  ;;  %v200_v49 = vrot.slane %v199_v47, 2 }
 0x10d   :  { %v182_v50 = vrot.slane %v181_v48, 1  ;;  %v201_v51 = vadd.f32 %v200_v49, %v199_v47 }
 0x10f   :  { %v183_v52 = vadd.f32 %v182_v50, %v181_v48  ;;  %v202_v53 = vrot.slane %v201_v51, 1 }
 0x111   :  { %184 = vst [vmem:[%s442_s3] sm:$0x1] %v183_v52  ;;  %v203_v54 = vadd.f32 %v202_v53, %v201_v51 }
 0x113   :  { %204 = vst [vmem:[%s443_s4] sm:$0x1] %v203_v54 }

// kernel: _lambda_.34
= control target key start
LH: loop header
LB: loop body
LE: loop exit
PB: predicated region body
PF: predicated region fallthrough
CT: control target
= control target key end

     0   :  { %s464_s12 = smov 0   ;;  %s466_s13 = smov 0   ;;  %s503_s0 = inlined_call_operand.vmem [shape: f32[6,2,2,8,9], index: 0, kind: input, shape index: {}]   ;;  %s504_s1 = inlined_call_operand.vmem [shape: f32[6,2,8,9], index: 1, kind: input, shape index: {}]   ;;  %s505_s2 = inlined_call_operand.vmem [shape: f32[8,8], index: 2, kind: input, shape index: {}]   ;;  %s506_s3 = inlined_call_operand.vmem [shape: f32[6,8,8], index: 3, kind: output, shape index: {}]  }
   0x1   :  { %s468_s14 = smov 0  }
   0x2 LB: > { %s25_s15 = sadd.s32 1, %s437_s13  ;;  %p384_p0 = scmp.ge.s32.totalorder %s441_s14, 1  ;;  %s441_s14 = sphi %s468_s14, %s13_s14   ;;  %s437_s13 = sphi %s466_s13, %s508_s13   ;;  %s433_s12 = sphi %s464_s12, %s507_s12  }
   0x3   : > { %p27_p1 = scmp.ge.s32.totalorder %s25_s15, 6  ;;  %p180_p2 = scmp.lt.s32.totalorder %s441_s14, 7 }
   0x5   : > { %s510_s15 = smov (%p27_p1, %s25_s15), 0  ;;  %p181_p3 = pnand %p384_p0, %p180_p2 }
   0x6   : > { %p221_p4 = scmp.lt.s32.totalorder (!%p181_p3), %s433_s12, 5  ;;  %s443_s24 = smov (!%p181_p3), 127   ;;  %v254_v11 = vld [vmem:[%s505_s2] sm:$0xff] (!%p181_p3)  ;;  %vm266_vm0 = vcmask (!%p181_p3), 64512  }
   0x7   : > { %184 = sbr.rel (%p181_p3) target bundleno = 142 (0x8e), region = 32 }
   0xe   : > { %s512_s12 = smov (!%p221_p4, %s433_s12), 5 }
   0xf   : > { %s392_s16 = sshll.u32 %s512_s12, 5  ;;  %s393_s17 = sshll.u32 %s512_s12, 4 }
  0x10   : > { %s228_s20 = scalar_lea.vmem %s503_s0, %s392_s16  ;;  %s236_s23 = scalar_lea.vmem %s504_s1, %s393_s17 }
  0x11   : > { %v248_v0 = vld [vmem:[%s228_s20] sm:$0xff]  ;;  %v250_v1 = vld [vmem:[%s228_s20 + $0x10] sm:$0xff]  ;;  %v253_v3 = vld [vmem:[%s236_s23 + $0x8] sm:$0xff]  ;;  %s389_s25 = sshll.u32 %s512_s12, 3 }
  0x12   : > { %v252_v2 = vld [vmem:[%s236_s23] sm:$0xff]  ;;  %v255_v4 = vadd.f32 %v250_v1, %v248_v0  ;;  %v249_v5 = vld [vmem:[%s228_s20 + $0x8] sm:$0xff]  ;;  %v251_v6 = vld [vmem:[%s228_s20 + $0x18] sm:$0xff]  ;;  %s247_s30 = scalar_lea.vmem %s506_s3, %s389_s25 }
  0x13   : > { %v256_v7 = vadd.f32 %v251_v6, %v249_v5 }
  0x14   : > { %v257_v8 = vadd.f32 %v255_v4, %v252_v2 }
  0x15   : > { %v258_v9 = vadd.f32 %v256_v7, %v253_v3 }
  0x16   : > { %261 = vrot.lane.b32.xlu0 %v257_v8, %s443_s24 }
  0x17   : > { %v259_v10 = vadd.f32 %v258_v9, %v257_v8 }
  0x88   : > { %v262_v12 = vpop.permute.xlu0 %261 }
  0x89   : > { %v264_v13 = vadd.f32 %v262_v12, %v259_v10 }
  0x8b   : > { %v265_v14 = vmul.f32 %v264_v13, %v254_v11 }
  0x8d   : > { %267 = vst.msk [vmem:[%s247_s30] sm:$0xff] %vm266_vm0, %v265_v14 }
  0x8e PF: > { %s13_s14 = sadd.s32 1, %s441_s14   ;;  %s507_s12 = smov %s437_s13 }
  0x8f   : > { %p10_p5 = scmp.ge.s32.totalorder %s13_s14, 8   ;;  %s508_s13 = smov %s510_s15 }
  0x91   :  { %12 = sbr.rel (!%p10_p5) target bundleno = 2 (0x2), region = 68 }

// kernel: _lambda_.43
= control target key start
LH: loop header
LB: loop body
LE: loop exit
PB: predicated region body
PF: predicated region fallthrough
CT: control target
= control target key end

     0   :  { %s464_s12 = smov 0   ;;  %s466_s13 = smov 0   ;;  %s503_s0 = inlined_call_operand.vmem [shape: f32[6,2,2,4,5], index: 0, kind: input, shape index: {}]   ;;  %s504_s1 = inlined_call_operand.vmem [shape: f32[6,2,4,5], index: 1, kind: input, shape index: {}]   ;;  %s505_s2 = inlined_call_operand.vmem [shape: f32[4,4], index: 2, kind: input, shape index: {}]   ;;  %s506_s3 = inlined_call_operand.vmem [shape: f32[6,4,4], index: 3, kind: output, shape index: {}]  }
   0x1   :  { %s468_s14 = smov 0  }
   0x2 LB: > { %s25_s15 = sadd.s32 1, %s437_s13  ;;  %p384_p0 = scmp.ge.s32.totalorder %s441_s14, 1  ;;  %s441_s14 = sphi %s468_s14, %s13_s14   ;;  %s437_s13 = sphi %s466_s13, %s508_s13   ;;  %s433_s12 = sphi %s464_s12, %s507_s12  }
   0x3   : > { %p27_p1 = scmp.ge.s32.totalorder %s25_s15, 6  ;;  %p180_p2 = scmp.lt.s32.totalorder %s441_s14, 7 }
   0x5   : > { %s510_s15 = smov (%p27_p1, %s25_s15), 0  ;;  %p181_p3 = pnand %p384_p0, %p180_p2 }
   0x6   : > { %p221_p4 = scmp.lt.s32.totalorder (!%p181_p3), %s433_s12, 5  ;;  %s443_s24 = smov (!%p181_p3), 127   ;;  %v254_v11 = vld [vmem:[%s505_s2] sm:$0xf] (!%p181_p3)  ;;  %vm266_vm0 = vcmask (!%p181_p3), 27648  }
   0x7   : > { %184 = sbr.rel (%p181_p3) target bundleno = 142 (0x8e), region = 32 }
   0xe   : > { %s512_s12 = smov (!%p221_p4, %s433_s12), 5 }
   0xf   : > { %s392_s16 = sshll.u32 %s512_s12, 4  ;;  %s393_s17 = sshll.u32 %s512_s12, 3 }
  0x10   : > { %s228_s20 = scalar_lea.vmem %s503_s0, %s392_s16  ;;  %s236_s23 = scalar_lea.vmem %s504_s1, %s393_s17 }
  0x11   : > { %v248_v0 = vld [vmem:[%s228_s20] sm:$0xf]  ;;  %v250_v1 = vld [vmem:[%s228_s20 + $0x8] sm:$0xf]  ;;  %v249_v4 = vld [vmem:[%s228_s20 + $0x4] sm:$0xf] }
  0x12   : > { %v252_v2 = vld [vmem:[%s236_s23] sm:$0xf]  ;;  %v255_v3 = vadd.f32 %v250_v1, %v248_v0  ;;  %v253_v5 = vld [vmem:[%s236_s23 + $0x4] sm:$0xf]  ;;  %v251_v6 = vld [vmem:[%s228_s20 + $0xc] sm:$0xf] }
  0x13   : > { %v256_v8 = vadd.f32 %v251_v6, %v249_v4  ;;  %s389_s25 = sshll.u32 %s512_s12, 2 }
  0x14   : > { %v257_v7 = vadd.f32 %v255_v3, %v252_v2  ;;  %s247_s30 = scalar_lea.vmem %s506_s3, %s389_s25 }
  0x15   : > { %v258_v9 = vadd.f32 %v256_v8, %v253_v5 }
  0x16   : > { %261 = vrot.lane.b32.xlu0 %v257_v7, %s443_s24 }
  0x17   : > { %v259_v10 = vadd.f32 %v258_v9, %v257_v7 }
  0x88   : > { %v262_v12 = vpop.permute.xlu0 %261 }
  0x89   : > { %v264_v13 = vadd.f32 %v262_v12, %v259_v10 }
  0x8b   : > { %v265_v14 = vmul.f32 %v264_v13, %v254_v11 }
  0x8d   : > { %267 = vst.msk [vmem:[%s247_s30] sm:$0xf] %vm266_vm0, %v265_v14 }
  0x8e PF: > { %s13_s14 = sadd.s32 1, %s441_s14   ;;  %s507_s12 = smov %s437_s13 }
  0x8f   : > { %p10_p5 = scmp.ge.s32.totalorder %s13_s14, 8   ;;  %s508_s13 = smov %s510_s15 }
  0x91   :  { %12 = sbr.rel (!%p10_p5) target bundleno = 2 (0x2), region = 68 }

// kernel: _lambda_.44
= control target key start
LH: loop header
LB: loop body
LE: loop exit
PB: predicated region body
PF: predicated region fallthrough
CT: control target
= control target key end

     0   :  { %vm57_vm0 = vcmask 392192   ;;  %s224_s1 = inlined_call_operand.vmem [shape: bf16[48,128], index: 1, kind: input, shape index: {}]   ;;  %s225_s0 = inlined_call_operand.vmem [shape: bf16[24,48], index: 0, kind: input, shape index: {}]   ;;  %s226_s2 = inlined_call_operand.vmem [shape: f32[1,128], index: 2, kind: input, shape index: {}]   ;;  %s227_s3 = inlined_call_operand.vmem [shape: bf16[24,128], index: 3, kind: output, shape index: {}]  }
   0x1   :  { %v175_v0 = vld [vmem:[%s224_s1] sm:$0xff]   ;;  %v176_v1 = vld [vmem:[%s224_s1 + $0x8] sm:$0xff]   ;;  %v177_v2 = vld [vmem:[%s224_s1 + $0x10] sm:$0xff]  }
   0x2   :  { %165 = vmatprep.subr.bf16.mxu0 %v175_v0  ;;  %v178_v3 = vld [vmem:[%s225_s0] sm:$0xff]   ;;  %v179_v4 = vld [vmem:[%s225_s0 + $0x8] ss:$0 sps:$4 sm:$0xff]  }
   0x3   :  { %166 = vmatpush3.bf16.msra.mxu0 %v175_v0  ;;  %171 = vmatprep.mubr.msk.bf16.mxu0 %vm57_vm0, %v178_v3  ;;  %v141_v5 = vld [vmem:[%s226_s2] ss:$0 sm:$0xff] }
   0x4   :  { %167 = vmatprep.subr.bf16.mxu0 %v176_v1 }
   0x7   :  { %168 = vmatpush3.bf16.msra.mxu0 %v176_v1 }
   0x8   :  { %169 = vmatprep.subr.bf16.mxu0 %v177_v2 }
   0xb   :  { %170 = vmatpush3.bf16.msra.mxu0 %v177_v2 }
   0xe   :  { %172 = vmatmul.mubr.msk.bf16.vlgmr.msra.gmra.mrb[0].mxu0 %vm57_vm0, %v179_v4 }
  0xe1   :  { %v173_v6 = vpop.f32.mrb[0].mxu0 }
  0xe2   :  { %v107_v7 = vadd.f32 %v173_v6, %v141_v5  ;;  %v98_v8 = vpop.f32.mrb[1].mxu0 }
  0xe3   :  { %v99_v9 = vadd.f32 %v141_v5, %v98_v8  ;;  %v174_v10 = vpop.f32.mrb[2].mxu0 }
  0xe4   :  { %vm114_vm1 = vcmp.gt.f32.partialorder %v107_v7, 0.0  ;;  %v117_v11 = vmul.f32 0.2, %v107_v7  ;;  %v101_v12 = vpop.f32.mrb[3].mxu0 }
  0xe5   :  { %v115_v13 = vmul.f32 0.2, %v99_v9  ;;  %v102_v14 = vadd.f32 %v141_v5, %v101_v12  ;;  %vm112_vm2 = vcmp.gt.f32.partialorder %v99_v9, 0.0 }
  0xe6   :  { %v120_v15 = vsel %vm114_vm1, %v107_v7, %v117_v11 }
  0xe7   :  { %v154_v16 = vpack.c.bf16 %v120_v15, %v120_v15  ;;  %vm113_vm3 = vcmp.gt.f32.partialorder %v102_v14, 0.0  ;;  %v116_v17 = vmul.f32 0.2, %v102_v14  ;;  %v118_v18 = vsel %vm112_vm2, %v99_v9, %v115_v13 }
  0xe9   :  { %136 = vst [vmem:[%s227_s3 + $0x8] sm:$0xf] %v154_v16  ;;  %v119_v19 = vsel %vm113_vm3, %v102_v14, %v116_v17 }
  0xea   :  { %v158_v20 = vpack.c.bf16 %v119_v19, %v118_v18 }
  0xec   :  { %159 = vst [vmem:[%s227_s3] sm:$0xff] %v158_v20  }

// kernel: _lambda_.45
= control target key start
LH: loop header
LB: loop body
LE: loop exit
PB: predicated region body
PF: predicated region fallthrough
CT: control target
= control target key end

     0   :  { %v196_v0 = vmov 0.0   ;;  %vm197_vm0 = vmmov 0   ;;  %s259_s1 = inlined_call_operand.vmem [shape: bf16[128,128], index: 1, kind: input, shape index: {}]   ;;  %s260_s0 = inlined_call_operand.vmem [shape: bf16[8,128], index: 0, kind: input, shape index: {}]   ;;  %s261_s2 = inlined_call_operand.vmem [shape: bf16[8,128], index: 2, kind: output, shape index: {0}]   ;;  %s262_s3 = inlined_call_operand.vmem [shape: f32[1,128], index: 3, kind: output, shape index: {1}]   ;;  %s263_s4 = inlined_call_operand.vmem [shape: f32[1,128], index: 4, kind: output, shape index: {2}]  }
   0x1   :  { %166 = vmatprep.subr.bf16.mxu0 %v196_v0  ;;  %v188_v1 = vld [vmem:[%s259_s1] sm:$0xff]   ;;  %182 = vmatprep.mubr.msk.bf16.mxu0 %vm197_vm0, %v196_v0  ;;  %v189_v2 = vld [vmem:[%s259_s1 + $0x8] sm:$0xff]   ;;  %v190_v3 = vld [vmem:[%s259_s1 + $0x10] sm:$0xff]  }
   0x2   :  { %167 = vmatpush3.bf16.msra.mxu0 %v188_v1  ;;  %v191_v4 = vld [vmem:[%s259_s1 + $0x18] sm:$0xff]   ;;  %v192_v5 = vld [vmem:[%s259_s1 + $0x20] sm:$0xff]   ;;  %v193_v6 = vld [vmem:[%s259_s1 + $0x28] sm:$0xff]  }
   0x3   :  { %168 = vmatprep.subr.bf16.mxu0 %v196_v0  ;;  %v194_v7 = vld [vmem:[%s259_s1 + $0x30] sm:$0xff]   ;;  %v195_v8 = vld [vmem:[%s259_s1 + $0x38] sm:$0xff]   ;;  %v15_v9 = vld [vmem:[%s260_s0] sm:$0xf] }
   0x6   :  { %169 = vmatpush3.bf16.msra.mxu0 %v189_v2 }
   0x7   :  { %170 = vmatprep.subr.bf16.mxu0 %v196_v0 }
   0xa   :  { %171 = vmatpush3.bf16.msra.mxu0 %v190_v3 }
   0xb   :  { %172 = vmatprep.subr.bf16.mxu0 %v196_v0 }
   0xe   :  { %173 = vmatpush3.bf16.msra.mxu0 %v191_v4 }
   0xf   :  { %174 = vmatprep.subr.bf16.mxu0 %v196_v0 }
  0x12   :  { %175 = vmatpush3.bf16.msra.mxu0 %v192_v5 }
  0x13   :  { %176 = vmatprep.subr.bf16.mxu0 %v196_v0 }
  0x16   :  { %177 = vmatpush3.bf16.msra.mxu0 %v193_v6 }
  0x17   :  { %178 = vmatprep.subr.bf16.mxu0 %v196_v0 }
  0x1a   :  { %179 = vmatpush3.bf16.msra.mxu0 %v194_v7 }
  0x1b   :  { %180 = vmatprep.subr.bf16.mxu0 %v196_v0 }
  0x1e   :  { %181 = vmatpush3.bf16.msra.mxu0 %v195_v8 }
  0x21   :  { %183 = vmatmul.mubr.bf16.vlgmr.msra.gmra.mrb[0].mxu0 %v15_v9 }
  0xf4   :  { %v114_v10 = vpop.f32.mrb[0].mxu0 }
  0xf5   :  { %v120_v11 = vrot.slane %v114_v10, 4  ;;  %v127_v12 = vmul.f32 %v114_v10, %v114_v10  ;;  %v135_v13 = vpack.c.bf16 %v114_v10, %v114_v10  ;;  %v184_v14 = vpop.f32.mrb[1].mxu0 }
  0xf6   :  { %v117_v15 = vpop.f32.mrb[2].mxu0 }
  0xf7   :  { %v121_v16 = vadd.f32 %v120_v11, %v114_v10  ;;  %v128_v17 = vrot.slane %v127_v12, 4  ;;  %136 = vst [vmem:[%s261_s2] sm:$0xf] %v135_v13  ;;  %v185_v18 = vpop.f32.mrb[3].mxu0 }
  0xf9   :  { %v122_v19 = vrot.slane %v121_v16, 2  ;;  %v129_v20 = vadd.f32 %v128_v17, %v127_v12 }
  0xfb   :  { %v123_v21 = vadd.f32 %v122_v19, %v121_v16  ;;  %v130_v22 = vrot.slane %v129_v20, 2 }
  0xfd   :  { %v124_v23 = vrot.slane %v123_v21, 1  ;;  %v131_v24 = vadd.f32 %v130_v22, %v129_v20 }
  0xff   :  { %v125_v25 = vadd.f32 %v124_v23, %v123_v21  ;;  %v132_v26 = vrot.slane %v131_v24, 1 }
 0x101   :  { %126 = vst [vmem:[%s262_s3] sm:$0x1] %v125_v25  ;;  %v133_v27 = vadd.f32 %v132_v26, %v131_v24 }
 0x103   :  { %134 = vst [vmem:[%s263_s4] sm:$0x1] %v133_v27 }

// kernel: _lambda_.35
= control target key start
LH: loop header
LB: loop body
LE: loop exit
PB: predicated region body
PF: predicated region fallthrough
CT: control target
= control target key end

     0   :  { %vm71_vm0 = vcmask 392192   ;;  %s347_s1 = inlined_call_operand.vmem [shape: bf16[48,128], index: 1, kind: input, shape index: {}]   ;;  %s348_s0 = inlined_call_operand.vmem [shape: bf16[56,48], index: 0, kind: input, shape index: {}]   ;;  %s349_s2 = inlined_call_operand.vmem [shape: f32[1,128], index: 2, kind: input, shape index: {}]   ;;  %s350_s3 = inlined_call_operand.vmem [shape: bf16[56,128], index: 3, kind: output, shape index: {}]  }
   0x1   :  { %v279_v0 = vld [vmem:[%s347_s1] sm:$0xff]   ;;  %v280_v1 = vld [vmem:[%s347_s1 + $0x8] sm:$0xff]   ;;  %v281_v2 = vld [vmem:[%s347_s1 + $0x10] sm:$0xff]  }
   0x2   :  { %259 = vmatprep.subr.bf16.mxu0 %v279_v0  ;;  %273 = vmatprep.subr.bf16.mxu1 %v279_v0  ;;  %v282_v3 = vld [vmem:[%s348_s0] sm:$0xff]   ;;  %v283_v4 = vld [vmem:[%s348_s0 + $0x10] sm:$0xff]   ;;  %v284_v5 = vld [vmem:[%s348_s0 + $0x8] sm:$0xff]  }
   0x3   :  { %260 = vmatpush3.bf16.msra.mxu0 %v279_v0  ;;  %276 = vmatpush3.bf16.msra.mxu1 %v279_v0  ;;  %v285_v6 = vld [vmem:[%s348_s0 + $0x18] ss:$0 sps:$4 sm:$0xff]   ;;  %v209_v7 = vld [vmem:[%s349_s2] ss:$0 sm:$0xff] }
   0x4   :  { %261 = vmatprep.subr.bf16.mxu0 %v280_v1  ;;  %274 = vmatprep.subr.bf16.mxu1 %v280_v1 }
   0x5   :  { %265 = vmatprep.mubr.msk.bf16.mxu0 %vm71_vm0, %v282_v3  ;;  %269 = vmatprep.mubr.msk.bf16.mxu1 %vm71_vm0, %v283_v4 }
   0x7   :  { %262 = vmatpush3.bf16.msra.mxu0 %v280_v1  ;;  %277 = vmatpush3.bf16.msra.mxu1 %v280_v1 }
   0x8   :  { %263 = vmatprep.subr.bf16.mxu0 %v281_v2  ;;  %275 = vmatprep.subr.bf16.mxu1 %v281_v2 }
   0xb   :  { %264 = vmatpush3.bf16.msra.mxu0 %v281_v2  ;;  %278 = vmatpush3.bf16.msra.mxu1 %v281_v2 }
   0xe   :  { %266 = vmatmul.mubr.msk.bf16.vlgmr.msra.gmra.mrb[0].mxu0 %vm71_vm0, %v284_v5  ;;  %270 = vmatmul.mubr.msk.bf16.vlgmr.msra.gmra.mrb[0].mxu1 %vm71_vm0, %v285_v6 }
  0xe1   :  { %v267_v8 = vpop.f32.mrb[0].mxu0  ;;  %v271_v9 = vpop.f32.mrb[0].mxu1 }
  0xe2   :  { %v127_v10 = vadd.f32 %v267_v8, %v209_v7  ;;  %v143_v11 = vadd.f32 %v271_v9, %v209_v7  ;;  %v118_v12 = vpop.f32.mrb[1].mxu0  ;;  %v134_v13 = vpop.f32.mrb[1].mxu1 }
  0xe3   :  { %v119_v14 = vadd.f32 %v209_v7, %v118_v12  ;;  %v268_v15 = vpop.f32.mrb[2].mxu0  ;;  %v272_v16 = vpop.f32.mrb[2].mxu1  ;;  %v135_v18 = vadd.f32 %v209_v7, %v134_v13 }
  0xe4   :  { %vm154_vm1 = vcmp.gt.f32.partialorder %v143_v11, 0.0  ;;  %v161_v17 = vmul.f32 0.2, %v143_v11  ;;  %vm150_vm2 = vcmp.gt.f32.partialorder %v127_v10, 0.0  ;;  %v157_v19 = vmul.f32 0.2, %v127_v10 }
  0xe5   :  { %v130_v21 = vadd.f32 %v268_v15, %v209_v7  ;;  %v121_v22 = vpop.f32.mrb[3].mxu0  ;;  %v137_v23 = vpop.f32.mrb[3].mxu1  ;;  %vm148_vm3 = vcmp.gt.f32.partialorder %v119_v14, 0.0  ;;  %v155_v25 = vmul.f32 0.2, %v119_v14  ;;  %vm152_vm5 = vcmp.gt.f32.partialorder %v135_v18, 0.0 }
  0xe6   :  { %v168_v20 = vsel %vm154_vm1, %v143_v11, %v161_v17  ;;  %v122_v26 = vadd.f32 %v209_v7, %v121_v22  ;;  %v159_v27 = vmul.f32 0.2, %v135_v18  ;;  %v138_v29 = vadd.f32 %v209_v7, %v137_v23 }
  0xe7   :  { %v234_v24 = vpack.c.bf16 %v168_v20, %v168_v20  ;;  %vm151_vm4 = vcmp.gt.f32.partialorder %v130_v21, 0.0  ;;  %v158_v28 = vmul.f32 0.2, %v130_v21  ;;  %v164_v31 = vsel %vm150_vm2, %v127_v10, %v157_v19 }
  0xe8   :  { %vm149_vm6 = vcmp.gt.f32.partialorder %v122_v26, 0.0  ;;  %v156_v30 = vmul.f32 0.2, %v122_v26  ;;  %vm153_vm7 = vcmp.gt.f32.partialorder %v138_v29, 0.0  ;;  %v160_v33 = vmul.f32 0.2, %v138_v29 }
  0xe9   :  { %204 = vst [vmem:[%s350_s3 + $0x18] sm:$0xf] %v234_v24  ;;  %v165_v32 = vsel %vm151_vm4, %v130_v21, %v158_v28  ;;  %v162_v34 = vsel %vm148_vm3, %v119_v14, %v155_v25  ;;  %v166_v37 = vsel %vm152_vm5, %v135_v18, %v159_v27 }
  0xea   :  { %v243_v35 = vpack.c.bf16 %v165_v32, %v164_v31  ;;  %v163_v36 = vsel %vm149_vm6, %v122_v26, %v156_v30  ;;  %v167_v39 = vsel %vm153_vm7, %v138_v29, %v160_v33 }
  0xeb   :  { %v238_v38 = vpack.c.bf16 %v163_v36, %v162_v34  ;;  %v248_v40 = vpack.c.bf16 %v167_v39, %v166_v37 }
  0xec   :  { %250 = vst [vmem:[%s350_s3 + $0x8] sm:$0xff] %v243_v35  }
  0xed   :  { %239 = vst [vmem:[%s350_s3] sm:$0xff] %v238_v38   ;;  %251 = vst [vmem:[%s350_s3 + $0x10] sm:$0xff] %v248_v40  }

// kernel: _lambda_.36
= control target key start
LH: loop header
LB: loop body
LE: loop exit
PB: predicated region body
PF: predicated region fallthrough
CT: control target
= control target key end

     0   :  { %s317_s1 = inlined_call_operand.vmem [shape: bf16[128,128], index: 1, kind: input, shape index: {}]   ;;  %s318_s0 = inlined_call_operand.vmem [shape: bf16[24,128], index: 0, kind: input, shape index: {}]   ;;  %s319_s2 = inlined_call_operand.vmem [shape: bf16[24,128], index: 2, kind: output, shape index: {0}]   ;;  %s320_s3 = inlined_call_operand.vmem [shape: f32[1,128], index: 3, kind: output, shape index: {1}]   ;;  %s321_s4 = inlined_call_operand.vmem [shape: f32[1,128], index: 4, kind: output, shape index: {2}]  }
   0x1   :  { %v240_v0 = vld [vmem:[%s317_s1] sm:$0xff]   ;;  %v241_v1 = vld [vmem:[%s317_s1 + $0x8] sm:$0xff]   ;;  %v242_v2 = vld [vmem:[%s317_s1 + $0x10] sm:$0xff]  }
   0x2   :  { %220 = vmatprep.subr.bf16.mxu0 %v240_v0  ;;  %v243_v3 = vld [vmem:[%s317_s1 + $0x18] sm:$0xff]   ;;  %v248_v4 = vld [vmem:[%s318_s0] sm:$0xff]   ;;  %v245_v6 = vld [vmem:[%s317_s1 + $0x28] sm:$0xff]  }
   0x3   :  { %221 = vmatpush3.bf16.msra.mxu0 %v240_v0  ;;  %236 = vmatprep.mubr.bf16.mxu0 %v248_v4  ;;  %v244_v5 = vld [vmem:[%s317_s1 + $0x20] sm:$0xff]   ;;  %v246_v7 = vld [vmem:[%s317_s1 + $0x30] sm:$0xff]   ;;  %v247_v8 = vld [vmem:[%s317_s1 + $0x38] sm:$0xff]  }
   0x4   :  { %222 = vmatprep.subr.bf16.mxu0 %v241_v1  ;;  %v249_v9 = vld [vmem:[%s318_s0 + $0x8] ss:$0 sps:$4 sm:$0xff]  }
   0x7   :  { %223 = vmatpush3.bf16.msra.mxu0 %v241_v1 }
   0x8   :  { %224 = vmatprep.subr.bf16.mxu0 %v242_v2 }
   0xb   :  { %225 = vmatpush3.bf16.msra.mxu0 %v242_v2 }
   0xc   :  { %226 = vmatprep.subr.bf16.mxu0 %v243_v3 }
   0xf   :  { %227 = vmatpush3.bf16.msra.mxu0 %v243_v3 }
  0x10   :  { %228 = vmatprep.subr.bf16.mxu0 %v244_v5 }
  0x13   :  { %229 = vmatpush3.bf16.msra.mxu0 %v244_v5 }
  0x14   :  { %230 = vmatprep.subr.bf16.mxu0 %v245_v6 }
  0x17   :  { %231 = vmatpush3.bf16.msra.mxu0 %v245_v6 }
  0x18   :  { %232 = vmatprep.subr.bf16.mxu0 %v246_v7 }
  0x1b   :  { %233 = vmatpush3.bf16.msra.mxu0 %v246_v7 }
  0x1c   :  { %234 = vmatprep.subr.bf16.mxu0 %v247_v8 }
  0x1f   :  { %235 = vmatpush3.bf16.msra.mxu0 %v247_v8 }
  0x22   :  { %237 = vmatmul.mubr.bf16.vlgmr.msra.gmra.mrb[0].mxu0 %v249_v9 }
  0xf5   :  { %v238_v10 = vpop.f32.mrb[0].mxu0 }
  0xf6   :  { %v204_v11 = vpack.c.bf16 %v238_v10, %v238_v10  ;;  %v126_v12 = vpop.f32.mrb[1].mxu0  ;;  %v151_v19 = vmul.f32 %v238_v10, %v238_v10 }
  0xf7   :  { %v239_v13 = vpop.f32.mrb[2].mxu0  ;;  %v149_v15 = vmul.f32 %v126_v12, %v126_v12 }
  0xf8   :  { %v129_v14 = vpop.f32.mrb[3].mxu0  ;;  %176 = vst [vmem:[%s319_s2 + $0x8] sm:$0xf] %v204_v11 }
  0xf9   :  { %v140_v16 = vadd.f32 %v129_v14, %v126_v12  ;;  %v150_v17 = vmul.f32 %v129_v14, %v129_v14  ;;  %v208_v18 = vpack.c.bf16 %v129_v14, %v126_v12 }
  0xfb   :  { %v141_v20 = vadd.f32 %v238_v10, %v140_v16  ;;  %v152_v21 = vadd.f32 %v150_v17, %v149_v15  ;;  %209 = vst [vmem:[%s319_s2] sm:$0xff] %v208_v18  }
  0xfd   :  { %v142_v22 = vrot.slane %v141_v20, 4  ;;  %v153_v23 = vadd.f32 %v152_v21, %v151_v19 }
  0xff   :  { %v143_v24 = vadd.f32 %v142_v22, %v141_v20  ;;  %v154_v25 = vrot.slane %v153_v23, 4 }
 0x101   :  { %v144_v26 = vrot.slane %v143_v24, 2  ;;  %v155_v27 = vadd.f32 %v154_v25, %v153_v23 }
 0x103   :  { %v145_v28 = vadd.f32 %v144_v26, %v143_v24  ;;  %v156_v29 = vrot.slane %v155_v27, 2 }
 0x105   :  { %v146_v30 = vrot.slane %v145_v28, 1  ;;  %v157_v31 = vadd.f32 %v156_v29, %v155_v27 }
 0x107   :  { %v147_v32 = vadd.f32 %v146_v30, %v145_v28  ;;  %v158_v33 = vrot.slane %v157_v31, 1 }
 0x109   :  { %148 = vst [vmem:[%s320_s3] sm:$0x1] %v147_v32  ;;  %v159_v34 = vadd.f32 %v158_v33, %v157_v31 }
 0x10b   :  { %160 = vst [vmem:[%s321_s4] sm:$0x1] %v159_v34 }

// kernel: _lambda_.28
= control target key start
LH: loop header
LB: loop body
LE: loop exit
PB: predicated region body
PF: predicated region fallthrough
CT: control target
= control target key end

     0   :  { %s214_s0 = inlined_call_operand.vmem [shape: bf16[56,128], index: 0, kind: input, shape index: {}]   ;;  %s215_s1 = inlined_call_operand.vmem [shape: f32[1,128], index: 1, kind: input, shape index: {}]   ;;  %s216_s2 = inlined_call_operand.vmem [shape: f32[1,128], index: 2, kind: input, shape index: {}]   ;;  %s217_s3 = inlined_call_operand.vmem [shape: bf16[56,128], index: 3, kind: output, shape index: {}]  }
   0x1   :  { %v134_v0 = vld [vmem:[%s214_s0] sm:$0xff]   ;;  %v160_v4 = vld [vmem:[%s214_s0 + $0x8] sm:$0xff]   ;;  %v161_v5 = vld [vmem:[%s214_s0 + $0x10] sm:$0xff]  }
   0x2   :  { %v117_v1 = vld [vmem:[%s215_s1] ss:$0 sm:$0xff]  ;;  %v135_v2 = vunpack.c.l.bf16 %v134_v0  ;;  %v136_v3 = vunpack.c.h.bf16 %v134_v0  ;;  %v20_v6 = vld [vmem:[%s214_s0 + $0x18] sm:$0xf]  ;;  %v139_v8 = vunpack.c.l.bf16 %v160_v4  ;;  %v140_v9 = vunpack.c.h.bf16 %v160_v4 }
   0x3   :  { %v118_v7 = vld [vmem:[%s216_s2] ss:$0 sm:$0xff]  ;;  %v143_v10 = vunpack.c.l.bf16 %v161_v5  ;;  %v144_v11 = vunpack.c.h.bf16 %v161_v5  ;;  %v27_v14 = vunpack.c.l.bf16 %v20_v6 }
   0x4   :  { %v35_v12 = vmul.f32 %v135_v2, %v117_v1  ;;  %v36_v13 = vmul.f32 %v136_v3, %v117_v1  ;;  %v37_v15 = vmul.f32 %v139_v8, %v117_v1  ;;  %v38_v16 = vmul.f32 %v140_v9, %v117_v1 }
   0x5   :  { %v39_v17 = vmul.f32 %v143_v10, %v117_v1  ;;  %v40_v18 = vmul.f32 %v144_v11, %v117_v1  ;;  %v41_v21 = vmul.f32 %v117_v1, %v27_v14 }
   0x6   :  { %v49_v19 = vadd.f32 %v118_v7, %v35_v12  ;;  %v50_v20 = vadd.f32 %v118_v7, %v36_v13  ;;  %v51_v22 = vadd.f32 %v118_v7, %v37_v15  ;;  %v52_v23 = vadd.f32 %v118_v7, %v38_v16 }
   0x7   :  { %v53_v24 = vadd.f32 %v118_v7, %v39_v17  ;;  %v54_v25 = vadd.f32 %v118_v7, %v40_v18  ;;  %v55_v38 = vadd.f32 %v118_v7, %v41_v21 }
   0x8   :  { %vm56_vm0 = vcmp.gt.f32.partialorder %v49_v19, 0.0  ;;  %vm57_vm1 = vcmp.gt.f32.partialorder %v50_v20, 0.0  ;;  %v63_v26 = vmul.f32 0.2, %v49_v19  ;;  %v64_v27 = vmul.f32 0.2, %v50_v20 }
   0x9   :  { %vm58_vm2 = vcmp.gt.f32.partialorder %v51_v22, 0.0  ;;  %vm59_vm3 = vcmp.gt.f32.partialorder %v52_v23, 0.0  ;;  %v65_v28 = vmul.f32 0.2, %v51_v22  ;;  %v66_v29 = vmul.f32 0.2, %v52_v23 }
   0xa   :  { %v70_v30 = vsel %vm56_vm0, %v49_v19, %v63_v26  ;;  %v71_v31 = vsel %vm57_vm1, %v50_v20, %v64_v27  ;;  %vm60_vm4 = vcmp.gt.f32.partialorder %v53_v24, 0.0  ;;  %vm61_vm5 = vcmp.gt.f32.partialorder %v54_v25, 0.0 }
   0xb   :  { %v148_v32 = vpack.c.bf16 %v71_v31, %v70_v30  ;;  %v72_v33 = vsel %vm58_vm2, %v51_v22, %v65_v28  ;;  %v73_v34 = vsel %vm59_vm3, %v52_v23, %v66_v29  ;;  %v67_v35 = vmul.f32 0.2, %v53_v24 }
   0xc   :  { %v153_v36 = vpack.c.bf16 %v73_v34, %v72_v33  ;;  %v68_v37 = vmul.f32 0.2, %v54_v25  ;;  %vm62_vm6 = vcmp.gt.f32.partialorder %v55_v38, 0.0  ;;  %v69_v41 = vmul.f32 0.2, %v55_v38 }
   0xd   :  { %149 = vst [vmem:[%s217_s3] sm:$0xff] %v148_v32   ;;  %v74_v39 = vsel %vm60_vm4, %v53_v24, %v67_v35 }
   0xe   :  { %162 = vst [vmem:[%s217_s3 + $0x8] sm:$0xff] %v153_v36   ;;  %v75_v40 = vsel %vm61_vm5, %v54_v25, %v68_v37  ;;  %v76_v43 = vsel %vm62_vm6, %v55_v38, %v69_v41 }
   0xf   :  { %v158_v42 = vpack.c.bf16 %v75_v40, %v74_v39  ;;  %v132_v44 = vpack.c.bf16 %v76_v43, %v76_v43 }
  0x11   :  { %163 = vst [vmem:[%s217_s3 + $0x10] sm:$0xff] %v158_v42   ;;  %112 = vst [vmem:[%s217_s3 + $0x18] sm:$0xf] %v132_v44 }

// kernel: _lambda_.46
= control target key start
LH: loop header
LB: loop body
LE: loop exit
PB: predicated region body
PF: predicated region fallthrough
CT: control target
= control target key end

     0   :  { %s75_s0 = inlined_call_operand.vmem [shape: bf16[8,128], index: 0, kind: input, shape index: {}]   ;;  %s76_s1 = inlined_call_operand.vmem [shape: f32[1,128], index: 1, kind: input, shape index: {}]   ;;  %s77_s2 = inlined_call_operand.vmem [shape: f32[1,128], index: 2, kind: input, shape index: {}]   ;;  %s78_s3 = inlined_call_operand.vmem [shape: bf16[8,128], index: 3, kind: output, shape index: {}]  }
   0x1   :  { %v14_v0 = vld [vmem:[%s75_s0] sm:$0xf] }
   0x2   :  { %v41_v1 = vld [vmem:[%s76_s1] ss:$0 sm:$0xff]  ;;  %v15_v2 = vunpack.c.l.bf16 %v14_v0 }
   0x3   :  { %v42_v3 = vld [vmem:[%s77_s2] ss:$0 sm:$0xff] }
   0x4   :  { %v23_v4 = vmul.f32 %v41_v1, %v15_v2 }
   0x6   :  { %v31_v5 = vadd.f32 %v42_v3, %v23_v4 }
   0x8   :  { %vm32_vm0 = vcmp.gt.f32.partialorder %v31_v5, 0.0  ;;  %v33_v6 = vmul.f32 0.2, %v31_v5 }
   0xa   :  { %v34_v7 = vsel %vm32_vm0, %v31_v5, %v33_v6 }
   0xb   :  { %v35_v8 = vpack.c.bf16 %v34_v7, %v34_v7 }
   0xd   :  { %36 = vst [vmem:[%s78_s3] sm:$0xf] %v35_v8 }

// kernel: _lambda_.29
= control target key start
LH: loop header
LB: loop body
LE: loop exit
PB: predicated region body
PF: predicated region fallthrough
CT: control target
= control target key end

     0   :  { %s450_s1 = inlined_call_operand.vmem [shape: bf16[256,128], index: 1, kind: input, shape index: {}]   ;;  %s451_s0 = inlined_call_operand.vmem [shape: bf16[24,256], index: 0, kind: input, shape index: {}]   ;;  %s452_s2 = inlined_call_operand.vmem [shape: bf16[24,128], index: 2, kind: output, shape index: {0}]   ;;  %s453_s3 = inlined_call_operand.vmem [shape: f32[1,128], index: 3, kind: output, shape index: {1}]   ;;  %s454_s4 = inlined_call_operand.vmem [shape: f32[1,128], index: 4, kind: output, shape index: {2}]  }
   0x1   :  { %v335_v0 = vld [vmem:[%s450_s1 + $0x40] sm:$0xff]   ;;  %v337_v2 = vld [vmem:[%s450_s1 + $0x48] sm:$0xff]   ;;  %v339_v4 = vld [vmem:[%s450_s1 + $0x50] sm:$0xff]  }
   0x2   :  { %v336_v1 = vld [vmem:[%s450_s1] sm:$0xff]   ;;  %291 = vmatprep.subr.bf16.mxu0 %v335_v0  ;;  %319 = vmatprep.subr.bf16.mxu1 %v335_v0  ;;  %v338_v3 = vld [vmem:[%s450_s1 + $0x8] sm:$0xff]   ;;  %v340_v5 = vld [vmem:[%s450_s1 + $0x10] sm:$0xff]  }
   0x3   :  { %292 = vmatpush3.bf16.msra.mxu0 %v336_v1  ;;  %327 = vmatpush3.bf16.msra.mxu1 %v336_v1  ;;  %v341_v6 = vld [vmem:[%s450_s1 + $0x58] sm:$0xff]   ;;  %v343_v8 = vld [vmem:[%s450_s1 + $0x60] sm:$0xff]   ;;  %v345_v10 = vld [vmem:[%s450_s1 + $0x68] sm:$0xff]  }
   0x4   :  { %293 = vmatprep.subr.bf16.mxu0 %v337_v2  ;;  %320 = vmatprep.subr.bf16.mxu1 %v337_v2  ;;  %v342_v7 = vld [vmem:[%s450_s1 + $0x18] sm:$0xff]   ;;  %v344_v9 = vld [vmem:[%s450_s1 + $0x20] sm:$0xff]   ;;  %v17_v12 = vld [vmem:[%s451_s0 + $0x10] sm:$0xff] }
   0x5   :  { %v353_v11 = vld [vmem:[%s451_s0 + $0x4] ss:$8 sps:$4 sm:$0xff]   ;;  %v263_v13 = vcombine.high %v17_v12, %v17_v12  ;;  %v347_v15 = vld [vmem:[%s450_s1 + $0x70] sm:$0xff]   ;;  %v349_v17 = vld [vmem:[%s450_s1 + $0x78] sm:$0xff]   ;;  %v262_v20 = vcombine.low %v17_v12, %v17_v12 }
   0x6   :  { %v346_v14 = vld [vmem:[%s450_s1 + $0x28] sm:$0xff]   ;;  %195 = vmatprep.mubr.bf16.mxu0 %v353_v11  ;;  %v348_v16 = vld [vmem:[%s450_s1 + $0x30] sm:$0xff]   ;;  %v350_v18 = vld [vmem:[%s450_s1 + $0x38] sm:$0xff]  }
   0x7   :  { %294 = vmatpush3.bf16.msra.mxu0 %v338_v3  ;;  %328 = vmatpush3.bf16.msra.mxu1 %v338_v3  ;;  %v351_v19 = vld [vmem:[%s451_s0] ss:$8 sps:$4 sm:$0xff]  }
   0x8   :  { %295 = vmatprep.subr.bf16.mxu0 %v339_v4  ;;  %321 = vmatprep.subr.bf16.mxu1 %v339_v4 }
   0x9   :  { %203 = vmatprep.mubr.bf16.mxu1 %v263_v13 }
   0xb   :  { %296 = vmatpush3.bf16.msra.mxu0 %v340_v5  ;;  %329 = vmatpush3.bf16.msra.mxu1 %v340_v5 }
   0xc   :  { %297 = vmatprep.subr.bf16.mxu0 %v341_v6  ;;  %322 = vmatprep.subr.bf16.mxu1 %v341_v6 }
   0xf   :  { %298 = vmatpush3.bf16.msra.mxu0 %v342_v7  ;;  %330 = vmatpush3.bf16.msra.mxu1 %v342_v7 }
  0x10   :  { %299 = vmatprep.subr.bf16.mxu0 %v343_v8  ;;  %323 = vmatprep.subr.bf16.mxu1 %v343_v8 }
  0x13   :  { %300 = vmatpush3.bf16.msra.mxu0 %v344_v9  ;;  %331 = vmatpush3.bf16.msra.mxu1 %v344_v9 }
  0x14   :  { %301 = vmatprep.subr.bf16.mxu0 %v345_v10  ;;  %324 = vmatprep.subr.bf16.mxu1 %v345_v10 }
  0x17   :  { %302 = vmatpush3.bf16.msra.mxu0 %v346_v14  ;;  %332 = vmatpush3.bf16.msra.mxu1 %v346_v14 }
  0x18   :  { %303 = vmatprep.subr.bf16.mxu0 %v347_v15  ;;  %325 = vmatprep.subr.bf16.mxu1 %v347_v15 }
  0x1b   :  { %304 = vmatpush3.bf16.msra.mxu0 %v348_v16  ;;  %333 = vmatpush3.bf16.msra.mxu1 %v348_v16 }
  0x1c   :  { %305 = vmatprep.subr.bf16.mxu0 %v349_v17  ;;  %326 = vmatprep.subr.bf16.mxu1 %v349_v17 }
  0x1f   :  { %306 = vmatpush3.bf16.msra.mxu0 %v350_v18  ;;  %334 = vmatpush3.bf16.msra.mxu1 %v350_v18 }
  0x22   :  { %196 = vmatmul.mubr.bf16.vlgmr.msra.gmra.mrb[0].mxu0 %v351_v19  ;;  %204 = vmatmul.mubr.bf16.vlgmr.msra.gmra.mrb[0].mxu1 %v262_v20 }
  0xf5   :  { %v307_v21 = vpop.f32.mrb[0].mxu0  ;;  %v313_v22 = vpop.f32.mrb[0].mxu1 }
  0xf6   :  { %v308_v23 = vpop.f32.mrb[1].mxu0  ;;  %v314_v24 = vpop.f32.mrb[1].mxu1 }
  0xf7   :  { %v309_v25 = vadd.f32 %v308_v23, %v307_v21  ;;  %v310_v26 = vpop.f32.mrb[2].mxu0  ;;  %v315_v27 = vadd.f32 %v314_v24, %v313_v22  ;;  %v316_v28 = vpop.f32.mrb[2].mxu1 }
  0xf8   :  { %v311_v29 = vpop.f32.mrb[3].mxu0  ;;  %v317_v30 = vpop.f32.mrb[3].mxu1 }
  0xf9   :  { %v285_v31 = vpack.c.bf16 %v315_v27, %v315_v27  ;;  %v312_v32 = vadd.f32 %v311_v29, %v310_v26  ;;  %v220_v33 = vmul.f32 %v309_v25, %v309_v25  ;;  %v222_v34 = vmul.f32 %v315_v27, %v315_v27 }
  0xfb   :  { %247 = vst [vmem:[%s452_s2 + $0x8] sm:$0xf] %v285_v31  ;;  %v211_v35 = vadd.f32 %v312_v32, %v309_v25  ;;  %v221_v36 = vmul.f32 %v312_v32, %v312_v32  ;;  %v289_v37 = vpack.c.bf16 %v312_v32, %v309_v25 }
  0xfd   :  { %v212_v38 = vadd.f32 %v315_v27, %v211_v35  ;;  %v223_v39 = vadd.f32 %v221_v36, %v220_v33  ;;  %290 = vst [vmem:[%s452_s2] sm:$0xff] %v289_v37  }
  0xff   :  { %v213_v40 = vrot.slane %v212_v38, 4  ;;  %v224_v41 = vadd.f32 %v223_v39, %v222_v34 }
 0x101   :  { %v214_v42 = vadd.f32 %v213_v40, %v212_v38  ;;  %v225_v43 = vrot.slane %v224_v41, 4 }
 0x103   :  { %v215_v44 = vrot.slane %v214_v42, 2  ;;  %v226_v45 = vadd.f32 %v225_v43, %v224_v41 }
 0x105   :  { %v216_v46 = vadd.f32 %v215_v44, %v214_v42  ;;  %v227_v47 = vrot.slane %v226_v45, 2 }
 0x107   :  { %v217_v48 = vrot.slane %v216_v46, 1  ;;  %v228_v49 = vadd.f32 %v227_v47, %v226_v45 }
 0x109   :  { %v218_v50 = vadd.f32 %v217_v48, %v216_v46  ;;  %v229_v51 = vrot.slane %v228_v49, 1 }
 0x10b   :  { %219 = vst [vmem:[%s453_s3] sm:$0x1] %v218_v50  ;;  %v230_v52 = vadd.f32 %v229_v51, %v228_v49 }
 0x10d   :  { %231 = vst [vmem:[%s454_s4] sm:$0x1] %v230_v52 }

// kernel: _lambda_.37
= control target key start
LH: loop header
LB: loop body
LE: loop exit
PB: predicated region body
PF: predicated region fallthrough
CT: control target
= control target key end

     0   :  { %s124_s0 = inlined_call_operand.vmem [shape: bf16[24,128], index: 0, kind: input, shape index: {}]   ;;  %s125_s1 = inlined_call_operand.vmem [shape: f32[1,128], index: 1, kind: input, shape index: {}]   ;;  %s126_s2 = inlined_call_operand.vmem [shape: f32[1,128], index: 2, kind: input, shape index: {}]   ;;  %s127_s3 = inlined_call_operand.vmem [shape: bf16[24,128], index: 3, kind: output, shape index: {}]  }
   0x1   :  { %v78_v0 = vld [vmem:[%s124_s0] sm:$0xff]   ;;  %v16_v4 = vld [vmem:[%s124_s0 + $0x8] sm:$0xf] }
   0x2   :  { %v69_v1 = vld [vmem:[%s125_s1] ss:$0 sm:$0xff]  ;;  %v79_v2 = vunpack.c.l.bf16 %v78_v0  ;;  %v80_v3 = vunpack.c.h.bf16 %v78_v0  ;;  %v19_v6 = vunpack.c.l.bf16 %v16_v4 }
   0x3   :  { %v70_v5 = vld [vmem:[%s126_s2] ss:$0 sm:$0xff] }
   0x4   :  { %v27_v7 = vmul.f32 %v79_v2, %v69_v1  ;;  %v28_v8 = vmul.f32 %v80_v3, %v69_v1  ;;  %v29_v9 = vmul.f32 %v69_v1, %v19_v6 }
   0x6   :  { %v37_v10 = vadd.f32 %v70_v5, %v27_v7  ;;  %v38_v11 = vadd.f32 %v70_v5, %v28_v8  ;;  %v39_v12 = vadd.f32 %v70_v5, %v29_v9 }
   0x8   :  { %vm40_vm0 = vcmp.gt.f32.partialorder %v37_v10, 0.0  ;;  %vm41_vm1 = vcmp.gt.f32.partialorder %v38_v11, 0.0  ;;  %v43_v13 = vmul.f32 0.2, %v37_v10  ;;  %v44_v14 = vmul.f32 0.2, %v38_v11 }
   0x9   :  { %vm42_vm2 = vcmp.gt.f32.partialorder %v39_v12, 0.0  ;;  %v45_v15 = vmul.f32 0.2, %v39_v12 }
   0xa   :  { %v46_v16 = vsel %vm40_vm0, %v37_v10, %v43_v13  ;;  %v47_v17 = vsel %vm41_vm1, %v38_v11, %v44_v14 }
   0xb   :  { %v84_v18 = vpack.c.bf16 %v47_v17, %v46_v16  ;;  %v48_v19 = vsel %vm42_vm2, %v39_v12, %v45_v15 }
   0xc   :  { %v76_v20 = vpack.c.bf16 %v48_v19, %v48_v19 }
   0xd   :  { %85 = vst [vmem:[%s127_s3] sm:$0xff] %v84_v18  }
   0xe   :  { %64 = vst [vmem:[%s127_s3 + $0x8] sm:$0xf] %v76_v20 }

// kernel: _lambda_.47
= control target key start
LH: loop header
LB: loop body
LE: loop exit
PB: predicated region body
PF: predicated region fallthrough
CT: control target
= control target key end

     0   :  { %s363_s1 = inlined_call_operand.vmem [shape: bf16[256,128], index: 1, kind: input, shape index: {}]   ;;  %s364_s0 = inlined_call_operand.vmem [shape: bf16[8,256], index: 0, kind: input, shape index: {}]   ;;  %s365_s2 = inlined_call_operand.vmem [shape: bf16[8,128], index: 2, kind: output, shape index: {0}]   ;;  %s366_s3 = inlined_call_operand.vmem [shape: f32[1,128], index: 3, kind: output, shape index: {1}]   ;;  %s367_s4 = inlined_call_operand.vmem [shape: f32[1,128], index: 4, kind: output, shape index: {2}]  }
   0x1   :  { %v260_v0 = vld [vmem:[%s363_s1 + $0x40] sm:$0xff]   ;;  %v262_v2 = vld [vmem:[%s363_s1 + $0x48] sm:$0xff]   ;;  %v264_v4 = vld [vmem:[%s363_s1 + $0x50] sm:$0xff]  }
   0x2   :  { %v261_v1 = vld [vmem:[%s363_s1] sm:$0xff]   ;;  %238 = vmatprep.subr.bf16.mxu0 %v260_v0  ;;  %v263_v3 = vld [vmem:[%s363_s1 + $0x8] sm:$0xff]   ;;  %v265_v5 = vld [vmem:[%s363_s1 + $0x10] sm:$0xff]  }
   0x3   :  { %239 = vmatpush3.bf16.msra.mxu0 %v261_v1  ;;  %v266_v6 = vld [vmem:[%s363_s1 + $0x58] sm:$0xff]   ;;  %v268_v8 = vld [vmem:[%s363_s1 + $0x60] sm:$0xff]   ;;  %v270_v10 = vld [vmem:[%s363_s1 + $0x68] sm:$0xff]  }
   0x4   :  { %240 = vmatprep.subr.bf16.mxu0 %v262_v2  ;;  %v267_v7 = vld [vmem:[%s363_s1 + $0x18] sm:$0xff]   ;;  %v269_v9 = vld [vmem:[%s363_s1 + $0x20] sm:$0xff]   ;;  %v271_v13 = vld [vmem:[%s363_s1 + $0x28] sm:$0xff]  }
   0x5   :  { %v15_v11 = vld [vmem:[%s364_s0] sm:$0xff]  ;;  %v272_v14 = vld [vmem:[%s363_s1 + $0x70] sm:$0xff]   ;;  %v274_v16 = vld [vmem:[%s363_s1 + $0x78] sm:$0xff]  }
   0x6   :  { %v221_v12 = vcombine.high %v15_v11, %v15_v11  ;;  %v273_v15 = vld [vmem:[%s363_s1 + $0x30] sm:$0xff]   ;;  %v275_v17 = vld [vmem:[%s363_s1 + $0x38] sm:$0xff]   ;;  %v220_v18 = vcombine.low %v15_v11, %v15_v11 }
   0x7   :  { %241 = vmatpush3.bf16.msra.mxu0 %v263_v3 }
   0x8   :  { %242 = vmatprep.subr.bf16.mxu0 %v264_v4  ;;  %183 = vmatprep.mubr.bf16.mxu0 %v221_v12 }
   0xb   :  { %243 = vmatpush3.bf16.msra.mxu0 %v265_v5 }
   0xc   :  { %244 = vmatprep.subr.bf16.mxu0 %v266_v6 }
   0xf   :  { %245 = vmatpush3.bf16.msra.mxu0 %v267_v7 }
  0x10   :  { %246 = vmatprep.subr.bf16.mxu0 %v268_v8 }
  0x13   :  { %247 = vmatpush3.bf16.msra.mxu0 %v269_v9 }
  0x14   :  { %248 = vmatprep.subr.bf16.mxu0 %v270_v10 }
  0x17   :  { %249 = vmatpush3.bf16.msra.mxu0 %v271_v13 }
  0x18   :  { %250 = vmatprep.subr.bf16.mxu0 %v272_v14 }
  0x1b   :  { %251 = vmatpush3.bf16.msra.mxu0 %v273_v15 }
  0x1c   :  { %252 = vmatprep.subr.bf16.mxu0 %v274_v16 }
  0x1f   :  { %253 = vmatpush3.bf16.msra.mxu0 %v275_v17 }
  0x22   :  { %184 = vmatmul.mubr.bf16.vlgmr.msra.gmra.mrb[0].mxu0 %v220_v18 }
  0xf5   :  { %v254_v19 = vpop.f32.mrb[0].mxu0 }
  0xf6   :  { %v255_v20 = vpop.f32.mrb[1].mxu0 }
  0xf7   :  { %v256_v21 = vadd.f32 %v255_v20, %v254_v19  ;;  %v257_v22 = vpop.f32.mrb[2].mxu0 }
  0xf8   :  { %v258_v23 = vpop.f32.mrb[3].mxu0 }
  0xf9   :  { %v191_v24 = vrot.slane %v256_v21, 4  ;;  %v198_v25 = vmul.f32 %v256_v21, %v256_v21  ;;  %v206_v26 = vpack.c.bf16 %v256_v21, %v256_v21 }
  0xfb   :  { %v192_v27 = vadd.f32 %v256_v21, %v191_v24  ;;  %v199_v28 = vrot.slane %v198_v25, 4  ;;  %207 = vst [vmem:[%s365_s2] sm:$0xf] %v206_v26 }
  0xfd   :  { %v193_v29 = vrot.slane %v192_v27, 2  ;;  %v200_v30 = vadd.f32 %v199_v28, %v198_v25 }
  0xff   :  { %v194_v31 = vadd.f32 %v193_v29, %v192_v27  ;;  %v201_v32 = vrot.slane %v200_v30, 2 }
 0x101   :  { %v195_v33 = vrot.slane %v194_v31, 1  ;;  %v202_v34 = vadd.f32 %v201_v32, %v200_v30 }
 0x103   :  { %v196_v35 = vadd.f32 %v195_v33, %v194_v31  ;;  %v203_v36 = vrot.slane %v202_v34, 1 }
 0x105   :  { %197 = vst [vmem:[%s366_s3] sm:$0x1] %v196_v35  ;;  %v204_v37 = vadd.f32 %v203_v36, %v202_v34 }
 0x107   :  { %205 = vst [vmem:[%s367_s4] sm:$0x1] %v204_v37 }

// kernel: _lambda_.31
= control target key start
LH: loop header
LB: loop body
LE: loop exit
PB: predicated region body
PF: predicated region fallthrough
CT: control target
= control target key end

     0   :  { %s789_s1 = inlined_call_operand.vmem [shape: bf16[512,128], index: 1, kind: input, shape index: {}]   ;;  %s790_s0 = inlined_call_operand.vmem [shape: bf16[32,512], index: 0, kind: input, shape index: {}]   ;;  %s791_s2 = inlined_call_operand.vmem [shape: bf16[32,128], index: 2, kind: output, shape index: {0}]   ;;  %s792_s3 = inlined_call_operand.vmem [shape: f32[1,128], index: 3, kind: output, shape index: {1}]   ;;  %s793_s4 = inlined_call_operand.vmem [shape: f32[1,128], index: 4, kind: output, shape index: {2}]  }
   0x1   :  { %v588_v0 = vld [vmem:[%s789_s1 + $0x40] sm:$0xff]   ;;  %v592_v4 = vld [vmem:[%s789_s1 + $0x48] sm:$0xff]   ;;  %v596_v8 = vld [vmem:[%s789_s1 + $0x50] sm:$0xff]  }
   0x2   :  { %v589_v1 = vld [vmem:[%s789_s1 + $0xc0] sm:$0xff]   ;;  %532 = vmatprep.subr.bf16.mxu0 %v588_v0  ;;  %v593_v5 = vld [vmem:[%s789_s1 + $0xc8] sm:$0xff]   ;;  %v597_v9 = vld [vmem:[%s789_s1 + $0xd0] sm:$0xff]  }
   0x3   :  { %v590_v2 = vld [vmem:[%s789_s1] sm:$0xff]   ;;  %560 = vmatprep.subr.bf16.mxu1 %v589_v1  ;;  %v594_v6 = vld [vmem:[%s789_s1 + $0x8] sm:$0xff]   ;;  %v598_v10 = vld [vmem:[%s789_s1 + $0x10] sm:$0xff]  }
   0x4   :  { %v591_v3 = vld [vmem:[%s789_s1 + $0x80] sm:$0xff]   ;;  %533 = vmatpush3.bf16.msra.mxu0 %v590_v2  ;;  %v595_v7 = vld [vmem:[%s789_s1 + $0x88] sm:$0xff]   ;;  %v599_v11 = vld [vmem:[%s789_s1 + $0x90] sm:$0xff]  }
   0x5   :  { %561 = vmatpush3.bf16.msra.mxu1 %v591_v3  ;;  %534 = vmatprep.subr.bf16.mxu0 %v592_v4  ;;  %v600_v12 = vld [vmem:[%s789_s1 + $0x58] sm:$0xff]   ;;  %v604_v16 = vld [vmem:[%s789_s1 + $0x60] sm:$0xff]   ;;  %v608_v20 = vld [vmem:[%s789_s1 + $0x68] sm:$0xff]  }
   0x6   :  { %562 = vmatprep.subr.bf16.mxu1 %v593_v5  ;;  %v601_v13 = vld [vmem:[%s789_s1 + $0xd8] sm:$0xff]   ;;  %v605_v17 = vld [vmem:[%s789_s1 + $0xe0] sm:$0xff]   ;;  %v609_v21 = vld [vmem:[%s789_s1 + $0xe8] sm:$0xff]  }
   0x7   :  { %v602_v14 = vld [vmem:[%s789_s1 + $0x18] sm:$0xff]   ;;  %v606_v18 = vld [vmem:[%s789_s1 + $0x20] sm:$0xff]   ;;  %v610_v22 = vld [vmem:[%s789_s1 + $0x28] sm:$0xff]  }
   0x8   :  { %535 = vmatpush3.bf16.msra.mxu0 %v594_v6  ;;  %v603_v15 = vld [vmem:[%s789_s1 + $0x98] sm:$0xff]   ;;  %v607_v19 = vld [vmem:[%s789_s1 + $0xa0] sm:$0xff]   ;;  %v611_v23 = vld [vmem:[%s789_s1 + $0xa8] sm:$0xff]  }
   0x9   :  { %563 = vmatpush3.bf16.msra.mxu1 %v595_v7  ;;  %536 = vmatprep.subr.bf16.mxu0 %v596_v8  ;;  %v612_v24 = vld [vmem:[%s789_s1 + $0x70] sm:$0xff]   ;;  %v616_v28 = vld [vmem:[%s789_s1 + $0x78] sm:$0xff]  }
   0xa   :  { %564 = vmatprep.subr.bf16.mxu1 %v597_v9  ;;  %v613_v25 = vld [vmem:[%s789_s1 + $0xf0] sm:$0xff]   ;;  %v617_v29 = vld [vmem:[%s789_s1 + $0xf8] sm:$0xff]  }
   0xb   :  { %v614_v26 = vld [vmem:[%s789_s1 + $0x30] sm:$0xff]   ;;  %v618_v30 = vld [vmem:[%s789_s1 + $0x38] sm:$0xff]  }
   0xc   :  { %537 = vmatpush3.bf16.msra.mxu0 %v598_v10  ;;  %v615_v27 = vld [vmem:[%s789_s1 + $0xb0] sm:$0xff]   ;;  %v619_v31 = vld [vmem:[%s789_s1 + $0xb8] sm:$0xff]  }
   0xd   :  { %565 = vmatpush3.bf16.msra.mxu1 %v599_v11  ;;  %538 = vmatprep.subr.bf16.mxu0 %v600_v12  ;;  %v620_v32 = vld [vmem:[%s790_s0] ss:$16 sps:$4 sm:$0xff]   ;;  %v622_v33 = vld [vmem:[%s790_s0 + $0x4] ss:$16 sps:$4 sm:$0xff]   ;;  %v623_v34 = vld [vmem:[%s790_s0 + $0x8] ss:$16 sps:$4 sm:$0xff]  }
   0xe   :  { %566 = vmatprep.subr.bf16.mxu1 %v601_v13  ;;  %v625_v35 = vld [vmem:[%s790_s0 + $0xc] ss:$16 sps:$4 sm:$0xff]   ;;  %351 = vmatprep.mubr.bf16.mxu0 %v622_v33  ;;  %v626_v36 = vld [vmem:[%s790_s0 + $0x24] ss:$16 sps:$4 sm:$0xff]   ;;  %v630_v38 = vld [vmem:[%s790_s0 + $0x20] ss:$16 sps:$4 sm:$0xff]  }
   0xf   :  { %400 = vmatprep.mubr.bf16.mxu1 %v625_v35  ;;  %v628_v37 = vld [vmem:[%s790_s0 + $0x2c] ss:$16 sps:$4 sm:$0xff]   ;;  %v631_v39 = vld [vmem:[%s790_s0 + $0x28] ss:$16 sps:$4 sm:$0xff]  }
  0x10   :  { %539 = vmatpush3.bf16.msra.mxu0 %v602_v14 }
  0x11   :  { %567 = vmatpush3.bf16.msra.mxu1 %v603_v15  ;;  %540 = vmatprep.subr.bf16.mxu0 %v604_v16 }
  0x12   :  { %568 = vmatprep.subr.bf16.mxu1 %v605_v17 }
  0x14   :  { %541 = vmatpush3.bf16.msra.mxu0 %v606_v18 }
  0x15   :  { %569 = vmatpush3.bf16.msra.mxu1 %v607_v19  ;;  %542 = vmatprep.subr.bf16.mxu0 %v608_v20 }
  0x16   :  { %570 = vmatprep.subr.bf16.mxu1 %v609_v21 }
  0x18   :  { %543 = vmatpush3.bf16.msra.mxu0 %v610_v22 }
  0x19   :  { %571 = vmatpush3.bf16.msra.mxu1 %v611_v23  ;;  %544 = vmatprep.subr.bf16.mxu0 %v612_v24 }
  0x1a   :  { %572 = vmatprep.subr.bf16.mxu1 %v613_v25 }
  0x1c   :  { %545 = vmatpush3.bf16.msra.mxu0 %v614_v26 }
  0x1d   :  { %573 = vmatpush3.bf16.msra.mxu1 %v615_v27  ;;  %546 = vmatprep.subr.bf16.mxu0 %v616_v28 }
  0x1e   :  { %574 = vmatprep.subr.bf16.mxu1 %v617_v29 }
  0x20   :  { %547 = vmatpush3.bf16.msra.mxu0 %v618_v30 }
  0x21   :  { %575 = vmatpush3.bf16.msra.mxu1 %v619_v31 }
  0x23   :  { %352 = vmatmul.mubr.bf16.vlgmr.msra.gmra.mrb[0].mxu0 %v620_v32 }
  0x24   :  { %401 = vmatmul.mubr.bf16.vlgmr.msra.gmra.mrb[0].mxu1 %v623_v34  ;;  %359 = vmatprep.mubr.bf16.mxu0 %v626_v36 }
  0x25   :  { %408 = vmatprep.mubr.bf16.mxu1 %v628_v37 }
  0x2b   :  { %360 = vmatmul.mubr.bf16.gmra.mrb[4].mxu0 %v630_v38 }
  0x2c   :  { %409 = vmatmul.mubr.bf16.gmra.mrb[4].mxu1 %v631_v39 }
  0xf6   :  { %v548_v40 = vpop.f32.mrb[0].mxu0 }
  0xf7   :  { %v576_v41 = vpop.f32.mrb[0].mxu1  ;;  %v549_v42 = vpop.f32.mrb[1].mxu0 }
  0xf8   :  { %v550_v43 = vadd.f32 %v549_v42, %v548_v40  ;;  %v577_v44 = vpop.f32.mrb[1].mxu1  ;;  %v551_v45 = vpop.f32.mrb[2].mxu0 }
  0xf9   :  { %v578_v46 = vadd.f32 %v577_v44, %v576_v41  ;;  %v579_v47 = vpop.f32.mrb[2].mxu1  ;;  %v552_v48 = vpop.f32.mrb[3].mxu0 }
  0xfa   :  { %v553_v49 = vadd.f32 %v552_v48, %v551_v45  ;;  %v580_v50 = vpop.f32.mrb[3].mxu1 }
  0xfb   :  { %v403_v51 = vadd.f32 %v578_v46, %v550_v43  ;;  %v581_v52 = vadd.f32 %v580_v50, %v579_v47 }
  0xfd   :  { %v406_v53 = vadd.f32 %v581_v52, %v553_v49  ;;  %v427_v55 = vmul.f32 %v403_v51, %v403_v51 }
  0xfe   :  { %v554_v54 = vpop.f32.mrb[4].mxu0 }
  0xff   :  { %v417_v56 = vadd.f32 %v406_v53, %v403_v51  ;;  %v428_v57 = vmul.f32 %v406_v53, %v406_v53  ;;  %v524_v58 = vpack.c.bf16 %v406_v53, %v403_v51  ;;  %v582_v59 = vpop.f32.mrb[4].mxu1  ;;  %v555_v60 = vpop.f32.mrb[5].mxu0 }
 0x100   :  { %v556_v61 = vadd.f32 %v555_v60, %v554_v54  ;;  %v583_v62 = vpop.f32.mrb[5].mxu1  ;;  %v557_v63 = vpop.f32.mrb[6].mxu0 }
 0x101   :  { %v431_v0 = vadd.f32 %v428_v57, %v427_v55  ;;  %525 = vst [vmem:[%s791_s2] sm:$0xff] %v524_v58   ;;  %v584_v1 = vadd.f32 %v583_v62, %v582_v59  ;;  %v585_v2 = vpop.f32.mrb[6].mxu1  ;;  %v558_v3 = vpop.f32.mrb[7].mxu0 }
 0x102   :  { %v559_v4 = vadd.f32 %v558_v3, %v557_v63  ;;  %v586_v5 = vpop.f32.mrb[7].mxu1 }
 0x103   :  { %v411_v6 = vadd.f32 %v584_v1, %v556_v61  ;;  %v587_v7 = vadd.f32 %v586_v5, %v585_v2 }
 0x105   :  { %v418_v8 = vadd.f32 %v417_v56, %v411_v6  ;;  %v429_v9 = vmul.f32 %v411_v6, %v411_v6  ;;  %v414_v10 = vadd.f32 %v587_v7, %v559_v4 }
 0x107   :  { %v432_v11 = vadd.f32 %v431_v0, %v429_v9  ;;  %v419_v12 = vadd.f32 %v418_v8, %v414_v10  ;;  %v430_v13 = vmul.f32 %v414_v10, %v414_v10  ;;  %v529_v14 = vpack.c.bf16 %v414_v10, %v411_v6 }
 0x109   :  { %v420_v15 = vrot.slane %v419_v12, 4  ;;  %v433_v16 = vadd.f32 %v432_v11, %v430_v13  ;;  %531 = vst [vmem:[%s791_s2 + $0x8] sm:$0xff] %v529_v14  }
 0x10b   :  { %v421_v17 = vadd.f32 %v420_v15, %v419_v12  ;;  %v434_v18 = vrot.slane %v433_v16, 4 }
 0x10d   :  { %v422_v19 = vrot.slane %v421_v17, 2  ;;  %v435_v20 = vadd.f32 %v434_v18, %v433_v16 }
 0x10f   :  { %v423_v21 = vadd.f32 %v422_v19, %v421_v17  ;;  %v436_v22 = vrot.slane %v435_v20, 2 }
 0x111   :  { %v424_v23 = vrot.slane %v423_v21, 1  ;;  %v437_v24 = vadd.f32 %v436_v22, %v435_v20 }
 0x113   :  { %v425_v25 = vadd.f32 %v424_v23, %v423_v21  ;;  %v438_v26 = vrot.slane %v437_v24, 1 }
 0x115   :  { %426 = vst [vmem:[%s792_s3] sm:$0x1] %v425_v25  ;;  %v439_v27 = vadd.f32 %v438_v26, %v437_v24 }
 0x117   :  { %440 = vst [vmem:[%s793_s4] sm:$0x1] %v439_v27 }

// kernel: _lambda_.32
= control target key start
LH: loop header
LB: loop body
LE: loop exit
PB: predicated region body
PF: predicated region fallthrough
CT: control target
= control target key end

     0   :  { %s148_s0 = inlined_call_operand.vmem [shape: bf16[32,128], index: 0, kind: input, shape index: {}]   ;;  %s149_s1 = inlined_call_operand.vmem [shape: f32[1,128], index: 1, kind: input, shape index: {}]   ;;  %s150_s2 = inlined_call_operand.vmem [shape: f32[1,128], index: 2, kind: input, shape index: {}]   ;;  %s151_s3 = inlined_call_operand.vmem [shape: bf16[32,128], index: 3, kind: output, shape index: {}]  }
   0x1   :  { %v91_v0 = vld [vmem:[%s148_s0] sm:$0xff]   ;;  %v108_v4 = vld [vmem:[%s148_s0 + $0x8] sm:$0xff]  }
   0x2   :  { %v80_v1 = vld [vmem:[%s149_s1] ss:$0 sm:$0xff]  ;;  %v92_v2 = vunpack.c.l.bf16 %v91_v0  ;;  %v93_v3 = vunpack.c.h.bf16 %v91_v0  ;;  %v96_v6 = vunpack.c.l.bf16 %v108_v4  ;;  %v97_v7 = vunpack.c.h.bf16 %v108_v4 }
   0x3   :  { %v81_v5 = vld [vmem:[%s150_s2] ss:$0 sm:$0xff] }
   0x4   :  { %v29_v8 = vmul.f32 %v92_v2, %v80_v1  ;;  %v30_v9 = vmul.f32 %v93_v3, %v80_v1  ;;  %v31_v10 = vmul.f32 %v96_v6, %v80_v1  ;;  %v32_v11 = vmul.f32 %v97_v7, %v80_v1 }
   0x6   :  { %v40_v12 = vadd.f32 %v81_v5, %v29_v8  ;;  %v41_v13 = vadd.f32 %v81_v5, %v30_v9  ;;  %v42_v14 = vadd.f32 %v81_v5, %v31_v10  ;;  %v43_v15 = vadd.f32 %v81_v5, %v32_v11 }
   0x8   :  { %vm44_vm0 = vcmp.gt.f32.partialorder %v40_v12, 0.0  ;;  %vm45_vm1 = vcmp.gt.f32.partialorder %v41_v13, 0.0  ;;  %v48_v16 = vmul.f32 0.2, %v40_v12  ;;  %v49_v17 = vmul.f32 0.2, %v41_v13 }
   0x9   :  { %vm46_vm2 = vcmp.gt.f32.partialorder %v42_v14, 0.0  ;;  %vm47_vm3 = vcmp.gt.f32.partialorder %v43_v15, 0.0  ;;  %v50_v18 = vmul.f32 0.2, %v42_v14  ;;  %v51_v19 = vmul.f32 0.2, %v43_v15 }
   0xa   :  { %v52_v20 = vsel %vm44_vm0, %v40_v12, %v48_v16  ;;  %v53_v21 = vsel %vm45_vm1, %v41_v13, %v49_v17 }
   0xb   :  { %v101_v22 = vpack.c.bf16 %v53_v21, %v52_v20  ;;  %v54_v23 = vsel %vm46_vm2, %v42_v14, %v50_v18  ;;  %v55_v24 = vsel %vm47_vm3, %v43_v15, %v51_v19 }
   0xc   :  { %v106_v25 = vpack.c.bf16 %v55_v24, %v54_v23 }
   0xd   :  { %102 = vst [vmem:[%s151_s3] sm:$0xff] %v101_v22  }
   0xe   :  { %109 = vst [vmem:[%s151_s3 + $0x8] sm:$0xff] %v106_v25  }

// kernel: _lambda_.49
= control target key start
LH: loop header
LB: loop body
LE: loop exit
PB: predicated region body
PF: predicated region fallthrough
CT: control target
= control target key end

     0   :  { %s756_s1 = inlined_call_operand.vmem [shape: bf16[512,128], index: 1, kind: input, shape index: {}]   ;;  %s757_s0 = inlined_call_operand.vmem [shape: bf16[24,512], index: 0, kind: input, shape index: {}]   ;;  %s758_s2 = inlined_call_operand.vmem [shape: bf16[24,128], index: 2, kind: output, shape index: {0}]   ;;  %s759_s3 = inlined_call_operand.vmem [shape: f32[1,128], index: 3, kind: output, shape index: {1}]   ;;  %s760_s4 = inlined_call_operand.vmem [shape: f32[1,128], index: 4, kind: output, shape index: {2}]  }
   0x1   :  { %v563_v0 = vld [vmem:[%s756_s1 + $0x40] sm:$0xff]   ;;  %v567_v4 = vld [vmem:[%s756_s1 + $0x48] sm:$0xff]   ;;  %v571_v8 = vld [vmem:[%s756_s1 + $0x50] sm:$0xff]  }
   0x2   :  { %v564_v1 = vld [vmem:[%s756_s1 + $0xc0] sm:$0xff]   ;;  %507 = vmatprep.subr.bf16.mxu0 %v563_v0  ;;  %v568_v5 = vld [vmem:[%s756_s1 + $0xc8] sm:$0xff]   ;;  %v572_v9 = vld [vmem:[%s756_s1 + $0xd0] sm:$0xff]  }
   0x3   :  { %v565_v2 = vld [vmem:[%s756_s1] sm:$0xff]   ;;  %535 = vmatprep.subr.bf16.mxu1 %v564_v1  ;;  %v569_v6 = vld [vmem:[%s756_s1 + $0x8] sm:$0xff]   ;;  %v573_v10 = vld [vmem:[%s756_s1 + $0x10] sm:$0xff]  }
   0x4   :  { %v566_v3 = vld [vmem:[%s756_s1 + $0x80] sm:$0xff]   ;;  %508 = vmatpush3.bf16.msra.mxu0 %v565_v2  ;;  %v570_v7 = vld [vmem:[%s756_s1 + $0x88] sm:$0xff]   ;;  %v574_v11 = vld [vmem:[%s756_s1 + $0x90] sm:$0xff]  }
   0x5   :  { %536 = vmatpush3.bf16.msra.mxu1 %v566_v3  ;;  %509 = vmatprep.subr.bf16.mxu0 %v567_v4  ;;  %v575_v12 = vld [vmem:[%s756_s1 + $0x58] sm:$0xff]   ;;  %v579_v16 = vld [vmem:[%s756_s1 + $0x60] sm:$0xff]   ;;  %v583_v20 = vld [vmem:[%s756_s1 + $0x68] sm:$0xff]  }
   0x6   :  { %537 = vmatprep.subr.bf16.mxu1 %v568_v5  ;;  %v576_v13 = vld [vmem:[%s756_s1 + $0xd8] sm:$0xff]   ;;  %v580_v17 = vld [vmem:[%s756_s1 + $0xe0] sm:$0xff]   ;;  %v584_v21 = vld [vmem:[%s756_s1 + $0xe8] sm:$0xff]  }
   0x7   :  { %v577_v14 = vld [vmem:[%s756_s1 + $0x18] sm:$0xff]   ;;  %v581_v18 = vld [vmem:[%s756_s1 + $0x20] sm:$0xff]   ;;  %v585_v22 = vld [vmem:[%s756_s1 + $0x28] sm:$0xff]  }
   0x8   :  { %510 = vmatpush3.bf16.msra.mxu0 %v569_v6  ;;  %v578_v15 = vld [vmem:[%s756_s1 + $0x98] sm:$0xff]   ;;  %v582_v19 = vld [vmem:[%s756_s1 + $0xa0] sm:$0xff]   ;;  %v586_v23 = vld [vmem:[%s756_s1 + $0xa8] sm:$0xff]  }
   0x9   :  { %538 = vmatpush3.bf16.msra.mxu1 %v570_v7  ;;  %511 = vmatprep.subr.bf16.mxu0 %v571_v8  ;;  %v587_v24 = vld [vmem:[%s756_s1 + $0x70] sm:$0xff]   ;;  %v591_v28 = vld [vmem:[%s756_s1 + $0x78] sm:$0xff]   ;;  %v19_v36 = vld [vmem:[%s757_s0 + $0x20] sm:$0xff] }
   0xa   :  { %539 = vmatprep.subr.bf16.mxu1 %v572_v9  ;;  %v588_v25 = vld [vmem:[%s756_s1 + $0xf0] sm:$0xff]   ;;  %v592_v29 = vld [vmem:[%s756_s1 + $0xf8] sm:$0xff]   ;;  %v461_v37 = vcombine.high %v19_v36, %v19_v36  ;;  %v20_v38 = vld [vmem:[%s757_s0 + $0x28] sm:$0xff]  ;;  %v460_v40 = vcombine.low %v19_v36, %v19_v36 }
   0xb   :  { %v589_v26 = vld [vmem:[%s756_s1 + $0x30] sm:$0xff]   ;;  %v593_v30 = vld [vmem:[%s756_s1 + $0x38] sm:$0xff]   ;;  %v463_v39 = vcombine.high %v20_v38, %v20_v38  ;;  %v462_v41 = vcombine.low %v20_v38, %v20_v38 }
   0xc   :  { %512 = vmatpush3.bf16.msra.mxu0 %v573_v10  ;;  %v590_v27 = vld [vmem:[%s756_s1 + $0xb0] sm:$0xff]   ;;  %v594_v31 = vld [vmem:[%s756_s1 + $0xb8] sm:$0xff]  }
   0xd   :  { %540 = vmatpush3.bf16.msra.mxu1 %v574_v11  ;;  %513 = vmatprep.subr.bf16.mxu0 %v575_v12  ;;  %v595_v32 = vld [vmem:[%s757_s0] ss:$16 sps:$4 sm:$0xff]   ;;  %v597_v33 = vld [vmem:[%s757_s0 + $0x4] ss:$16 sps:$4 sm:$0xff]   ;;  %v598_v34 = vld [vmem:[%s757_s0 + $0x8] ss:$16 sps:$4 sm:$0xff]  }
   0xe   :  { %541 = vmatprep.subr.bf16.mxu1 %v576_v13  ;;  %v600_v35 = vld [vmem:[%s757_s0 + $0xc] ss:$16 sps:$4 sm:$0xff]   ;;  %343 = vmatprep.mubr.bf16.mxu0 %v597_v33 }
   0xf   :  { %391 = vmatprep.mubr.bf16.mxu1 %v600_v35 }
  0x10   :  { %514 = vmatpush3.bf16.msra.mxu0 %v577_v14 }
  0x11   :  { %542 = vmatpush3.bf16.msra.mxu1 %v578_v15  ;;  %515 = vmatprep.subr.bf16.mxu0 %v579_v16 }
  0x12   :  { %543 = vmatprep.subr.bf16.mxu1 %v580_v17 }
  0x14   :  { %516 = vmatpush3.bf16.msra.mxu0 %v581_v18 }
  0x15   :  { %544 = vmatpush3.bf16.msra.mxu1 %v582_v19  ;;  %517 = vmatprep.subr.bf16.mxu0 %v583_v20 }
  0x16   :  { %545 = vmatprep.subr.bf16.mxu1 %v584_v21 }
  0x18   :  { %518 = vmatpush3.bf16.msra.mxu0 %v585_v22 }
  0x19   :  { %546 = vmatpush3.bf16.msra.mxu1 %v586_v23  ;;  %519 = vmatprep.subr.bf16.mxu0 %v587_v24 }
  0x1a   :  { %547 = vmatprep.subr.bf16.mxu1 %v588_v25 }
  0x1c   :  { %520 = vmatpush3.bf16.msra.mxu0 %v589_v26 }
  0x1d   :  { %548 = vmatpush3.bf16.msra.mxu1 %v590_v27  ;;  %521 = vmatprep.subr.bf16.mxu0 %v591_v28 }
  0x1e   :  { %549 = vmatprep.subr.bf16.mxu1 %v592_v29 }
  0x20   :  { %522 = vmatpush3.bf16.msra.mxu0 %v593_v30 }
  0x21   :  { %550 = vmatpush3.bf16.msra.mxu1 %v594_v31 }
  0x23   :  { %344 = vmatmul.mubr.bf16.vlgmr.msra.gmra.mrb[0].mxu0 %v595_v32 }
  0x24   :  { %392 = vmatmul.mubr.bf16.vlgmr.msra.gmra.mrb[0].mxu1 %v598_v34  ;;  %351 = vmatprep.mubr.bf16.mxu0 %v461_v37 }
  0x25   :  { %399 = vmatprep.mubr.bf16.mxu1 %v463_v39 }
  0x2b   :  { %352 = vmatmul.mubr.bf16.gmra.mrb[4].mxu0 %v460_v40 }
  0x2c   :  { %400 = vmatmul.mubr.bf16.gmra.mrb[4].mxu1 %v462_v41 }
  0xf6   :  { %v523_v42 = vpop.f32.mrb[0].mxu0 }
  0xf7   :  { %v551_v43 = vpop.f32.mrb[0].mxu1  ;;  %v524_v44 = vpop.f32.mrb[1].mxu0 }
  0xf8   :  { %v525_v45 = vadd.f32 %v524_v44, %v523_v42  ;;  %v552_v46 = vpop.f32.mrb[1].mxu1  ;;  %v526_v47 = vpop.f32.mrb[2].mxu0 }
  0xf9   :  { %v553_v48 = vadd.f32 %v552_v46, %v551_v43  ;;  %v554_v49 = vpop.f32.mrb[2].mxu1  ;;  %v527_v50 = vpop.f32.mrb[3].mxu0 }
  0xfa   :  { %v528_v51 = vadd.f32 %v527_v50, %v526_v47  ;;  %v555_v52 = vpop.f32.mrb[3].mxu1 }
  0xfb   :  { %v394_v53 = vadd.f32 %v553_v48, %v525_v45  ;;  %v556_v54 = vadd.f32 %v555_v52, %v554_v49 }
  0xfd   :  { %v397_v55 = vadd.f32 %v556_v54, %v528_v51  ;;  %v416_v57 = vmul.f32 %v394_v53, %v394_v53 }
  0xfe   :  { %v529_v56 = vpop.f32.mrb[4].mxu0 }
  0xff   :  { %v407_v58 = vadd.f32 %v397_v55, %v394_v53  ;;  %v417_v59 = vmul.f32 %v397_v55, %v397_v55  ;;  %v505_v60 = vpack.c.bf16 %v397_v55, %v394_v53  ;;  %v557_v61 = vpop.f32.mrb[4].mxu1  ;;  %v530_v62 = vpop.f32.mrb[5].mxu0 }
 0x100   :  { %v531_v63 = vadd.f32 %v530_v62, %v529_v56  ;;  %v558_v0 = vpop.f32.mrb[5].mxu1  ;;  %v532_v1 = vpop.f32.mrb[6].mxu0 }
 0x101   :  { %v419_v2 = vadd.f32 %v417_v59, %v416_v57  ;;  %506 = vst [vmem:[%s758_s2] sm:$0xff] %v505_v60   ;;  %v559_v3 = vadd.f32 %v558_v0, %v557_v61  ;;  %v560_v4 = vpop.f32.mrb[6].mxu1  ;;  %v533_v5 = vpop.f32.mrb[7].mxu0 }
 0x102   :  { %v561_v6 = vpop.f32.mrb[7].mxu1 }
 0x103   :  { %v402_v7 = vadd.f32 %v559_v3, %v531_v63 }
 0x105   :  { %v408_v8 = vadd.f32 %v407_v58, %v402_v7  ;;  %v418_v9 = vmul.f32 %v402_v7, %v402_v7  ;;  %v501_v10 = vpack.c.bf16 %v402_v7, %v402_v7 }
 0x107   :  { %v409_v11 = vrot.slane %v408_v8, 4  ;;  %v420_v12 = vadd.f32 %v419_v2, %v418_v9  ;;  %443 = vst [vmem:[%s758_s2 + $0x8] sm:$0xf] %v501_v10 }
 0x109   :  { %v410_v13 = vadd.f32 %v409_v11, %v408_v8  ;;  %v421_v14 = vrot.slane %v420_v12, 4 }
 0x10b   :  { %v411_v15 = vrot.slane %v410_v13, 2  ;;  %v422_v16 = vadd.f32 %v421_v14, %v420_v12 }
 0x10d   :  { %v412_v17 = vadd.f32 %v411_v15, %v410_v13  ;;  %v423_v18 = vrot.slane %v422_v16, 2 }
 0x10f   :  { %v413_v19 = vrot.slane %v412_v17, 1  ;;  %v424_v20 = vadd.f32 %v423_v18, %v422_v16 }
 0x111   :  { %v414_v21 = vadd.f32 %v413_v19, %v412_v17  ;;  %v425_v22 = vrot.slane %v424_v20, 1 }
 0x113   :  { %415 = vst [vmem:[%s759_s3] sm:$0x1] %v414_v21  ;;  %v426_v23 = vadd.f32 %v425_v22, %v424_v20 }
 0x115   :  { %427 = vst [vmem:[%s760_s4] sm:$0x1] %v426_v23 }

// kernel: _lambda_.33
= control target key start
LH: loop header
LB: loop body
LE: loop exit
PB: predicated region body
PF: predicated region fallthrough
CT: control target
= control target key end

     0   :  { %s1632_s1 = inlined_call_operand.vmem [shape: bf16[1024,128], index: 1, kind: input, shape index: {}]   ;;  %s1633_s0 = inlined_call_operand.vmem [shape: bf16[56,1024], index: 0, kind: input, shape index: {}]   ;;  %s1634_s2 = inlined_call_operand.vmem [shape: f32[1,128], index: 2, kind: input, shape index: {}]   ;;  %s1635_s3 = inlined_call_operand.vmem [shape: f32[56,128], index: 3, kind: output, shape index: {}]  }
   0x1   :  { %v1234_v0 = vld [vmem:[%s1632_s1 + $0x40] sm:$0xff]   ;;  %v1238_v4 = vld [vmem:[%s1632_s1 + $0x48] sm:$0xff]   ;;  %v1242_v8 = vld [vmem:[%s1632_s1 + $0x50] sm:$0xff]  }
   0x2   :  { %v1235_v1 = vld [vmem:[%s1632_s1 + $0xc0] sm:$0xff]   ;;  %1074 = vmatprep.subr.bf16.mxu0 %v1234_v0  ;;  %v1239_v5 = vld [vmem:[%s1632_s1 + $0xc8] sm:$0xff]   ;;  %v1243_v9 = vld [vmem:[%s1632_s1 + $0xd0] sm:$0xff]  }
   0x3   :  { %v1236_v2 = vld [vmem:[%s1632_s1] sm:$0xff]   ;;  %1114 = vmatprep.subr.bf16.mxu1 %v1235_v1  ;;  %v1240_v6 = vld [vmem:[%s1632_s1 + $0x8] sm:$0xff]   ;;  %v1244_v10 = vld [vmem:[%s1632_s1 + $0x10] sm:$0xff]  }
   0x4   :  { %v1237_v3 = vld [vmem:[%s1632_s1 + $0x80] sm:$0xff]   ;;  %1075 = vmatpush3.bf16.msra.mxu0 %v1236_v2  ;;  %v1241_v7 = vld [vmem:[%s1632_s1 + $0x88] sm:$0xff]   ;;  %v1245_v11 = vld [vmem:[%s1632_s1 + $0x90] sm:$0xff]  }
   0x5   :  { %1115 = vmatpush3.bf16.msra.mxu1 %v1237_v3  ;;  %1076 = vmatprep.subr.bf16.mxu0 %v1238_v4  ;;  %v1246_v12 = vld [vmem:[%s1632_s1 + $0x58] sm:$0xff]   ;;  %v1250_v16 = vld [vmem:[%s1632_s1 + $0x60] sm:$0xff]   ;;  %v1254_v20 = vld [vmem:[%s1632_s1 + $0x68] sm:$0xff]  }
   0x6   :  { %1116 = vmatprep.subr.bf16.mxu1 %v1239_v5  ;;  %v1247_v13 = vld [vmem:[%s1632_s1 + $0xd8] sm:$0xff]   ;;  %v1251_v17 = vld [vmem:[%s1632_s1 + $0xe0] sm:$0xff]   ;;  %v1255_v21 = vld [vmem:[%s1632_s1 + $0xe8] sm:$0xff]  }
   0x7   :  { %v1248_v14 = vld [vmem:[%s1632_s1 + $0x18] sm:$0xff]   ;;  %v1252_v18 = vld [vmem:[%s1632_s1 + $0x20] sm:$0xff]   ;;  %v1256_v22 = vld [vmem:[%s1632_s1 + $0x28] sm:$0xff]  }
   0x8   :  { %1077 = vmatpush3.bf16.msra.mxu0 %v1240_v6  ;;  %v1249_v15 = vld [vmem:[%s1632_s1 + $0x98] sm:$0xff]   ;;  %v1253_v19 = vld [vmem:[%s1632_s1 + $0xa0] sm:$0xff]   ;;  %v1257_v23 = vld [vmem:[%s1632_s1 + $0xa8] sm:$0xff]  }
   0x9   :  { %1117 = vmatpush3.bf16.msra.mxu1 %v1241_v7  ;;  %1078 = vmatprep.subr.bf16.mxu0 %v1242_v8  ;;  %v1258_v24 = vld [vmem:[%s1632_s1 + $0x70] sm:$0xff]   ;;  %v1262_v28 = vld [vmem:[%s1632_s1 + $0x78] sm:$0xff]   ;;  %v15_v32 = vld [vmem:[%s1633_s0] sm:$0xff] }
   0xa   :  { %1118 = vmatprep.subr.bf16.mxu1 %v1243_v9  ;;  %v1259_v25 = vld [vmem:[%s1632_s1 + $0xf0] sm:$0xff]   ;;  %v1263_v29 = vld [vmem:[%s1632_s1 + $0xf8] sm:$0xff]   ;;  %v19_v33 = vld [vmem:[%s1633_s0 + $0x20] sm:$0xff] }
   0xb   :  { %v1260_v26 = vld [vmem:[%s1632_s1 + $0x30] sm:$0xff]   ;;  %v1264_v30 = vld [vmem:[%s1632_s1 + $0x38] sm:$0xff]   ;;  %v16_v34 = vld [vmem:[%s1633_s0 + $0x8] sm:$0xff]  ;;  %v978_v35 = vcombine.low %v15_v32, %v19_v33  ;;  %v979_v36 = vcombine.high %v15_v32, %v19_v33 }
   0xc   :  { %1079 = vmatpush3.bf16.msra.mxu0 %v1244_v10  ;;  %v1261_v27 = vld [vmem:[%s1632_s1 + $0xb0] sm:$0xff]   ;;  %v1265_v31 = vld [vmem:[%s1632_s1 + $0xb8] sm:$0xff]   ;;  %v20_v37 = vld [vmem:[%s1633_s0 + $0x28] sm:$0xff] }
   0xd   :  { %1119 = vmatpush3.bf16.msra.mxu1 %v1245_v11  ;;  %1080 = vmatprep.subr.bf16.mxu0 %v1246_v12  ;;  %v980_v38 = vcombine.low %v16_v34, %v20_v37  ;;  %v981_v39 = vcombine.high %v16_v34, %v20_v37  ;;  %v1266_v40 = vld [vmem:[%s1632_s1 + $0x140] sm:$0xff]   ;;  %v1270_v44 = vld [vmem:[%s1632_s1 + $0x148] sm:$0xff]   ;;  %v1274_v56 = vld [vmem:[%s1632_s1 + $0x150] sm:$0xff]  }
   0xe   :  { %1120 = vmatprep.subr.bf16.mxu1 %v1247_v13  ;;  %742 = vmatprep.mubr.bf16.mxu0 %v979_v36  ;;  %v1267_v41 = vld [vmem:[%s1632_s1 + $0x1c0] sm:$0xff]   ;;  %v1271_v45 = vld [vmem:[%s1632_s1 + $0x1c8] sm:$0xff]   ;;  %v1275_v57 = vld [vmem:[%s1632_s1 + $0x1d0] sm:$0xff]  }
   0xf   :  { %806 = vmatprep.mubr.bf16.mxu1 %v981_v39  ;;  %v1268_v42 = vld [vmem:[%s1632_s1 + $0x100] sm:$0xff]   ;;  %v1272_v46 = vld [vmem:[%s1632_s1 + $0x108] sm:$0xff]   ;;  %v1276_v58 = vld [vmem:[%s1632_s1 + $0x110] sm:$0xff]  }
  0x10   :  { %1081 = vmatpush3.bf16.msra.mxu0 %v1248_v14  ;;  %v1269_v43 = vld [vmem:[%s1632_s1 + $0x180] sm:$0xff]   ;;  %v1273_v47 = vld [vmem:[%s1632_s1 + $0x188] sm:$0xff]   ;;  %v1277_v59 = vld [vmem:[%s1632_s1 + $0x190] sm:$0xff]  }
  0x11   :  { %1121 = vmatpush3.bf16.msra.mxu1 %v1249_v15  ;;  %1082 = vmatprep.subr.bf16.mxu0 %v1250_v16  ;;  %v23_v48 = vld [vmem:[%s1633_s0 + $0x40] sm:$0xff]  ;;  %v24_v51 = vld [vmem:[%s1633_s0 + $0x48] sm:$0xff]  ;;  %v1278_v60 = vld [vmem:[%s1632_s1 + $0x158] sm:$0xff]  }
  0x12   :  { %1122 = vmatprep.subr.bf16.mxu1 %v1251_v17  ;;  %v27_v49 = vld [vmem:[%s1633_s0 + $0x60] sm:$0xff]  ;;  %v28_v52 = vld [vmem:[%s1633_s0 + $0x68] sm:$0xff]  ;;  %v1279_v61 = vld [vmem:[%s1632_s1 + $0x1d8] sm:$0xff]  }
  0x13   :  { %v987_v50 = vcombine.high %v23_v48, %v27_v49  ;;  %v986_v53 = vcombine.low %v23_v48, %v27_v49  ;;  %v989_v54 = vcombine.high %v24_v51, %v28_v52  ;;  %v988_v55 = vcombine.low %v24_v51, %v28_v52  ;;  %v1280_v62 = vld [vmem:[%s1632_s1 + $0x118] sm:$0xff]   ;;  %v31_v0 = vld [vmem:[%s1633_s0 + $0x80] sm:$0xff]  ;;  %v32_v2 = vld [vmem:[%s1633_s0 + $0x88] sm:$0xff] }
  0x14   :  { %1083 = vmatpush3.bf16.msra.mxu0 %v1252_v18  ;;  %v1281_v63 = vld [vmem:[%s1632_s1 + $0x198] sm:$0xff]   ;;  %v35_v1 = vld [vmem:[%s1633_s0 + $0xa0] sm:$0xff]  ;;  %v36_v3 = vld [vmem:[%s1633_s0 + $0xa8] sm:$0xff] }
  0x15   :  { %1123 = vmatpush3.bf16.msra.mxu1 %v1253_v19  ;;  %1084 = vmatprep.subr.bf16.mxu0 %v1254_v20  ;;  %v995_v4 = vcombine.high %v31_v0, %v35_v1  ;;  %v997_v5 = vcombine.high %v32_v2, %v36_v3  ;;  %v994_v6 = vcombine.low %v31_v0, %v35_v1  ;;  %v1282_v8 = vld [vmem:[%s1632_s1 + $0x160] sm:$0xff]   ;;  %v1286_v12 = vld [vmem:[%s1632_s1 + $0x168] sm:$0xff]   ;;  %v18_v32 = vld [vmem:[%s1633_s0 + $0x18] sm:$0xff] }
  0x16   :  { %1124 = vmatprep.subr.bf16.mxu1 %v1255_v21  ;;  %v996_v7 = vcombine.low %v32_v2, %v36_v3  ;;  %v1283_v9 = vld [vmem:[%s1632_s1 + $0x1e0] sm:$0xff]   ;;  %v1287_v13 = vld [vmem:[%s1632_s1 + $0x1e8] sm:$0xff]   ;;  %v1294_v21 = vld [vmem:[%s1632_s1 + $0x170] sm:$0xff]  }
  0x17   :  { %v1284_v10 = vld [vmem:[%s1632_s1 + $0x120] sm:$0xff]   ;;  %v1288_v14 = vld [vmem:[%s1632_s1 + $0x128] sm:$0xff]   ;;  %v22_v33 = vld [vmem:[%s1633_s0 + $0x38] sm:$0xff] }
  0x18   :  { %1085 = vmatpush3.bf16.msra.mxu0 %v1256_v22  ;;  %v1285_v11 = vld [vmem:[%s1632_s1 + $0x1a0] sm:$0xff]   ;;  %v1289_v15 = vld [vmem:[%s1632_s1 + $0x1a8] sm:$0xff]   ;;  %v984_v36 = vcombine.low %v18_v32, %v22_v33  ;;  %v25_v37 = vld [vmem:[%s1633_s0 + $0x50] sm:$0xff] }
  0x19   :  { %1125 = vmatpush3.bf16.msra.mxu1 %v1257_v23  ;;  %1086 = vmatprep.subr.bf16.mxu0 %v1258_v24  ;;  %v39_v16 = vld [vmem:[%s1633_s0 + $0xc0] sm:$0xff]  ;;  %v40_v17 = vld [vmem:[%s1633_s0 + $0xc8] sm:$0xff]  ;;  %v1295_v23 = vld [vmem:[%s1632_s1 + $0x1f0] sm:$0xff]  }
  0x1a   :  { %1126 = vmatprep.subr.bf16.mxu1 %v1259_v25  ;;  %v1003_v18 = vcombine.high %v39_v16, %v39_v16  ;;  %v1005_v19 = vcombine.high %v40_v17, %v40_v17  ;;  %v1002_v20 = vcombine.low %v39_v16, %v39_v16  ;;  %v1004_v22 = vcombine.low %v40_v17, %v40_v17  ;;  %v1296_v24 = vld [vmem:[%s1632_s1 + $0x130] sm:$0xff]   ;;  %v26_v39 = vld [vmem:[%s1633_s0 + $0x58] sm:$0xff] }
  0x1b   :  { %v1297_v25 = vld [vmem:[%s1632_s1 + $0x1b0] sm:$0xff]  }
  0x1c   :  { %1087 = vmatpush3.bf16.msra.mxu0 %v1260_v26  ;;  %v1298_v26 = vld [vmem:[%s1632_s1 + $0x178] sm:$0xff]   ;;  %v41_v52 = vld [vmem:[%s1633_s0 + $0xd0] sm:$0xff] }
  0x1d   :  { %1127 = vmatpush3.bf16.msra.mxu1 %v1261_v27  ;;  %1088 = vmatprep.subr.bf16.mxu0 %v1262_v28  ;;  %v1299_v27 = vld [vmem:[%s1632_s1 + $0x1f8] sm:$0xff]  }
  0x1e   :  { %1128 = vmatprep.subr.bf16.mxu1 %v1263_v29  ;;  %v1300_v28 = vld [vmem:[%s1632_s1 + $0x138] sm:$0xff]  }
  0x1f   :  { %v1301_v29 = vld [vmem:[%s1632_s1 + $0x1b8] sm:$0xff]  }
  0x20   :  { %1089 = vmatpush3.bf16.msra.mxu0 %v1264_v30  ;;  %v17_v30 = vld [vmem:[%s1633_s0 + $0x10] sm:$0xff] }
  0x21   :  { %1129 = vmatpush3.bf16.msra.mxu1 %v1265_v31  ;;  %1154 = vmatprep.subr.bf16.mxu0 %v1266_v40  ;;  %v21_v31 = vld [vmem:[%s1633_s0 + $0x30] sm:$0xff]  ;;  %v985_v40 = vcombine.high %v18_v32, %v22_v33 }
  0x22   :  { %1194 = vmatprep.subr.bf16.mxu1 %v1267_v41  ;;  %v982_v34 = vcombine.low %v17_v30, %v21_v31 }
  0x23   :  { %743 = vmatmul.mubr.bf16.vlgmr.msra.gmra.mrb[0].mxu0 %v978_v35  ;;  %v983_v35 = vcombine.high %v17_v30, %v21_v31 }
  0x24   :  { %807 = vmatmul.mubr.bf16.vlgmr.msra.gmra.mrb[0].mxu1 %v980_v38  ;;  %1155 = vmatpush3.bf16.msra.mxu0 %v1268_v42  ;;  %v29_v38 = vld [vmem:[%s1633_s0 + $0x70] sm:$0xff]  ;;  %v30_v42 = vld [vmem:[%s1633_s0 + $0x78] sm:$0xff] }
  0x25   :  { %1195 = vmatpush3.bf16.msra.mxu1 %v1269_v43  ;;  %1156 = vmatprep.subr.bf16.mxu0 %v1270_v44  ;;  %v991_v41 = vcombine.high %v25_v37, %v29_v38  ;;  %v993_v43 = vcombine.high %v26_v39, %v30_v42  ;;  %v33_v44 = vld [vmem:[%s1633_s0 + $0x90] sm:$0xff]  ;;  %v990_v48 = vcombine.low %v25_v37, %v29_v38 }
  0x26   :  { %1196 = vmatprep.subr.bf16.mxu1 %v1271_v45  ;;  %750 = vmatprep.mubr.bf16.mxu0 %v987_v50  ;;  %v37_v45 = vld [vmem:[%s1633_s0 + $0xb0] sm:$0xff]  ;;  %v992_v49 = vcombine.low %v26_v39, %v30_v42 }
  0x27   :  { %814 = vmatprep.mubr.bf16.mxu1 %v989_v54  ;;  %v999_v50 = vcombine.high %v33_v44, %v37_v45  ;;  %v998_v54 = vcombine.low %v33_v44, %v37_v45 }
  0x28   :  { %1157 = vmatpush3.bf16.msra.mxu0 %v1272_v46  ;;  %v34_v46 = vld [vmem:[%s1633_s0 + $0x98] sm:$0xff] }
  0x29   :  { %1197 = vmatpush3.bf16.msra.mxu1 %v1273_v47  ;;  %1158 = vmatprep.subr.bf16.mxu0 %v1274_v56  ;;  %v38_v47 = vld [vmem:[%s1633_s0 + $0xb8] sm:$0xff]  ;;  %v1007_v56 = vcombine.high %v41_v52, %v41_v52 }
  0x2a   :  { %1198 = vmatprep.subr.bf16.mxu1 %v1275_v57  ;;  %v1001_v51 = vcombine.high %v34_v46, %v38_v47 }
  0x2b   :  { %751 = vmatmul.mubr.bf16.gmra.mrb[4].mxu0 %v986_v53  ;;  %v42_v53 = vld [vmem:[%s1633_s0 + $0xd8] sm:$0xff] }
  0x2c   :  { %815 = vmatmul.mubr.bf16.gmra.mrb[4].mxu1 %v988_v55  ;;  %1159 = vmatpush3.bf16.msra.mxu0 %v1276_v58  ;;  %v1000_v55 = vcombine.low %v34_v46, %v38_v47  ;;  %v1009_v57 = vcombine.high %v42_v53, %v42_v53  ;;  %v1006_v58 = vcombine.low %v41_v52, %v41_v52 }
  0x2d   :  { %1199 = vmatpush3.bf16.msra.mxu1 %v1277_v59  ;;  %1160 = vmatprep.subr.bf16.mxu0 %v1278_v60  ;;  %v1008_v59 = vcombine.low %v42_v53, %v42_v53 }
  0x2e   :  { %1200 = vmatprep.subr.bf16.mxu1 %v1279_v61  ;;  %758 = vmatprep.mubr.bf16.mxu0 %v995_v4 }
  0x2f   :  { %822 = vmatprep.mubr.bf16.mxu1 %v997_v5 }
  0x30   :  { %1161 = vmatpush3.bf16.msra.mxu0 %v1280_v62  ;;  %v977_v62 = vld [vmem:[%s1634_s2] ss:$0 sm:$0xff] }
  0x31   :  { %1201 = vmatpush3.bf16.msra.mxu1 %v1281_v63  ;;  %1162 = vmatprep.subr.bf16.mxu0 %v1282_v8 }
  0x32   :  { %1202 = vmatprep.subr.bf16.mxu1 %v1283_v9 }
  0x33   :  { %759 = vmatmul.mubr.bf16.gmra.mrb[8].mxu0 %v994_v6 }
  0x34   :  { %823 = vmatmul.mubr.bf16.gmra.mrb[8].mxu1 %v996_v7  ;;  %1163 = vmatpush3.bf16.msra.mxu0 %v1284_v10 }
  0x35   :  { %1203 = vmatpush3.bf16.msra.mxu1 %v1285_v11  ;;  %1164 = vmatprep.subr.bf16.mxu0 %v1286_v12 }
  0x36   :  { %1204 = vmatprep.subr.bf16.mxu1 %v1287_v13  ;;  %766 = vmatprep.mubr.bf16.mxu0 %v1003_v18 }
  0x37   :  { %830 = vmatprep.mubr.bf16.mxu1 %v1005_v19 }
  0x38   :  { %1165 = vmatpush3.bf16.msra.mxu0 %v1288_v14 }
  0x39   :  { %1205 = vmatpush3.bf16.msra.mxu1 %v1289_v15  ;;  %1166 = vmatprep.subr.bf16.mxu0 %v1294_v21 }
  0x3a   :  { %1206 = vmatprep.subr.bf16.mxu1 %v1295_v23 }
  0x3b   :  { %767 = vmatmul.mubr.bf16.gmra.mrb[12].mxu0 %v1002_v20 }
  0x3c   :  { %831 = vmatmul.mubr.bf16.gmra.mrb[12].mxu1 %v1004_v22  ;;  %1167 = vmatpush3.bf16.msra.mxu0 %v1296_v24 }
  0x3d   :  { %1207 = vmatpush3.bf16.msra.mxu1 %v1297_v25  ;;  %1168 = vmatprep.subr.bf16.mxu0 %v1298_v26 }
  0x3e   :  { %1208 = vmatprep.subr.bf16.mxu1 %v1299_v27  ;;  %870 = vmatprep.mubr.bf16.mxu0 %v983_v35 }
  0x3f   :  { %934 = vmatprep.mubr.bf16.mxu1 %v985_v40 }
  0x40   :  { %1169 = vmatpush3.bf16.msra.mxu0 %v1300_v28 }
  0x41   :  { %1209 = vmatpush3.bf16.msra.mxu1 %v1301_v29 }
  0x43   :  { %871 = vmatmul.mubr.bf16.vlgmr.msra.gmra.mrb[16].mxu0 %v982_v34 }
  0x44   :  { %935 = vmatmul.mubr.bf16.vlgmr.msra.gmra.mrb[16].mxu1 %v984_v36  ;;  %878 = vmatprep.mubr.bf16.mxu0 %v991_v41 }
  0x45   :  { %942 = vmatprep.mubr.bf16.mxu1 %v993_v43 }
  0x4b   :  { %879 = vmatmul.mubr.bf16.gmra.mrb[20].mxu0 %v990_v48 }
  0x4c   :  { %943 = vmatmul.mubr.bf16.gmra.mrb[20].mxu1 %v992_v49  ;;  %886 = vmatprep.mubr.bf16.mxu0 %v999_v50 }
  0x4d   :  { %950 = vmatprep.mubr.bf16.mxu1 %v1001_v51 }
  0x53   :  { %887 = vmatmul.mubr.bf16.gmra.mrb[24].mxu0 %v998_v54 }
  0x54   :  { %951 = vmatmul.mubr.bf16.gmra.mrb[24].mxu1 %v1000_v55  ;;  %894 = vmatprep.mubr.bf16.mxu0 %v1007_v56 }
  0x55   :  { %958 = vmatprep.mubr.bf16.mxu1 %v1009_v57 }
  0x5b   :  { %895 = vmatmul.mubr.bf16.gmra.mrb[28].mxu0 %v1006_v58 }
  0x5c   :  { %959 = vmatmul.mubr.bf16.gmra.mrb[28].mxu1 %v1008_v59 }
  0xf6   :  { %v1090_v60 = vpop.f32.mrb[0].mxu0 }
  0xf7   :  { %v1130_v61 = vpop.f32.mrb[0].mxu1  ;;  %v1091_v63 = vpop.f32.mrb[1].mxu0 }
  0xf8   :  { %v1092_v0 = vadd.f32 %v1091_v63, %v1090_v60  ;;  %v1131_v1 = vpop.f32.mrb[1].mxu1  ;;  %v1093_v2 = vpop.f32.mrb[2].mxu0 }
  0xf9   :  { %v1132_v3 = vadd.f32 %v1131_v1, %v1130_v61  ;;  %v1133_v4 = vpop.f32.mrb[2].mxu1  ;;  %v1094_v5 = vpop.f32.mrb[3].mxu0 }
  0xfa   :  { %v745_v6 = vadd.f32 %v1092_v0, %v977_v62  ;;  %v1095_v7 = vadd.f32 %v1094_v5, %v1093_v2  ;;  %v1134_v8 = vpop.f32.mrb[3].mxu1 }
  0xfb   :  { %v1135_v9 = vadd.f32 %v1134_v8, %v1133_v4 }
  0xfc   :  { %v809_v10 = vadd.f32 %v1132_v3, %v745_v6  ;;  %v748_v11 = vadd.f32 %v1095_v7, %v977_v62 }
  0xfe   :  { %v812_v12 = vadd.f32 %v1135_v9, %v748_v11  ;;  %v1096_v13 = vpop.f32.mrb[4].mxu0 }
  0xff   :  { %v1136_v14 = vpop.f32.mrb[4].mxu1  ;;  %v1097_v15 = vpop.f32.mrb[5].mxu0 }
 0x100   :  { %v1098_v16 = vadd.f32 %v1097_v15, %v1096_v13  ;;  %v1137_v17 = vpop.f32.mrb[5].mxu1  ;;  %v1099_v18 = vpop.f32.mrb[6].mxu0 }
 0x101   :  { %v1138_v19 = vadd.f32 %v1137_v17, %v1136_v14  ;;  %v1139_v20 = vpop.f32.mrb[6].mxu1  ;;  %v1100_v21 = vpop.f32.mrb[7].mxu0 }
 0x102   :  { %v753_v22 = vadd.f32 %v1098_v16, %v977_v62  ;;  %v1101_v23 = vadd.f32 %v1100_v21, %v1099_v18  ;;  %v1140_v24 = vpop.f32.mrb[7].mxu1 }
 0x103   :  { %v1141_v25 = vadd.f32 %v1140_v24, %v1139_v20 }
 0x104   :  { %v817_v26 = vadd.f32 %v1138_v19, %v753_v22  ;;  %v756_v27 = vadd.f32 %v1101_v23, %v977_v62 }
 0x106   :  { %v820_v28 = vadd.f32 %v1141_v25, %v756_v27  ;;  %v1102_v29 = vpop.f32.mrb[8].mxu0 }
 0x107   :  { %v1142_v30 = vpop.f32.mrb[8].mxu1  ;;  %v1103_v31 = vpop.f32.mrb[9].mxu0 }
 0x108   :  { %v1143_v32 = vpop.f32.mrb[9].mxu1  ;;  %v1104_v33 = vadd.f32 %v1103_v31, %v1102_v29  ;;  %v1105_v35 = vpop.f32.mrb[10].mxu0 }
 0x109   :  { %v1144_v34 = vadd.f32 %v1143_v32, %v1142_v30  ;;  %v1145_v36 = vpop.f32.mrb[10].mxu1  ;;  %v1106_v37 = vpop.f32.mrb[11].mxu0 }
 0x10a   :  { %v1146_v38 = vpop.f32.mrb[11].mxu1  ;;  %v761_v39 = vadd.f32 %v1104_v33, %v977_v62  ;;  %v1107_v40 = vadd.f32 %v1106_v37, %v1105_v35 }
 0x10b   :  { %v1147_v41 = vadd.f32 %v1146_v38, %v1145_v36 }
 0x10c   :  { %v825_v42 = vadd.f32 %v1144_v34, %v761_v39  ;;  %v764_v43 = vadd.f32 %v1107_v40, %v977_v62 }
 0x10e   :  { %v1605_v44 = vadd.f32 %v1147_v41, %v764_v43  ;;  %v1108_v45 = vpop.f32.mrb[12].mxu0 }
 0x10f   :  { %v1148_v46 = vpop.f32.mrb[12].mxu1  ;;  %v1109_v47 = vpop.f32.mrb[13].mxu0 }
 0x110   :  { %v1149_v48 = vpop.f32.mrb[13].mxu1  ;;  %v1110_v49 = vadd.f32 %v1109_v47, %v1108_v45  ;;  %v1111_v51 = vpop.f32.mrb[14].mxu0 }
 0x111   :  { %v1150_v50 = vadd.f32 %v1149_v48, %v1148_v46  ;;  %v1151_v52 = vpop.f32.mrb[14].mxu1  ;;  %v1112_v53 = vpop.f32.mrb[15].mxu0 }
 0x112   :  { %v1152_v54 = vpop.f32.mrb[15].mxu1  ;;  %v769_v55 = vadd.f32 %v1110_v49, %v977_v62 }
 0x114   :  { %v1607_v56 = vadd.f32 %v1150_v50, %v769_v55 }
 0x116   :  { %v1170_v57 = vpop.f32.mrb[16].mxu0 }
 0x117   :  { %v1210_v58 = vpop.f32.mrb[16].mxu1  ;;  %v1171_v59 = vpop.f32.mrb[17].mxu0 }
 0x118   :  { %v1172_v60 = vadd.f32 %v1171_v59, %v1170_v57  ;;  %v1211_v61 = vpop.f32.mrb[17].mxu1  ;;  %v1173_v63 = vpop.f32.mrb[18].mxu0 }
 0x119   :  { %v1212_v0 = vadd.f32 %v1211_v61, %v1210_v58  ;;  %v1213_v1 = vpop.f32.mrb[18].mxu1  ;;  %v1174_v2 = vpop.f32.mrb[19].mxu0 }
 0x11a   :  { %v873_v3 = vadd.f32 %v1172_v60, %v809_v10  ;;  %v1175_v4 = vadd.f32 %v1174_v2, %v1173_v63  ;;  %v1214_v5 = vpop.f32.mrb[19].mxu1 }
 0x11b   :  { %v1215_v6 = vadd.f32 %v1214_v5, %v1213_v1 }
 0x11c   :  { %v937_v7 = vadd.f32 %v1212_v0, %v873_v3  ;;  %v876_v8 = vadd.f32 %v1175_v4, %v812_v12 }
 0x11e   :  { %966 = vst [vmem:[%s1635_s3] sm:$0xff] %v937_v7  ;;  %v940_v62 = vadd.f32 %v1215_v6, %v876_v8  ;;  %v1176_v9 = vpop.f32.mrb[20].mxu0 }
 0x11f   :  { %v1216_v11 = vpop.f32.mrb[20].mxu1  ;;  %v1177_v13 = vpop.f32.mrb[21].mxu0 }
 0x120   :  { %967 = vst [vmem:[%s1635_s3 + $0x8] sm:$0xff] %v940_v62  ;;  %v1178_v14 = vadd.f32 %v1177_v13, %v1176_v9  ;;  %v1217_v15 = vpop.f32.mrb[21].mxu1  ;;  %v1179_v10 = vpop.f32.mrb[22].mxu0 }
 0x121   :  { %v1218_v16 = vadd.f32 %v1217_v15, %v1216_v11  ;;  %v1219_v17 = vpop.f32.mrb[22].mxu1  ;;  %v1180_v18 = vpop.f32.mrb[23].mxu0 }
 0x122   :  { %v881_v19 = vadd.f32 %v1178_v14, %v817_v26  ;;  %v1181_v12 = vadd.f32 %v1180_v18, %v1179_v10  ;;  %v1220_v20 = vpop.f32.mrb[23].mxu1 }
 0x123   :  { %v1221_v21 = vadd.f32 %v1220_v20, %v1219_v17 }
 0x124   :  { %v945_v22 = vadd.f32 %v1218_v16, %v881_v19  ;;  %v884_v23 = vadd.f32 %v1181_v12, %v820_v28 }
 0x126   :  { %968 = vst [vmem:[%s1635_s3 + $0x10] sm:$0xff] %v945_v22  ;;  %v948_v24 = vadd.f32 %v1221_v21, %v884_v23  ;;  %v1182_v25 = vpop.f32.mrb[24].mxu0 }
 0x127   :  { %v1222_v27 = vpop.f32.mrb[24].mxu1  ;;  %v1183_v29 = vpop.f32.mrb[25].mxu0 }
 0x128   :  { %969 = vst [vmem:[%s1635_s3 + $0x18] sm:$0xff] %v948_v24  ;;  %v1184_v30 = vadd.f32 %v1183_v29, %v1182_v25  ;;  %v1223_v31 = vpop.f32.mrb[25].mxu1  ;;  %v1185_v26 = vpop.f32.mrb[26].mxu0 }
 0x129   :  { %v1224_v32 = vadd.f32 %v1223_v31, %v1222_v27  ;;  %v1225_v33 = vpop.f32.mrb[26].mxu1  ;;  %v1186_v34 = vpop.f32.mrb[27].mxu0 }
 0x12a   :  { %v889_v35 = vadd.f32 %v1184_v30, %v825_v42  ;;  %v1187_v28 = vadd.f32 %v1186_v34, %v1185_v26  ;;  %v1226_v36 = vpop.f32.mrb[27].mxu1 }
 0x12b   :  { %v1227_v37 = vadd.f32 %v1226_v36, %v1225_v33 }
 0x12c   :  { %v953_v38 = vadd.f32 %v1224_v32, %v889_v35  ;;  %v892_v39 = vadd.f32 %v1187_v28, %v1605_v44 }
 0x12e   :  { %970 = vst [vmem:[%s1635_s3 + $0x20] sm:$0xff] %v953_v38  ;;  %v956_v40 = vadd.f32 %v1227_v37, %v892_v39  ;;  %v1188_v41 = vpop.f32.mrb[28].mxu0 }
 0x12f   :  { %v1228_v43 = vpop.f32.mrb[28].mxu1  ;;  %v1189_v45 = vpop.f32.mrb[29].mxu0 }
 0x130   :  { %971 = vst [vmem:[%s1635_s3 + $0x28] sm:$0xff] %v956_v40  ;;  %v1190_v46 = vadd.f32 %v1189_v45, %v1188_v41  ;;  %v1229_v42 = vpop.f32.mrb[29].mxu1  ;;  %v1191_v47 = vpop.f32.mrb[30].mxu0 }
 0x131   :  { %v1230_v48 = vadd.f32 %v1229_v42, %v1228_v43  ;;  %v1231_v49 = vpop.f32.mrb[30].mxu1  ;;  %v1192_v50 = vpop.f32.mrb[31].mxu0 }
 0x132   :  { %v897_v44 = vadd.f32 %v1190_v46, %v1607_v56  ;;  %v1232_v51 = vpop.f32.mrb[31].mxu1 }
 0x134   :  { %v961_v52 = vadd.f32 %v1230_v48, %v897_v44 }
 0x136   :  { %972 = vst [vmem:[%s1635_s3 + $0x30] sm:$0xff] %v961_v52 }

// kernel: _lambda_.42
= control target key start
LH: loop header
LB: loop body
LE: loop exit
PB: predicated region body
PF: predicated region fallthrough
CT: control target
= control target key end

     0   :  { %s1366_s1 = inlined_call_operand.vmem [shape: bf16[1024,128], index: 1, kind: input, shape index: {}]   ;;  %s1367_s0 = inlined_call_operand.vmem [shape: bf16[32,1024], index: 0, kind: input, shape index: {}]   ;;  %s1368_s2 = inlined_call_operand.vmem [shape: f32[1,128], index: 2, kind: input, shape index: {}]   ;;  %s1369_s3 = inlined_call_operand.vmem [shape: f32[32,128], index: 3, kind: output, shape index: {}]  }
   0x1   :  { %v1027_v0 = vld [vmem:[%s1366_s1 + $0x40] sm:$0xff]   ;;  %v1031_v4 = vld [vmem:[%s1366_s1 + $0x48] sm:$0xff]   ;;  %v1035_v8 = vld [vmem:[%s1366_s1 + $0x50] sm:$0xff]  }
   0x2   :  { %v1028_v1 = vld [vmem:[%s1366_s1 + $0xc0] sm:$0xff]   ;;  %915 = vmatprep.subr.bf16.mxu0 %v1027_v0  ;;  %v1032_v5 = vld [vmem:[%s1366_s1 + $0xc8] sm:$0xff]   ;;  %v1036_v9 = vld [vmem:[%s1366_s1 + $0xd0] sm:$0xff]  }
   0x3   :  { %v1029_v2 = vld [vmem:[%s1366_s1] sm:$0xff]   ;;  %943 = vmatprep.subr.bf16.mxu1 %v1028_v1  ;;  %v1033_v6 = vld [vmem:[%s1366_s1 + $0x8] sm:$0xff]   ;;  %v1037_v10 = vld [vmem:[%s1366_s1 + $0x10] sm:$0xff]  }
   0x4   :  { %v1030_v3 = vld [vmem:[%s1366_s1 + $0x80] sm:$0xff]   ;;  %916 = vmatpush3.bf16.msra.mxu0 %v1029_v2  ;;  %v1034_v7 = vld [vmem:[%s1366_s1 + $0x88] sm:$0xff]   ;;  %v1038_v11 = vld [vmem:[%s1366_s1 + $0x90] sm:$0xff]  }
   0x5   :  { %944 = vmatpush3.bf16.msra.mxu1 %v1030_v3  ;;  %917 = vmatprep.subr.bf16.mxu0 %v1031_v4  ;;  %v1039_v12 = vld [vmem:[%s1366_s1 + $0x58] sm:$0xff]   ;;  %v1043_v16 = vld [vmem:[%s1366_s1 + $0x60] sm:$0xff]   ;;  %v1047_v20 = vld [vmem:[%s1366_s1 + $0x68] sm:$0xff]  }
   0x6   :  { %945 = vmatprep.subr.bf16.mxu1 %v1032_v5  ;;  %v1040_v13 = vld [vmem:[%s1366_s1 + $0xd8] sm:$0xff]   ;;  %v1044_v17 = vld [vmem:[%s1366_s1 + $0xe0] sm:$0xff]   ;;  %v1048_v21 = vld [vmem:[%s1366_s1 + $0xe8] sm:$0xff]  }
   0x7   :  { %v1041_v14 = vld [vmem:[%s1366_s1 + $0x18] sm:$0xff]   ;;  %v1045_v18 = vld [vmem:[%s1366_s1 + $0x20] sm:$0xff]   ;;  %v1049_v22 = vld [vmem:[%s1366_s1 + $0x28] sm:$0xff]  }
   0x8   :  { %918 = vmatpush3.bf16.msra.mxu0 %v1033_v6  ;;  %v1042_v15 = vld [vmem:[%s1366_s1 + $0x98] sm:$0xff]   ;;  %v1046_v19 = vld [vmem:[%s1366_s1 + $0xa0] sm:$0xff]   ;;  %v1050_v23 = vld [vmem:[%s1366_s1 + $0xa8] sm:$0xff]  }
   0x9   :  { %946 = vmatpush3.bf16.msra.mxu1 %v1034_v7  ;;  %919 = vmatprep.subr.bf16.mxu0 %v1035_v8  ;;  %v1051_v24 = vld [vmem:[%s1366_s1 + $0x70] sm:$0xff]   ;;  %v1055_v28 = vld [vmem:[%s1366_s1 + $0x78] sm:$0xff]   ;;  %v15_v32 = vld [vmem:[%s1367_s0] sm:$0xff] }
   0xa   :  { %947 = vmatprep.subr.bf16.mxu1 %v1036_v9  ;;  %v1052_v25 = vld [vmem:[%s1366_s1 + $0xf0] sm:$0xff]   ;;  %v1056_v29 = vld [vmem:[%s1366_s1 + $0xf8] sm:$0xff]   ;;  %v19_v33 = vld [vmem:[%s1367_s0 + $0x20] sm:$0xff] }
   0xb   :  { %v1053_v26 = vld [vmem:[%s1366_s1 + $0x30] sm:$0xff]   ;;  %v1057_v30 = vld [vmem:[%s1366_s1 + $0x38] sm:$0xff]   ;;  %v16_v34 = vld [vmem:[%s1367_s0 + $0x8] sm:$0xff]  ;;  %v835_v35 = vcombine.low %v15_v32, %v19_v33  ;;  %v836_v36 = vcombine.high %v15_v32, %v19_v33 }
   0xc   :  { %920 = vmatpush3.bf16.msra.mxu0 %v1037_v10  ;;  %v1054_v27 = vld [vmem:[%s1366_s1 + $0xb0] sm:$0xff]   ;;  %v1058_v31 = vld [vmem:[%s1366_s1 + $0xb8] sm:$0xff]   ;;  %v20_v37 = vld [vmem:[%s1367_s0 + $0x28] sm:$0xff] }
   0xd   :  { %948 = vmatpush3.bf16.msra.mxu1 %v1038_v11  ;;  %921 = vmatprep.subr.bf16.mxu0 %v1039_v12  ;;  %v837_v38 = vcombine.low %v16_v34, %v20_v37  ;;  %v838_v39 = vcombine.high %v16_v34, %v20_v37  ;;  %v1059_v40 = vld [vmem:[%s1366_s1 + $0x140] sm:$0xff]   ;;  %v1063_v44 = vld [vmem:[%s1366_s1 + $0x148] sm:$0xff]   ;;  %v1067_v48 = vld [vmem:[%s1366_s1 + $0x150] sm:$0xff]  }
   0xe   :  { %949 = vmatprep.subr.bf16.mxu1 %v1040_v13  ;;  %662 = vmatprep.mubr.bf16.mxu0 %v836_v36  ;;  %v1060_v41 = vld [vmem:[%s1366_s1 + $0x1c0] sm:$0xff]   ;;  %v1064_v45 = vld [vmem:[%s1366_s1 + $0x1c8] sm:$0xff]   ;;  %v1068_v49 = vld [vmem:[%s1366_s1 + $0x1d0] sm:$0xff]  }
   0xf   :  { %711 = vmatprep.mubr.bf16.mxu1 %v838_v39  ;;  %v1061_v42 = vld [vmem:[%s1366_s1 + $0x100] sm:$0xff]   ;;  %v1065_v46 = vld [vmem:[%s1366_s1 + $0x108] sm:$0xff]   ;;  %v1069_v50 = vld [vmem:[%s1366_s1 + $0x110] sm:$0xff]  }
  0x10   :  { %922 = vmatpush3.bf16.msra.mxu0 %v1041_v14  ;;  %v1062_v43 = vld [vmem:[%s1366_s1 + $0x180] sm:$0xff]   ;;  %v1066_v47 = vld [vmem:[%s1366_s1 + $0x188] sm:$0xff]   ;;  %v1070_v51 = vld [vmem:[%s1366_s1 + $0x190] sm:$0xff]  }
  0x11   :  { %950 = vmatpush3.bf16.msra.mxu1 %v1042_v15  ;;  %923 = vmatprep.subr.bf16.mxu0 %v1043_v16  ;;  %v1071_v52 = vld [vmem:[%s1366_s1 + $0x158] sm:$0xff]   ;;  %v1075_v56 = vld [vmem:[%s1366_s1 + $0x160] sm:$0xff]   ;;  %v1079_v63 = vld [vmem:[%s1366_s1 + $0x168] sm:$0xff]  }
  0x12   :  { %951 = vmatprep.subr.bf16.mxu1 %v1044_v17  ;;  %v1072_v53 = vld [vmem:[%s1366_s1 + $0x1d8] sm:$0xff]   ;;  %v1076_v57 = vld [vmem:[%s1366_s1 + $0x1e0] sm:$0xff]   ;;  %v1080_v1 = vld [vmem:[%s1366_s1 + $0x1e8] sm:$0xff]  }
  0x13   :  { %v1073_v54 = vld [vmem:[%s1366_s1 + $0x118] sm:$0xff]   ;;  %v1077_v58 = vld [vmem:[%s1366_s1 + $0x120] sm:$0xff]   ;;  %v1081_v2 = vld [vmem:[%s1366_s1 + $0x128] sm:$0xff]  }
  0x14   :  { %924 = vmatpush3.bf16.msra.mxu0 %v1045_v18  ;;  %v1074_v55 = vld [vmem:[%s1366_s1 + $0x198] sm:$0xff]   ;;  %v1078_v59 = vld [vmem:[%s1366_s1 + $0x1a0] sm:$0xff]   ;;  %v1082_v3 = vld [vmem:[%s1366_s1 + $0x1a8] sm:$0xff]  }
  0x15   :  { %952 = vmatpush3.bf16.msra.mxu1 %v1046_v19  ;;  %925 = vmatprep.subr.bf16.mxu0 %v1047_v20  ;;  %v23_v60 = vld [vmem:[%s1367_s0 + $0x40] sm:$0xff]  ;;  %v24_v4 = vld [vmem:[%s1367_s0 + $0x48] sm:$0xff]  ;;  %v1083_v8 = vld [vmem:[%s1366_s1 + $0x170] sm:$0xff]  }
  0x16   :  { %953 = vmatprep.subr.bf16.mxu1 %v1048_v21  ;;  %v27_v61 = vld [vmem:[%s1367_s0 + $0x60] sm:$0xff]  ;;  %v28_v5 = vld [vmem:[%s1367_s0 + $0x68] sm:$0xff]  ;;  %v1084_v9 = vld [vmem:[%s1366_s1 + $0x1f0] sm:$0xff]  }
  0x17   :  { %v844_v62 = vcombine.high %v23_v60, %v27_v61  ;;  %v843_v0 = vcombine.low %v23_v60, %v27_v61  ;;  %v846_v6 = vcombine.high %v24_v4, %v28_v5  ;;  %v845_v7 = vcombine.low %v24_v4, %v28_v5  ;;  %v1085_v10 = vld [vmem:[%s1366_s1 + $0x130] sm:$0xff]   ;;  %v1087_v12 = vld [vmem:[%s1366_s1 + $0x178] sm:$0xff]   ;;  %v834_v34 = vld [vmem:[%s1368_s2] ss:$0 sm:$0xff] }
  0x18   :  { %926 = vmatpush3.bf16.msra.mxu0 %v1049_v22  ;;  %v1086_v11 = vld [vmem:[%s1366_s1 + $0x1b0] sm:$0xff]   ;;  %v1088_v13 = vld [vmem:[%s1366_s1 + $0x1f8] sm:$0xff]  }
  0x19   :  { %954 = vmatpush3.bf16.msra.mxu1 %v1050_v23  ;;  %927 = vmatprep.subr.bf16.mxu0 %v1051_v24  ;;  %v1089_v14 = vld [vmem:[%s1366_s1 + $0x138] sm:$0xff]   ;;  %v17_v16 = vld [vmem:[%s1367_s0 + $0x10] sm:$0xff] }
  0x1a   :  { %955 = vmatprep.subr.bf16.mxu1 %v1052_v25  ;;  %v1090_v15 = vld [vmem:[%s1366_s1 + $0x1b8] sm:$0xff]   ;;  %v21_v17 = vld [vmem:[%s1367_s0 + $0x30] sm:$0xff] }
  0x1b   :  { %v18_v18 = vld [vmem:[%s1367_s0 + $0x18] sm:$0xff]  ;;  %v839_v20 = vcombine.low %v17_v16, %v21_v17  ;;  %v840_v21 = vcombine.high %v17_v16, %v21_v17  ;;  %v25_v24 = vld [vmem:[%s1367_s0 + $0x50] sm:$0xff] }
  0x1c   :  { %928 = vmatpush3.bf16.msra.mxu0 %v1053_v26  ;;  %v22_v19 = vld [vmem:[%s1367_s0 + $0x38] sm:$0xff]  ;;  %v29_v25 = vld [vmem:[%s1367_s0 + $0x70] sm:$0xff] }
  0x1d   :  { %956 = vmatpush3.bf16.msra.mxu1 %v1054_v27  ;;  %929 = vmatprep.subr.bf16.mxu0 %v1055_v28  ;;  %v841_v22 = vcombine.low %v18_v18, %v22_v19  ;;  %v842_v23 = vcombine.high %v18_v18, %v22_v19  ;;  %v26_v26 = vld [vmem:[%s1367_s0 + $0x58] sm:$0xff]  ;;  %v848_v27 = vcombine.high %v25_v24, %v29_v25 }
  0x1e   :  { %957 = vmatprep.subr.bf16.mxu1 %v1056_v29  ;;  %v30_v28 = vld [vmem:[%s1367_s0 + $0x78] sm:$0xff] }
  0x1f   :  { %v850_v29 = vcombine.high %v26_v26, %v30_v28 }
  0x20   :  { %930 = vmatpush3.bf16.msra.mxu0 %v1057_v30  ;;  %v847_v30 = vcombine.low %v25_v24, %v29_v25 }
  0x21   :  { %958 = vmatpush3.bf16.msra.mxu1 %v1058_v31  ;;  %971 = vmatprep.subr.bf16.mxu0 %v1059_v40  ;;  %v849_v31 = vcombine.low %v26_v26, %v30_v28 }
  0x22   :  { %999 = vmatprep.subr.bf16.mxu1 %v1060_v41 }
  0x23   :  { %663 = vmatmul.mubr.bf16.vlgmr.msra.gmra.mrb[0].mxu0 %v835_v35 }
  0x24   :  { %712 = vmatmul.mubr.bf16.vlgmr.msra.gmra.mrb[0].mxu1 %v837_v38  ;;  %972 = vmatpush3.bf16.msra.mxu0 %v1061_v42 }
  0x25   :  { %1000 = vmatpush3.bf16.msra.mxu1 %v1062_v43  ;;  %973 = vmatprep.subr.bf16.mxu0 %v1063_v44 }
  0x26   :  { %1001 = vmatprep.subr.bf16.mxu1 %v1064_v45  ;;  %670 = vmatprep.mubr.bf16.mxu0 %v844_v62 }
  0x27   :  { %719 = vmatprep.mubr.bf16.mxu1 %v846_v6 }
  0x28   :  { %974 = vmatpush3.bf16.msra.mxu0 %v1065_v46 }
  0x29   :  { %1002 = vmatpush3.bf16.msra.mxu1 %v1066_v47  ;;  %975 = vmatprep.subr.bf16.mxu0 %v1067_v48 }
  0x2a   :  { %1003 = vmatprep.subr.bf16.mxu1 %v1068_v49 }
  0x2b   :  { %671 = vmatmul.mubr.bf16.gmra.mrb[4].mxu0 %v843_v0 }
  0x2c   :  { %976 = vmatpush3.bf16.msra.mxu0 %v1069_v50  ;;  %720 = vmatmul.mubr.bf16.gmra.mrb[4].mxu1 %v845_v7 }
  0x2d   :  { %1004 = vmatpush3.bf16.msra.mxu1 %v1070_v51  ;;  %977 = vmatprep.subr.bf16.mxu0 %v1071_v52 }
  0x2e   :  { %1005 = vmatprep.subr.bf16.mxu1 %v1072_v53  ;;  %760 = vmatprep.mubr.bf16.mxu0 %v840_v21 }
  0x2f   :  { %809 = vmatprep.mubr.bf16.mxu1 %v842_v23 }
  0x30   :  { %978 = vmatpush3.bf16.msra.mxu0 %v1073_v54 }
  0x31   :  { %1006 = vmatpush3.bf16.msra.mxu1 %v1074_v55  ;;  %979 = vmatprep.subr.bf16.mxu0 %v1075_v56 }
  0x32   :  { %1007 = vmatprep.subr.bf16.mxu1 %v1076_v57 }
  0x34   :  { %980 = vmatpush3.bf16.msra.mxu0 %v1077_v58 }
  0x35   :  { %1008 = vmatpush3.bf16.msra.mxu1 %v1078_v59  ;;  %981 = vmatprep.subr.bf16.mxu0 %v1079_v63 }
  0x36   :  { %1009 = vmatprep.subr.bf16.mxu1 %v1080_v1 }
  0x38   :  { %982 = vmatpush3.bf16.msra.mxu0 %v1081_v2 }
  0x39   :  { %1010 = vmatpush3.bf16.msra.mxu1 %v1082_v3  ;;  %983 = vmatprep.subr.bf16.mxu0 %v1083_v8 }
  0x3a   :  { %1011 = vmatprep.subr.bf16.mxu1 %v1084_v9 }
  0x3c   :  { %984 = vmatpush3.bf16.msra.mxu0 %v1085_v10 }
  0x3d   :  { %1012 = vmatpush3.bf16.msra.mxu1 %v1086_v11  ;;  %985 = vmatprep.subr.bf16.mxu0 %v1087_v12 }
  0x3e   :  { %1013 = vmatprep.subr.bf16.mxu1 %v1088_v13 }
  0x40   :  { %986 = vmatpush3.bf16.msra.mxu0 %v1089_v14 }
  0x41   :  { %1014 = vmatpush3.bf16.msra.mxu1 %v1090_v15 }
  0x43   :  { %761 = vmatmul.mubr.bf16.vlgmr.msra.gmra.mrb[8].mxu0 %v839_v20 }
  0x44   :  { %810 = vmatmul.mubr.bf16.vlgmr.msra.gmra.mrb[8].mxu1 %v841_v22  ;;  %768 = vmatprep.mubr.bf16.mxu0 %v848_v27 }
  0x45   :  { %817 = vmatprep.mubr.bf16.mxu1 %v850_v29 }
  0x4b   :  { %769 = vmatmul.mubr.bf16.gmra.mrb[12].mxu0 %v847_v30 }
  0x4c   :  { %818 = vmatmul.mubr.bf16.gmra.mrb[12].mxu1 %v849_v31 }
  0xf6   :  { %v931_v32 = vpop.f32.mrb[0].mxu0 }
  0xf7   :  { %v959_v33 = vpop.f32.mrb[0].mxu1  ;;  %v932_v35 = vpop.f32.mrb[1].mxu0 }
  0xf8   :  { %v933_v36 = vadd.f32 %v932_v35, %v931_v32  ;;  %v960_v37 = vpop.f32.mrb[1].mxu1  ;;  %v934_v38 = vpop.f32.mrb[2].mxu0 }
  0xf9   :  { %v961_v39 = vadd.f32 %v960_v37, %v959_v33  ;;  %v962_v40 = vpop.f32.mrb[2].mxu1  ;;  %v935_v41 = vpop.f32.mrb[3].mxu0 }
  0xfa   :  { %v665_v42 = vadd.f32 %v933_v36, %v834_v34  ;;  %v936_v43 = vadd.f32 %v935_v41, %v934_v38  ;;  %v963_v44 = vpop.f32.mrb[3].mxu1 }
  0xfb   :  { %v964_v45 = vadd.f32 %v963_v44, %v962_v40 }
  0xfc   :  { %v714_v46 = vadd.f32 %v961_v39, %v665_v42  ;;  %v668_v47 = vadd.f32 %v936_v43, %v834_v34 }
  0xfe   :  { %v717_v48 = vadd.f32 %v964_v45, %v668_v47  ;;  %v937_v49 = vpop.f32.mrb[4].mxu0 }
  0xff   :  { %v938_v50 = vpop.f32.mrb[5].mxu0  ;;  %v965_v56 = vpop.f32.mrb[4].mxu1 }
 0x100   :  { %v939_v51 = vadd.f32 %v938_v50, %v937_v49  ;;  %v940_v52 = vpop.f32.mrb[6].mxu0  ;;  %v966_v57 = vpop.f32.mrb[5].mxu1 }
 0x101   :  { %v941_v53 = vpop.f32.mrb[7].mxu0  ;;  %v967_v59 = vadd.f32 %v966_v57, %v965_v56  ;;  %v968_v60 = vpop.f32.mrb[6].mxu1 }
 0x102   :  { %v942_v54 = vadd.f32 %v941_v53, %v940_v52  ;;  %v673_v55 = vadd.f32 %v939_v51, %v834_v34  ;;  %v969_v61 = vpop.f32.mrb[7].mxu1 }
 0x103   :  { %v970_v63 = vadd.f32 %v969_v61, %v968_v60 }
 0x104   :  { %v676_v58 = vadd.f32 %v942_v54, %v834_v34  ;;  %v722_v62 = vadd.f32 %v967_v59, %v673_v55 }
 0x106   :  { %v725_v0 = vadd.f32 %v970_v63, %v676_v58 }
 0x116   :  { %v987_v1 = vpop.f32.mrb[8].mxu0 }
 0x117   :  { %v1015_v2 = vpop.f32.mrb[8].mxu1  ;;  %v988_v3 = vpop.f32.mrb[9].mxu0 }
 0x118   :  { %v1016_v4 = vpop.f32.mrb[9].mxu1  ;;  %v989_v5 = vadd.f32 %v988_v3, %v987_v1  ;;  %v990_v7 = vpop.f32.mrb[10].mxu0 }
 0x119   :  { %v1017_v6 = vadd.f32 %v1016_v4, %v1015_v2  ;;  %v1018_v8 = vpop.f32.mrb[10].mxu1  ;;  %v991_v9 = vpop.f32.mrb[11].mxu0 }
 0x11a   :  { %v1019_v10 = vpop.f32.mrb[11].mxu1  ;;  %v763_v11 = vadd.f32 %v989_v5, %v714_v46  ;;  %v992_v12 = vadd.f32 %v991_v9, %v990_v7 }
 0x11b   :  { %v1020_v13 = vadd.f32 %v1019_v10, %v1018_v8 }
 0x11c   :  { %v812_v14 = vadd.f32 %v1017_v6, %v763_v11  ;;  %v766_v15 = vadd.f32 %v992_v12, %v717_v48 }
 0x11e   :  { %826 = vst [vmem:[%s1369_s3] sm:$0xff] %v812_v14  ;;  %v815_v16 = vadd.f32 %v1020_v13, %v766_v15  ;;  %v993_v17 = vpop.f32.mrb[12].mxu0 }
 0x11f   :  { %v1021_v18 = vpop.f32.mrb[12].mxu1  ;;  %v994_v19 = vpop.f32.mrb[13].mxu0 }
 0x120   :  { %v1022_v20 = vpop.f32.mrb[13].mxu1  ;;  %827 = vst [vmem:[%s1369_s3 + $0x8] sm:$0xff] %v815_v16  ;;  %v995_v21 = vadd.f32 %v994_v19, %v993_v17  ;;  %v996_v23 = vpop.f32.mrb[14].mxu0 }
 0x121   :  { %v1023_v22 = vadd.f32 %v1022_v20, %v1021_v18  ;;  %v1024_v24 = vpop.f32.mrb[14].mxu1  ;;  %v997_v25 = vpop.f32.mrb[15].mxu0 }
 0x122   :  { %v1025_v26 = vpop.f32.mrb[15].mxu1  ;;  %v771_v27 = vadd.f32 %v995_v21, %v722_v62  ;;  %v998_v28 = vadd.f32 %v997_v25, %v996_v23 }
 0x123   :  { %v1026_v29 = vadd.f32 %v1025_v26, %v1024_v24 }
 0x124   :  { %v820_v30 = vadd.f32 %v1023_v22, %v771_v27  ;;  %v774_v31 = vadd.f32 %v998_v28, %v725_v0 }
 0x126   :  { %828 = vst [vmem:[%s1369_s3 + $0x10] sm:$0xff] %v820_v30  ;;  %v823_v32 = vadd.f32 %v1026_v29, %v774_v31 }
 0x128   :  { %829 = vst [vmem:[%s1369_s3 + $0x18] sm:$0xff] %v823_v32 }

</bundles_post_ra>
